<compile_context>
chip_gen: v6e
topology: v6e:2x2x1
jax: 0.10.0
libtpu: 0.0.40
codegen_flags: <defaults>
</compile_context>

<pallas_src>
import functools

import jax
import jax.numpy as jnp
from jax.experimental import pallas as pl
from jax.experimental.pallas import tpu as pltpu

LANE = 128


def _round_up(v, m):
    return (v + m - 1) // m * m


def _choose_th(ho, wo, target=256):
    """Smallest divisor of ho with th*wo >= target (else ho) -> MXU M dim."""
    best = 1
    for t in range(1, ho + 1):
        if ho % t == 0:
            best = t
            if t * wo >= target:
                break
    return best


# ---------------------------------------------------------------------------
# Kernel 1: 3x3 conv (stride 1 or 2), row-tiled, + per-tile BN partial stats
# ---------------------------------------------------------------------------
def _conv3x3_bn_stats_kernel(x_ref, w_ref, y_ref, sum_ref, sq_ref,
                             *, stride, th, wo, cin_p):
    h = pl.program_id(1)
    r0 = h * th                       # first output row of this tile
    cout_p = w_ref.shape[-1]
    m = th * wo

    acc = jnp.zeros((m, cout_p), jnp.float32)
    for kh in range(3):
        for kw in range(3):
            if stride == 2:
                # x_ref: (1, Hq2, 2, Wq, 2*cin_p); padded row 2r+kh lives at
                # (outer r + kh//2, parity kh%2); padded col 2w+kw lives at
                # (col w + kw//2, channel half kw%2).
                ro, par = kh // 2, kh % 2
                co, half = kw // 2, kw % 2
                lhs = x_ref[:, pl.ds(r0 + ro, th), par:par + 1,
                            co:co + wo, half * cin_p:(half + 1) * cin_p]
            else:
                # x_ref: (1, ho+2, wo+2, cin_p), zero halo already present.
                lhs = x_ref[:, pl.ds(r0 + kh, th), kw:kw + wo, :]
            acc = acc + jnp.dot(lhs.reshape(m, cin_p), w_ref[kh * 3 + kw],
                                preferred_element_type=jnp.float32)

    y_ref[...] = acc.reshape(y_ref.shape).astype(y_ref.dtype)
    # Per-tile partial BN statistics (summed over tiles on the host).
    sum_ref[...] = jnp.sum(acc, axis=0).reshape(sum_ref.shape)
    sq_ref[...] = jnp.sum(acc * acc, axis=0).reshape(sq_ref.shape)


def conv3x3_bn_stats(x_pad, w9, *, stride, ho, wo, th, cin_p):
    """Returns (raw conv bf16 (N,ho,wo,cout_p), partial sums, partial sumsq)."""
    cout_p = w9.shape[-1]
    if stride == 2:
        n, hq2, two, wq, cx = x_pad.shape
        assert two == 2 and cx == 2 * cin_p
        x_block = (1, hq2, 2, wq, cx)
        x_map = lambda b, h: (b, 0, 0, 0, 0)
    else:
        n, hq, wq, cx = x_pad.shape
        assert cx == cin_p
        x_block = (1, hq, wq, cx)
        x_map = lambda b, h: (b, 0, 0, 0)
    nh = ho // th

    kernel = functools.partial(_conv3x3_bn_stats_kernel, stride=stride,
                               th=th, wo=wo, cin_p=cin_p)
    return pl.pallas_call(
        kernel,
        grid=(n, nh),
        in_specs=[
            pl.BlockSpec(x_block, x_map),                      # image: fetched once per b
            pl.BlockSpec((9, cin_p, cout_p), lambda b, h: (0, 0, 0)),
        ],
        out_shape=(
            jax.ShapeDtypeStruct((n, ho, wo, cout_p), jnp.bfloat16),   # raw conv
            jax.ShapeDtypeStruct((n, nh, 1, cout_p), jnp.float32),     # partial sum
            jax.ShapeDtypeStruct((n, nh, 1, cout_p), jnp.float32),     # partial sumsq
        ),
        out_specs=(
            pl.BlockSpec((1, th, wo, cout_p), lambda b, h: (b, h, 0, 0)),
            pl.BlockSpec((1, 1, 1, cout_p), lambda b, h: (b, h, 0, 0)),
            pl.BlockSpec((1, 1, 1, cout_p), lambda b, h: (b, h, 0, 0)),
        ),
        compiler_params=pltpu.CompilerParams(
            dimension_semantics=("parallel", "parallel"),
            vmem_limit_bytes=48 * 1024 * 1024,
        ),
    )(x_pad, w9)


# ---------------------------------------------------------------------------
# Kernel 2a: BN(scale,shift) + ReLU, writing the zero-padded NHWC layout that
#            the following stride-1 conv consumes (no separate jnp.pad pass).
# ---------------------------------------------------------------------------
def _bn_relu_pad_kernel(y_ref, scale_ref, shift_ref, o_ref):
    ho, wo = y_ref.shape[1], y_ref.shape[2]
    o_ref[...] = jnp.zeros_like(o_ref)                 # zero halo + padded channels
    x = y_ref[...].astype(jnp.float32)
    v = jnp.maximum(x * scale_ref[...] + shift_ref[...], 0.0)
    o_ref[:, 1:1 + ho, 1:1 + wo, :] = v.astype(o_ref.dtype)


def bn_relu_pad(y, scale, shift):
    n, ho, wo, c = y.shape
    return pl.pallas_call(
        _bn_relu_pad_kernel,
        grid=(n,),
        in_specs=[
            pl.BlockSpec((1, ho, wo, c), lambda b: (b, 0, 0, 0)),
            pl.BlockSpec((1, c), lambda b: (0, 0)),
            pl.BlockSpec((1, c), lambda b: (0, 0)),
        ],
        out_shape=jax.ShapeDtypeStruct((n, ho + 2, wo + 2, c), jnp.bfloat16),
        out_specs=pl.BlockSpec((1, ho + 2, wo + 2, c), lambda b: (b, 0, 0, 0)),
        compiler_params=pltpu.CompilerParams(dimension_semantics=("parallel",)),
    )(y, scale, shift)


# ---------------------------------------------------------------------------
# Kernel 2b: flat BN(scale,shift) + ReLU (final stage, no padding needed)
# ---------------------------------------------------------------------------
def _bn_relu_apply_kernel(y_ref, scale_ref, shift_ref, o_ref):
    x = y_ref[...].astype(jnp.float32)
    o_ref[...] = jnp.maximum(x * scale_ref[...] + shift_ref[...], 0.0
                             ).astype(o_ref.dtype)


def bn_relu_apply(y, scale, shift, out_dtype, tm=2048):
    m, c = y.shape
    tm = min(tm, m)
    return pl.pallas_call(
        _bn_relu_apply_kernel,
        grid=(pl.cdiv(m, tm),),
        in_specs=[
            pl.BlockSpec((tm, c), lambda i: (i, 0)),
            pl.BlockSpec((1, c), lambda i: (0, 0)),
            pl.BlockSpec((1, c), lambda i: (0, 0)),
        ],
        out_shape=jax.ShapeDtypeStruct((m, c), out_dtype),
        out_specs=pl.BlockSpec((tm, c), lambda i: (i, 0)),
        compiler_params=pltpu.CompilerParams(dimension_semantics=("parallel",)),
    )(y, scale, shift)


# ---------------------------------------------------------------------------
# Host-side glue: layout, channel padding, weight reshaping, BN folding
# ---------------------------------------------------------------------------
def _prep_weight(w_oihw, cin_p, cout_p):
    co, ci, kh, kw = w_oihw.shape
    w = jnp.transpose(w_oihw, (2, 3, 1, 0))                     # (kh, kw, ci, co)
    w = jnp.pad(w, ((0, 0), (0, 0), (0, cin_p - ci), (0, cout_p - co)))
    return w.reshape(kh * kw, cin_p, cout_p).astype(jnp.bfloat16)


def _bn_fold(sum_p, sq_p, gamma, beta, count, cout_p, eps=1e-5):
    # NOTE: E[x^2] - E[x]^2 in f32; fine at these sizes (see review concern).
    s = jnp.sum(sum_p, axis=(0, 1, 2))
    q = jnp.sum(sq_p, axis=(0, 1, 2))
    mean = s / count
    var = jnp.maximum(q / count - mean * mean, 0.0)              # biased variance
    g = jnp.pad(gamma.astype(jnp.float32), (0, cout_p - gamma.shape[0]))
    b = jnp.pad(beta.astype(jnp.float32), (0, cout_p - beta.shape[0]))
    scale = g * jax.lax.rsqrt(var + eps)
    shift = b - mean * scale
    return scale.reshape(1, cout_p), shift.reshape(1, cout_p)


@jax.jit
def down_block(x_nchw, params):
    """Matches DownBlock.forward; x: (N,in_nc,H,W) -> (N,out_nc,ceil(H/2),ceil(W/2))."""
    n, cin, h, w = x_nchw.shape
    cout = params["w1"].shape[0]
    cin_p = _round_up(cin, LANE)
    cout_p = _round_up(cout, LANE)

    ho = (h - 1) // 2 + 1                    # stride-2, k=3, pad=1
    wo = (w - 1) // 2 + 1
    th = _choose_th(ho, wo)

    # NCHW -> NHWC, lane-dense channel padding, bf16 matmul inputs.
    x = jnp.transpose(x_nchw, (0, 2, 3, 1))
    x = jnp.pad(x, ((0, 0), (0, 0), (0, 0), (0, cin_p - cin))).astype(jnp.bfloat16)

    # ---- conv1 (stride 2) + fused BN1 partial statistics ----
    # Spatial zero-pad, then fold column pairs into channels and split row
    # parity into its own dim (both free reshapes) so every in-kernel tap is a
    # static, lane-aligned slice plus a dynamic row window.
    hp = h + 2
    hp += hp % 2                              # even row count for parity split
    wpad = 2 * (wo + 1)
    xp = jnp.pad(x, ((0, 0), (1, hp - h - 1), (1, wpad - w - 1), (0, 0)))
    xq = xp.reshape(n, hp // 2, 2, wo + 1, 2 * cin_p)
    w1 = _prep_weight(params["w1"], cin_p, cout_p)
    y1, s1, q1 = conv3x3_bn_stats(xq, w1, stride=2, ho=ho, wo=wo, th=th,
                                  cin_p=cin_p)
    scale1, shift1 = _bn_fold(s1, q1, params["g1"], params["b1"],
                              n * ho * wo, cout_p)
    # BN1 + ReLU, emitted directly in conv2's zero-padded input layout.
    a1p = bn_relu_pad(y1, scale1, shift1)                 # (n, ho+2, wo+2, cout_p)

    # ---- conv2 (stride 1) + fused BN2 partial statistics ----
    w2 = _prep_weight(params["w2"], cout_p, cout_p)
    y2, s2, q2 = conv3x3_bn_stats(a1p, w2, stride=1, ho=ho, wo=wo, th=th,
                                  cin_p=cout_p)
    scale2, shift2 = _bn_fold(s2, q2, params["g2"], params["b2"],
                              n * ho * wo, cout_p)
    a2 = bn_relu_apply(y2.reshape(n * ho * wo, cout_p), scale2, shift2,
                       jnp.float32).reshape(n, ho, wo, cout_p)

    # Drop channel padding, NHWC -> NCHW.
    return jnp.transpose(a2[..., :cout], (0, 3, 1, 2))


# ---------------------------------------------------------------------------
# Pure-JAX reference (correctness check only)
# ---------------------------------------------------------------------------
def _ref_down_block(x_nchw, params):
    def block(x, wgt, g, b, stride):
        y = jax.lax.conv_general_dilated(
            x, wgt, (stride, stride), ((1, 1), (1, 1)),
            dimension_numbers=("NCHW", "OIHW", "NCHW"))
        mean = jnp.mean(y, axis=(0, 2, 3), keepdims=True)
        var = jnp.mean((y - mean) ** 2, axis=(0, 2, 3), keepdims=True)
        y = (y - mean) * jax.lax.rsqrt(var + 1e-5)
        y = y * g.reshape(1, -1, 1, 1) + b.reshape(1, -1, 1, 1)
        return jnp.maximum(y, 0.0)
    x = block(x_nchw, params["w1"], params["g1"], params["b1"], 2)
    return block(x, params["w2"], params["g2"], params["b2"], 1)


if __name__ == "__main__":
    in_nc, out_nc = 4, 8
    N, H, W = 2, 16, 16

    key = jax.random.PRNGKey(0)
    k1, k2, k3, k4, k5, k6, k7 = jax.random.split(key, 7)
    params = {
        "w1": 0.1 * jax.random.normal(k1, (out_nc, in_nc, 3, 3), jnp.float32),
        "g1": 1.0 + 0.1 * jax.random.normal(k2, (out_nc,), jnp.float32),
        "b1": 0.1 * jax.random.normal(k3, (out_nc,), jnp.float32),
        "w2": 0.1 * jax.random.normal(k4, (out_nc, out_nc, 3, 3), jnp.float32),
        "g2": 1.0 + 0.1 * jax.random.normal(k5, (out_nc,), jnp.float32),
        "b2": 0.1 * jax.random.normal(k6, (out_nc,), jnp.float32),
    }
    x = jax.random.normal(k7, (N, in_nc, H, W), jnp.float32)

    out = jax.block_until_ready(down_block(x, params))
    assert out.shape == (N, out_nc, H // 2, W // 2), out.shape

    ref = _ref_down_block(x, params)
    # bf16 matmul inputs + bf16 raw-conv intermediates -> loose tolerance.
    assert jnp.allclose(out, ref, atol=3e-2, rtol=3e-2), \
        float(jnp.max(jnp.abs(out - ref)))

    print("KERNEL_OK")
</pallas_src>

<mosaic_0001>
module attributes {stable_mosaic.version = 11 : i64} {
  func.func @_conv3x3_bn_stats_kernel(%arg0: i32, %arg1: i32, %arg2: memref<1x9x2x9x256xbf16, #tpu.memory_space<vmem>>, %arg3: memref<9x128x128xbf16, #tpu.memory_space<vmem>>, %arg4: memref<1x8x8x128xbf16, #tpu.memory_space<vmem>>, %arg5: memref<1x1x1x128xf32, #tpu.memory_space<vmem>>, %arg6: memref<1x1x1x128xf32, #tpu.memory_space<vmem>>) attributes {dimension_semantics = [#tpu.dimension_semantics<parallel>, #tpu.dimension_semantics<parallel>], iteration_bounds = array<i64: 2, 1>, scalar_prefetch = 0 : i64, scratch_operands = 0 : i64, tpu.core_type = #tpu.core_type<tc>, window_params = [{transform_indices = @transform_0, window_bounds = array<i64: 1, 9, 2, 9, 256>}, {pipeline_mode = #tpu.pipeline_mode<synchronous>, transform_indices = @transform_1, window_bounds = array<i64: 9, 128, 128>}, {transform_indices = @transform_2, window_bounds = array<i64: 1, 8, 8, 128>}, {transform_indices = @transform_3, window_bounds = array<i64: 1, 1, 1, 128>}, {transform_indices = @transform_4, window_bounds = array<i64: 1, 1, 1, 128>}]} {
    %c8_i32 = arith.constant 8 : i32
    %0 = arith.muli %arg1, %c8_i32 : i32
    %cst = arith.constant 0.000000e+00 : f32
    %1 = vector.broadcast %cst : f32 to vector<64x128xf32>
    %c0_i32 = arith.constant 0 : i32
    %2 = arith.addi %0, %c0_i32 : i32
    %c0 = arith.constant 0 : index
    %3 = arith.index_cast %2 : i32 to index
    %c0_0 = arith.constant 0 : index
    %c0_1 = arith.constant 0 : index
    %c0_2 = arith.constant 0 : index
    %4 = vector.load %arg2[%c0, %3, %c0_0, %c0_1, %c0_2] : memref<1x9x2x9x256xbf16, #tpu.memory_space<vmem>>, vector<1x8x1x8x128xbf16>
    %5 = vector.shape_cast %4 : vector<1x8x1x8x128xbf16> to vector<64x128xbf16>
    %c0_3 = arith.constant 0 : index
    %c0_4 = arith.constant 0 : index
    %c0_5 = arith.constant 0 : index
    %6 = vector.load %arg3[%c0_3, %c0_4, %c0_5] : memref<9x128x128xbf16, #tpu.memory_space<vmem>>, vector<1x128x128xbf16>
    %7 = vector.shape_cast %6 : vector<1x128x128xbf16> to vector<128x128xbf16>
    %cst_6 = arith.constant dense<0.000000e+00> : vector<64x128xf32>
    %8 = tpu.matmul %5, %7, %cst_6 {dimension_numbers = #tpu.dot_dimension_numbers<[1], [0], [0], [1], [0, 0, 1, 1], [], []>} : vector<64x128xbf16>, vector<128x128xbf16>, vector<64x128xf32> -> vector<64x128xf32>
    %9 = arith.addf %1, %8 : vector<64x128xf32>
    %c0_i32_7 = arith.constant 0 : i32
    %10 = arith.addi %0, %c0_i32_7 : i32
    %c0_8 = arith.constant 0 : index
    %11 = arith.index_cast %10 : i32 to index
    %c0_9 = arith.constant 0 : index
    %c0_10 = arith.constant 0 : index
    %c128 = arith.constant 128 : index
    %12 = vector.load %arg2[%c0_8, %11, %c0_9, %c0_10, %c128] : memref<1x9x2x9x256xbf16, #tpu.memory_space<vmem>>, vector<1x8x1x8x128xbf16>
    %13 = vector.shape_cast %12 : vector<1x8x1x8x128xbf16> to vector<64x128xbf16>
    %c1 = arith.constant 1 : index
    %c0_11 = arith.constant 0 : index
    %c0_12 = arith.constant 0 : index
    %14 = vector.load %arg3[%c1, %c0_11, %c0_12] : memref<9x128x128xbf16, #tpu.memory_space<vmem>>, vector<1x128x128xbf16>
    %15 = vector.shape_cast %14 : vector<1x128x128xbf16> to vector<128x128xbf16>
    %cst_13 = arith.constant dense<0.000000e+00> : vector<64x128xf32>
    %16 = tpu.matmul %13, %15, %cst_13 {dimension_numbers = #tpu.dot_dimension_numbers<[1], [0], [0], [1], [0, 0, 1, 1], [], []>} : vector<64x128xbf16>, vector<128x128xbf16>, vector<64x128xf32> -> vector<64x128xf32>
    %17 = arith.addf %9, %16 : vector<64x128xf32>
    %c0_i32_14 = arith.constant 0 : i32
    %18 = arith.addi %0, %c0_i32_14 : i32
    %c0_15 = arith.constant 0 : index
    %19 = arith.index_cast %18 : i32 to index
    %c0_16 = arith.constant 0 : index
    %c1_17 = arith.constant 1 : index
    %c0_18 = arith.constant 0 : index
    %20 = vector.load %arg2[%c0_15, %19, %c0_16, %c1_17, %c0_18] : memref<1x9x2x9x256xbf16, #tpu.memory_space<vmem>>, vector<1x8x1x8x128xbf16>
    %21 = vector.shape_cast %20 : vector<1x8x1x8x128xbf16> to vector<64x128xbf16>
    %c2 = arith.constant 2 : index
    %c0_19 = arith.constant 0 : index
    %c0_20 = arith.constant 0 : index
    %22 = vector.load %arg3[%c2, %c0_19, %c0_20] : memref<9x128x128xbf16, #tpu.memory_space<vmem>>, vector<1x128x128xbf16>
    %23 = vector.shape_cast %22 : vector<1x128x128xbf16> to vector<128x128xbf16>
    %cst_21 = arith.constant dense<0.000000e+00> : vector<64x128xf32>
    %24 = tpu.matmul %21, %23, %cst_21 {dimension_numbers = #tpu.dot_dimension_numbers<[1], [0], [0], [1], [0, 0, 1, 1], [], []>} : vector<64x128xbf16>, vector<128x128xbf16>, vector<64x128xf32> -> vector<64x128xf32>
    %25 = arith.addf %17, %24 : vector<64x128xf32>
    %c0_i32_22 = arith.constant 0 : i32
    %26 = arith.addi %0, %c0_i32_22 : i32
    %c0_23 = arith.constant 0 : index
    %27 = arith.index_cast %26 : i32 to index
    %c1_24 = arith.constant 1 : index
    %c0_25 = arith.constant 0 : index
    %c0_26 = arith.constant 0 : index
    %28 = vector.load %arg2[%c0_23, %27, %c1_24, %c0_25, %c0_26] : memref<1x9x2x9x256xbf16, #tpu.memory_space<vmem>>, vector<1x8x1x8x128xbf16>
    %29 = vector.shape_cast %28 : vector<1x8x1x8x128xbf16> to vector<64x128xbf16>
    %c3 = arith.constant 3 : index
    %c0_27 = arith.constant 0 : index
    %c0_28 = arith.constant 0 : index
    %30 = vector.load %arg3[%c3, %c0_27, %c0_28] : memref<9x128x128xbf16, #tpu.memory_space<vmem>>, vector<1x128x128xbf16>
    %31 = vector.shape_cast %30 : vector<1x128x128xbf16> to vector<128x128xbf16>
    %cst_29 = arith.constant dense<0.000000e+00> : vector<64x128xf32>
    %32 = tpu.matmul %29, %31, %cst_29 {dimension_numbers = #tpu.dot_dimension_numbers<[1], [0], [0], [1], [0, 0, 1, 1], [], []>} : vector<64x128xbf16>, vector<128x128xbf16>, vector<64x128xf32> -> vector<64x128xf32>
    %33 = arith.addf %25, %32 : vector<64x128xf32>
    %c0_i32_30 = arith.constant 0 : i32
    %34 = arith.addi %0, %c0_i32_30 : i32
    %c0_31 = arith.constant 0 : index
    %35 = arith.index_cast %34 : i32 to index
    %c1_32 = arith.constant 1 : index
    %c0_33 = arith.constant 0 : index
    %c128_34 = arith.constant 128 : index
    %36 = vector.load %arg2[%c0_31, %35, %c1_32, %c0_33, %c128_34] : memref<1x9x2x9x256xbf16, #tpu.memory_space<vmem>>, vector<1x8x1x8x128xbf16>
    %37 = vector.shape_cast %36 : vector<1x8x1x8x128xbf16> to vector<64x128xbf16>
    %c4 = arith.constant 4 : index
    %c0_35 = arith.constant 0 : index
    %c0_36 = arith.constant 0 : index
    %38 = vector.load %arg3[%c4, %c0_35, %c0_36] : memref<9x128x128xbf16, #tpu.memory_space<vmem>>, vector<1x128x128xbf16>
    %39 = vector.shape_cast %38 : vector<1x128x128xbf16> to vector<128x128xbf16>
    %cst_37 = arith.constant dense<0.000000e+00> : vector<64x128xf32>
    %40 = tpu.matmul %37, %39, %cst_37 {dimension_numbers = #tpu.dot_dimension_numbers<[1], [0], [0], [1], [0, 0, 1, 1], [], []>} : vector<64x128xbf16>, vector<128x128xbf16>, vector<64x128xf32> -> vector<64x128xf32>
    %41 = arith.addf %33, %40 : vector<64x128xf32>
    %c0_i32_38 = arith.constant 0 : i32
    %42 = arith.addi %0, %c0_i32_38 : i32
    %c0_39 = arith.constant 0 : index
    %43 = arith.index_cast %42 : i32 to index
    %c1_40 = arith.constant 1 : index
    %c1_41 = arith.constant 1 : index
    %c0_42 = arith.constant 0 : index
    %44 = vector.load %arg2[%c0_39, %43, %c1_40, %c1_41, %c0_42] : memref<1x9x2x9x256xbf16, #tpu.memory_space<vmem>>, vector<1x8x1x8x128xbf16>
    %45 = vector.shape_cast %44 : vector<1x8x1x8x128xbf16> to vector<64x128xbf16>
    %c5 = arith.constant 5 : index
    %c0_43 = arith.constant 0 : index
    %c0_44 = arith.constant 0 : index
    %46 = vector.load %arg3[%c5, %c0_43, %c0_44] : memref<9x128x128xbf16, #tpu.memory_space<vmem>>, vector<1x128x128xbf16>
    %47 = vector.shape_cast %46 : vector<1x128x128xbf16> to vector<128x128xbf16>
    %cst_45 = arith.constant dense<0.000000e+00> : vector<64x128xf32>
    %48 = tpu.matmul %45, %47, %cst_45 {dimension_numbers = #tpu.dot_dimension_numbers<[1], [0], [0], [1], [0, 0, 1, 1], [], []>} : vector<64x128xbf16>, vector<128x128xbf16>, vector<64x128xf32> -> vector<64x128xf32>
    %49 = arith.addf %41, %48 : vector<64x128xf32>
    %c1_i32 = arith.constant 1 : i32
    %50 = arith.addi %0, %c1_i32 : i32
    %c0_46 = arith.constant 0 : index
    %51 = arith.index_cast %50 : i32 to index
    %c0_47 = arith.constant 0 : index
    %c0_48 = arith.constant 0 : index
    %c0_49 = arith.constant 0 : index
    %52 = vector.load %arg2[%c0_46, %51, %c0_47, %c0_48, %c0_49] : memref<1x9x2x9x256xbf16, #tpu.memory_space<vmem>>, vector<1x8x1x8x128xbf16>
    %53 = vector.shape_cast %52 : vector<1x8x1x8x128xbf16> to vector<64x128xbf16>
    %c6 = arith.constant 6 : index
    %c0_50 = arith.constant 0 : index
    %c0_51 = arith.constant 0 : index
    %54 = vector.load %arg3[%c6, %c0_50, %c0_51] : memref<9x128x128xbf16, #tpu.memory_space<vmem>>, vector<1x128x128xbf16>
    %55 = vector.shape_cast %54 : vector<1x128x128xbf16> to vector<128x128xbf16>
    %cst_52 = arith.constant dense<0.000000e+00> : vector<64x128xf32>
    %56 = tpu.matmul %53, %55, %cst_52 {dimension_numbers = #tpu.dot_dimension_numbers<[1], [0], [0], [1], [0, 0, 1, 1], [], []>} : vector<64x128xbf16>, vector<128x128xbf16>, vector<64x128xf32> -> vector<64x128xf32>
    %57 = arith.addf %49, %56 : vector<64x128xf32>
    %c1_i32_53 = arith.constant 1 : i32
    %58 = arith.addi %0, %c1_i32_53 : i32
    %c0_54 = arith.constant 0 : index
    %59 = arith.index_cast %58 : i32 to index
    %c0_55 = arith.constant 0 : index
    %c0_56 = arith.constant 0 : index
    %c128_57 = arith.constant 128 : index
    %60 = vector.load %arg2[%c0_54, %59, %c0_55, %c0_56, %c128_57] : memref<1x9x2x9x256xbf16, #tpu.memory_space<vmem>>, vector<1x8x1x8x128xbf16>
    %61 = vector.shape_cast %60 : vector<1x8x1x8x128xbf16> to vector<64x128xbf16>
    %c7 = arith.constant 7 : index
    %c0_58 = arith.constant 0 : index
    %c0_59 = arith.constant 0 : index
    %62 = vector.load %arg3[%c7, %c0_58, %c0_59] : memref<9x128x128xbf16, #tpu.memory_space<vmem>>, vector<1x128x128xbf16>
    %63 = vector.shape_cast %62 : vector<1x128x128xbf16> to vector<128x128xbf16>
    %cst_60 = arith.constant dense<0.000000e+00> : vector<64x128xf32>
    %64 = tpu.matmul %61, %63, %cst_60 {dimension_numbers = #tpu.dot_dimension_numbers<[1], [0], [0], [1], [0, 0, 1, 1], [], []>} : vector<64x128xbf16>, vector<128x128xbf16>, vector<64x128xf32> -> vector<64x128xf32>
    %65 = arith.addf %57, %64 : vector<64x128xf32>
    %c1_i32_61 = arith.constant 1 : i32
    %66 = arith.addi %0, %c1_i32_61 : i32
    %c0_62 = arith.constant 0 : index
    %67 = arith.index_cast %66 : i32 to index
    %c0_63 = arith.constant 0 : index
    %c1_64 = arith.constant 1 : index
    %c0_65 = arith.constant 0 : index
    %68 = vector.load %arg2[%c0_62, %67, %c0_63, %c1_64, %c0_65] : memref<1x9x2x9x256xbf16, #tpu.memory_space<vmem>>, vector<1x8x1x8x128xbf16>
    %69 = vector.shape_cast %68 : vector<1x8x1x8x128xbf16> to vector<64x128xbf16>
    %c8 = arith.constant 8 : index
    %c0_66 = arith.constant 0 : index
    %c0_67 = arith.constant 0 : index
    %70 = vector.load %arg3[%c8, %c0_66, %c0_67] : memref<9x128x128xbf16, #tpu.memory_space<vmem>>, vector<1x128x128xbf16>
    %71 = vector.shape_cast %70 : vector<1x128x128xbf16> to vector<128x128xbf16>
    %cst_68 = arith.constant dense<0.000000e+00> : vector<64x128xf32>
    %72 = tpu.matmul %69, %71, %cst_68 {dimension_numbers = #tpu.dot_dimension_numbers<[1], [0], [0], [1], [0, 0, 1, 1], [], []>} : vector<64x128xbf16>, vector<128x128xbf16>, vector<64x128xf32> -> vector<64x128xf32>
    %73 = arith.addf %65, %72 : vector<64x128xf32>
    %74 = vector.shape_cast %73 : vector<64x128xf32> to vector<1x8x8x128xf32>
    %75 = arith.truncf %74 : vector<1x8x8x128xf32> to vector<1x8x8x128xbf16>
    %c0_69 = arith.constant 0 : index
    %c0_70 = arith.constant 0 : index
    %c0_71 = arith.constant 0 : index
    %c0_72 = arith.constant 0 : index
    %76 = vector.load %arg4[%c0_69, %c0_70, %c0_71, %c0_72] : memref<1x8x8x128xbf16, #tpu.memory_space<vmem>>, vector<1x8x8x128xbf16>
    tpu.vector_store %arg4[%c0_69, %c0_70, %c0_71, %c0_72], %75 {strides = array<i32>} : memref<1x8x8x128xbf16, #tpu.memory_space<vmem>>, vector<1x8x8x128xbf16>,
    %cst_73 = arith.constant dense<0.000000e+00> : vector<128xf32>
    %77 = vector.multi_reduction <add>, %73, %cst_73 [0] : vector<64x128xf32> to vector<128xf32>
    %78 = vector.shape_cast %77 : vector<128xf32> to vector<1x1x1x128xf32>
    %c0_74 = arith.constant 0 : index
    %c0_75 = arith.constant 0 : index
    %c0_76 = arith.constant 0 : index
    %c0_77 = arith.constant 0 : index
    %79 = vector.load %arg5[%c0_74, %c0_75, %c0_76, %c0_77] : memref<1x1x1x128xf32, #tpu.memory_space<vmem>>, vector<1x1x1x128xf32>
    tpu.vector_store %arg5[%c0_74, %c0_75, %c0_76, %c0_77], %78 {strides = array<i32>} : memref<1x1x1x128xf32, #tpu.memory_space<vmem>>, vector<1x1x1x128xf32>,
    %80 = arith.mulf %73, %73 : vector<64x128xf32>
    %cst_78 = arith.constant dense<0.000000e+00> : vector<128xf32>
    %81 = vector.multi_reduction <add>, %80, %cst_78 [0] : vector<64x128xf32> to vector<128xf32>
    %82 = vector.shape_cast %81 : vector<128xf32> to vector<1x1x1x128xf32>
    %c0_79 = arith.constant 0 : index
    %c0_80 = arith.constant 0 : index
    %c0_81 = arith.constant 0 : index
    %c0_82 = arith.constant 0 : index
    %83 = vector.load %arg6[%c0_79, %c0_80, %c0_81, %c0_82] : memref<1x1x1x128xf32, #tpu.memory_space<vmem>>, vector<1x1x1x128xf32>
    tpu.vector_store %arg6[%c0_79, %c0_80, %c0_81, %c0_82], %82 {strides = array<i32>} : memref<1x1x1x128xf32, #tpu.memory_space<vmem>>, vector<1x1x1x128xf32>,
    return
  }
  func.func @transform_0(%arg0: i32, %arg1: i32) -> (i32, i32, i32, i32, i32) {
    %c0_i32 = arith.constant 0 : i32
    %c0_i32_0 = arith.constant 0 : i32
    %c0_i32_1 = arith.constant 0 : i32
    %c0_i32_2 = arith.constant 0 : i32
    %c0_i32_3 = arith.constant 0 : i32
    return %arg0, %c0_i32, %c0_i32_0, %c0_i32_1, %c0_i32_2 : i32, i32, i32, i32, i32
  }
  func.func @transform_1(%arg0: i32, %arg1: i32) -> (i32, i32, i32) {
    %c0_i32 = arith.constant 0 : i32
    %c0_i32_0 = arith.constant 0 : i32
    %c0_i32_1 = arith.constant 0 : i32
    %c0_i32_2 = arith.constant 0 : i32
    return %c0_i32, %c0_i32_0, %c0_i32_1 : i32, i32, i32
  }
  func.func @transform_2(%arg0: i32, %arg1: i32) -> (i32, i32, i32, i32) {
    %c0_i32 = arith.constant 0 : i32
    %c0_i32_0 = arith.constant 0 : i32
    %c0_i32_1 = arith.constant 0 : i32
    return %arg0, %arg1, %c0_i32, %c0_i32_0 : i32, i32, i32, i32
  }
  func.func @transform_3(%arg0: i32, %arg1: i32) -> (i32, i32, i32, i32) {
    %c0_i32 = arith.constant 0 : i32
    %c0_i32_0 = arith.constant 0 : i32
    %c0_i32_1 = arith.constant 0 : i32
    return %arg0, %arg1, %c0_i32, %c0_i32_0 : i32, i32, i32, i32
  }
  func.func @transform_4(%arg0: i32, %arg1: i32) -> (i32, i32, i32, i32) {
    %c0_i32 = arith.constant 0 : i32
    %c0_i32_0 = arith.constant 0 : i32
    %c0_i32_1 = arith.constant 0 : i32
    return %arg0, %arg1, %c0_i32, %c0_i32_0 : i32, i32, i32, i32
  }
}

module attributes {stable_mosaic.version = 11 : i64} {
  func.func @_bn_relu_pad_kernel(%arg0: i32, %arg1: memref<1x8x8x128xbf16, #tpu.memory_space<vmem>>, %arg2: memref<1x128xf32, #tpu.memory_space<vmem>>, %arg3: memref<1x128xf32, #tpu.memory_space<vmem>>, %arg4: memref<1x10x10x128xbf16, #tpu.memory_space<vmem>>) attributes {dimension_semantics = [#tpu.dimension_semantics<parallel>], iteration_bounds = array<i64: 2>, scalar_prefetch = 0 : i64, scratch_operands = 0 : i64, tpu.core_type = #tpu.core_type<tc>, window_params = [{transform_indices = @transform_0, window_bounds = array<i64: 1, 8, 8, 128>}, {pipeline_mode = #tpu.pipeline_mode<synchronous>, transform_indices = @transform_1, window_bounds = array<i64: 1, 128>}, {pipeline_mode = #tpu.pipeline_mode<synchronous>, transform_indices = @transform_2, window_bounds = array<i64: 1, 128>}, {transform_indices = @transform_3, window_bounds = array<i64: 1, 10, 10, 128>}]} {
    %cst = arith.constant 0.000000e+00 : bf16
    %0 = vector.broadcast %cst : bf16 to vector<1x10x10x128xbf16>
    %c0 = arith.constant 0 : index
    %c0_0 = arith.constant 0 : index
    %c0_1 = arith.constant 0 : index
    %c0_2 = arith.constant 0 : index
    %1 = vector.load %arg4[%c0, %c0_0, %c0_1, %c0_2] : memref<1x10x10x128xbf16, #tpu.memory_space<vmem>>, vector<1x10x10x128xbf16>
    tpu.vector_store %arg4[%c0, %c0_0, %c0_1, %c0_2], %0 {strides = array<i32>} : memref<1x10x10x128xbf16, #tpu.memory_space<vmem>>, vector<1x10x10x128xbf16>,
    %c0_3 = arith.constant 0 : index
    %c0_4 = arith.constant 0 : index
    %c0_5 = arith.constant 0 : index
    %c0_6 = arith.constant 0 : index
    %2 = vector.load %arg1[%c0_3, %c0_4, %c0_5, %c0_6] : memref<1x8x8x128xbf16, #tpu.memory_space<vmem>>, vector<1x8x8x128xbf16>
    %3 = arith.extf %2 : vector<1x8x8x128xbf16> to vector<1x8x8x128xf32>
    %c0_7 = arith.constant 0 : index
    %c0_8 = arith.constant 0 : index
    %4 = vector.load %arg2[%c0_7, %c0_8] : memref<1x128xf32, #tpu.memory_space<vmem>>, vector<1x128xf32>
    %5 = vector.shape_cast %4 : vector<1x128xf32> to vector<1x1x1x128xf32>
    %6 = vector.broadcast %5 : vector<1x1x1x128xf32> to vector<1x8x8x128xf32>
    %7 = arith.mulf %3, %6 : vector<1x8x8x128xf32>
    %c0_9 = arith.constant 0 : index
    %c0_10 = arith.constant 0 : index
    %8 = vector.load %arg3[%c0_9, %c0_10] : memref<1x128xf32, #tpu.memory_space<vmem>>, vector<1x128xf32>
    %9 = vector.shape_cast %8 : vector<1x128xf32> to vector<1x1x1x128xf32>
    %10 = vector.broadcast %9 : vector<1x1x1x128xf32> to vector<1x8x8x128xf32>
    %11 = arith.addf %7, %10 : vector<1x8x8x128xf32>
    %cst_11 = arith.constant 0.000000e+00 : f32
    %12 = vector.broadcast %cst_11 : f32 to vector<1x8x8x128xf32>
    %13 = arith.maximumf %11, %12 : vector<1x8x8x128xf32>
    %14 = arith.truncf %13 : vector<1x8x8x128xf32> to vector<1x8x8x128xbf16>
    %c0_12 = arith.constant 0 : index
    %c1 = arith.constant 1 : index
    %c1_13 = arith.constant 1 : index
    %c0_14 = arith.constant 0 : index
    %15 = vector.load %arg4[%c0_12, %c1, %c1_13, %c0_14] : memref<1x10x10x128xbf16, #tpu.memory_space<vmem>>, vector<1x8x8x128xbf16>
    tpu.vector_store %arg4[%c0_12, %c1, %c1_13, %c0_14], %14 {strides = array<i32>} : memref<1x10x10x128xbf16, #tpu.memory_space<vmem>>, vector<1x8x8x128xbf16>,
    return
  }
  func.func @transform_0(%arg0: i32) -> (i32, i32, i32, i32) {
    %c0_i32 = arith.constant 0 : i32
    %c0_i32_0 = arith.constant 0 : i32
    %c0_i32_1 = arith.constant 0 : i32
    %c0_i32_2 = arith.constant 0 : i32
    return %arg0, %c0_i32, %c0_i32_0, %c0_i32_1 : i32, i32, i32, i32
  }
  func.func @transform_1(%arg0: i32) -> (i32, i32) {
    %c0_i32 = arith.constant 0 : i32
    %c0_i32_0 = arith.constant 0 : i32
    %c0_i32_1 = arith.constant 0 : i32
    return %c0_i32, %c0_i32_0 : i32, i32
  }
  func.func @transform_2(%arg0: i32) -> (i32, i32) {
    %c0_i32 = arith.constant 0 : i32
    %c0_i32_0 = arith.constant 0 : i32
    %c0_i32_1 = arith.constant 0 : i32
    return %c0_i32, %c0_i32_0 : i32, i32
  }
  func.func @transform_3(%arg0: i32) -> (i32, i32, i32, i32) {
    %c0_i32 = arith.constant 0 : i32
    %c0_i32_0 = arith.constant 0 : i32
    %c0_i32_1 = arith.constant 0 : i32
    %c0_i32_2 = arith.constant 0 : i32
    return %arg0, %c0_i32, %c0_i32_0, %c0_i32_1 : i32, i32, i32, i32
  }
}

module attributes {stable_mosaic.version = 11 : i64} {
  func.func @_conv3x3_bn_stats_kernel(%arg0: i32, %arg1: i32, %arg2: memref<1x10x10x128xbf16, #tpu.memory_space<vmem>>, %arg3: memref<9x128x128xbf16, #tpu.memory_space<vmem>>, %arg4: memref<1x8x8x128xbf16, #tpu.memory_space<vmem>>, %arg5: memref<1x1x1x128xf32, #tpu.memory_space<vmem>>, %arg6: memref<1x1x1x128xf32, #tpu.memory_space<vmem>>) attributes {dimension_semantics = [#tpu.dimension_semantics<parallel>, #tpu.dimension_semantics<parallel>], iteration_bounds = array<i64: 2, 1>, scalar_prefetch = 0 : i64, scratch_operands = 0 : i64, tpu.core_type = #tpu.core_type<tc>, window_params = [{transform_indices = @transform_0, window_bounds = array<i64: 1, 10, 10, 128>}, {pipeline_mode = #tpu.pipeline_mode<synchronous>, transform_indices = @transform_1, window_bounds = array<i64: 9, 128, 128>}, {transform_indices = @transform_2, window_bounds = array<i64: 1, 8, 8, 128>}, {transform_indices = @transform_3, window_bounds = array<i64: 1, 1, 1, 128>}, {transform_indices = @transform_4, window_bounds = array<i64: 1, 1, 1, 128>}]} {
    %c8_i32 = arith.constant 8 : i32
    %0 = arith.muli %arg1, %c8_i32 : i32
    %cst = arith.constant 0.000000e+00 : f32
    %1 = vector.broadcast %cst : f32 to vector<64x128xf32>
    %c0_i32 = arith.constant 0 : i32
    %2 = arith.addi %0, %c0_i32 : i32
    %c0 = arith.constant 0 : index
    %3 = arith.index_cast %2 : i32 to index
    %c0_0 = arith.constant 0 : index
    %c0_1 = arith.constant 0 : index
    %4 = vector.load %arg2[%c0, %3, %c0_0, %c0_1] : memref<1x10x10x128xbf16, #tpu.memory_space<vmem>>, vector<1x8x8x128xbf16>
    %5 = vector.shape_cast %4 : vector<1x8x8x128xbf16> to vector<64x128xbf16>
    %c0_2 = arith.constant 0 : index
    %c0_3 = arith.constant 0 : index
    %c0_4 = arith.constant 0 : index
    %6 = vector.load %arg3[%c0_2, %c0_3, %c0_4] : memref<9x128x128xbf16, #tpu.memory_space<vmem>>, vector<1x128x128xbf16>
    %7 = vector.shape_cast %6 : vector<1x128x128xbf16> to vector<128x128xbf16>
    %cst_5 = arith.constant dense<0.000000e+00> : vector<64x128xf32>
    %8 = tpu.matmul %5, %7, %cst_5 {dimension_numbers = #tpu.dot_dimension_numbers<[1], [0], [0], [1], [0, 0, 1, 1], [], []>} : vector<64x128xbf16>, vector<128x128xbf16>, vector<64x128xf32> -> vector<64x128xf32>
    %9 = arith.addf %1, %8 : vector<64x128xf32>
    %c0_i32_6 = arith.constant 0 : i32
    %10 = arith.addi %0, %c0_i32_6 : i32
    %c0_7 = arith.constant 0 : index
    %11 = arith.index_cast %10 : i32 to index
    %c1 = arith.constant 1 : index
    %c0_8 = arith.constant 0 : index
    %12 = vector.load %arg2[%c0_7, %11, %c1, %c0_8] : memref<1x10x10x128xbf16, #tpu.memory_space<vmem>>, vector<1x8x8x128xbf16>
    %13 = vector.shape_cast %12 : vector<1x8x8x128xbf16> to vector<64x128xbf16>
    %c1_9 = arith.constant 1 : index
    %c0_10 = arith.constant 0 : index
    %c0_11 = arith.constant 0 : index
    %14 = vector.load %arg3[%c1_9, %c0_10, %c0_11] : memref<9x128x128xbf16, #tpu.memory_space<vmem>>, vector<1x128x128xbf16>
    %15 = vector.shape_cast %14 : vector<1x128x128xbf16> to vector<128x128xbf16>
    %cst_12 = arith.constant dense<0.000000e+00> : vector<64x128xf32>
    %16 = tpu.matmul %13, %15, %cst_12 {dimension_numbers = #tpu.dot_dimension_numbers<[1], [0], [0], [1], [0, 0, 1, 1], [], []>} : vector<64x128xbf16>, vector<128x128xbf16>, vector<64x128xf32> -> vector<64x128xf32>
    %17 = arith.addf %9, %16 : vector<64x128xf32>
    %c0_i32_13 = arith.constant 0 : i32
    %18 = arith.addi %0, %c0_i32_13 : i32
    %c0_14 = arith.constant 0 : index
    %19 = arith.index_cast %18 : i32 to index
    %c2 = arith.constant 2 : index
    %c0_15 = arith.constant 0 : index
    %20 = vector.load %arg2[%c0_14, %19, %c2, %c0_15] : memref<1x10x10x128xbf16, #tpu.memory_space<vmem>>, vector<1x8x8x128xbf16>
    %21 = vector.shape_cast %20 : vector<1x8x8x128xbf16> to vector<64x128xbf16>
    %c2_16 = arith.constant 2 : index
    %c0_17 = arith.constant 0 : index
    %c0_18 = arith.constant 0 : index
    %22 = vector.load %arg3[%c2_16, %c0_17, %c0_18] : memref<9x128x128xbf16, #tpu.memory_space<vmem>>, vector<1x128x128xbf16>
    %23 = vector.shape_cast %22 : vector<1x128x128xbf16> to vector<128x128xbf16>
    %cst_19 = arith.constant dense<0.000000e+00> : vector<64x128xf32>
    %24 = tpu.matmul %21, %23, %cst_19 {dimension_numbers = #tpu.dot_dimension_numbers<[1], [0], [0], [1], [0, 0, 1, 1], [], []>} : vector<64x128xbf16>, vector<128x128xbf16>, vector<64x128xf32> -> vector<64x128xf32>
    %25 = arith.addf %17, %24 : vector<64x128xf32>
    %c1_i32 = arith.constant 1 : i32
    %26 = arith.addi %0, %c1_i32 : i32
    %c0_20 = arith.constant 0 : index
    %27 = arith.index_cast %26 : i32 to index
    %c0_21 = arith.constant 0 : index
    %c0_22 = arith.constant 0 : index
    %28 = vector.load %arg2[%c0_20, %27, %c0_21, %c0_22] : memref<1x10x10x128xbf16, #tpu.memory_space<vmem>>, vector<1x8x8x128xbf16>
    %29 = vector.shape_cast %28 : vector<1x8x8x128xbf16> to vector<64x128xbf16>
    %c3 = arith.constant 3 : index
    %c0_23 = arith.constant 0 : index
    %c0_24 = arith.constant 0 : index
    %30 = vector.load %arg3[%c3, %c0_23, %c0_24] : memref<9x128x128xbf16, #tpu.memory_space<vmem>>, vector<1x128x128xbf16>
    %31 = vector.shape_cast %30 : vector<1x128x128xbf16> to vector<128x128xbf16>
    %cst_25 = arith.constant dense<0.000000e+00> : vector<64x128xf32>
    %32 = tpu.matmul %29, %31, %cst_25 {dimension_numbers = #tpu.dot_dimension_numbers<[1], [0], [0], [1], [0, 0, 1, 1], [], []>} : vector<64x128xbf16>, vector<128x128xbf16>, vector<64x128xf32> -> vector<64x128xf32>
    %33 = arith.addf %25, %32 : vector<64x128xf32>
    %c1_i32_26 = arith.constant 1 : i32
    %34 = arith.addi %0, %c1_i32_26 : i32
    %c0_27 = arith.constant 0 : index
    %35 = arith.index_cast %34 : i32 to index
    %c1_28 = arith.constant 1 : index
    %c0_29 = arith.constant 0 : index
    %36 = vector.load %arg2[%c0_27, %35, %c1_28, %c0_29] : memref<1x10x10x128xbf16, #tpu.memory_space<vmem>>, vector<1x8x8x128xbf16>
    %37 = vector.shape_cast %36 : vector<1x8x8x128xbf16> to vector<64x128xbf16>
    %c4 = arith.constant 4 : index
    %c0_30 = arith.constant 0 : index
    %c0_31 = arith.constant 0 : index
    %38 = vector.load %arg3[%c4, %c0_30, %c0_31] : memref<9x128x128xbf16, #tpu.memory_space<vmem>>, vector<1x128x128xbf16>
    %39 = vector.shape_cast %38 : vector<1x128x128xbf16> to vector<128x128xbf16>
    %cst_32 = arith.constant dense<0.000000e+00> : vector<64x128xf32>
    %40 = tpu.matmul %37, %39, %cst_32 {dimension_numbers = #tpu.dot_dimension_numbers<[1], [0], [0], [1], [0, 0, 1, 1], [], []>} : vector<64x128xbf16>, vector<128x128xbf16>, vector<64x128xf32> -> vector<64x128xf32>
    %41 = arith.addf %33, %40 : vector<64x128xf32>
    %c1_i32_33 = arith.constant 1 : i32
    %42 = arith.addi %0, %c1_i32_33 : i32
    %c0_34 = arith.constant 0 : index
    %43 = arith.index_cast %42 : i32 to index
    %c2_35 = arith.constant 2 : index
    %c0_36 = arith.constant 0 : index
    %44 = vector.load %arg2[%c0_34, %43, %c2_35, %c0_36] : memref<1x10x10x128xbf16, #tpu.memory_space<vmem>>, vector<1x8x8x128xbf16>
    %45 = vector.shape_cast %44 : vector<1x8x8x128xbf16> to vector<64x128xbf16>
    %c5 = arith.constant 5 : index
    %c0_37 = arith.constant 0 : index
    %c0_38 = arith.constant 0 : index
    %46 = vector.load %arg3[%c5, %c0_37, %c0_38] : memref<9x128x128xbf16, #tpu.memory_space<vmem>>, vector<1x128x128xbf16>
    %47 = vector.shape_cast %46 : vector<1x128x128xbf16> to vector<128x128xbf16>
    %cst_39 = arith.constant dense<0.000000e+00> : vector<64x128xf32>
    %48 = tpu.matmul %45, %47, %cst_39 {dimension_numbers = #tpu.dot_dimension_numbers<[1], [0], [0], [1], [0, 0, 1, 1], [], []>} : vector<64x128xbf16>, vector<128x128xbf16>, vector<64x128xf32> -> vector<64x128xf32>
    %49 = arith.addf %41, %48 : vector<64x128xf32>
    %c2_i32 = arith.constant 2 : i32
    %50 = arith.addi %0, %c2_i32 : i32
    %c0_40 = arith.constant 0 : index
    %51 = arith.index_cast %50 : i32 to index
    %c0_41 = arith.constant 0 : index
    %c0_42 = arith.constant 0 : index
    %52 = vector.load %arg2[%c0_40, %51, %c0_41, %c0_42] : memref<1x10x10x128xbf16, #tpu.memory_space<vmem>>, vector<1x8x8x128xbf16>
    %53 = vector.shape_cast %52 : vector<1x8x8x128xbf16> to vector<64x128xbf16>
    %c6 = arith.constant 6 : index
    %c0_43 = arith.constant 0 : index
    %c0_44 = arith.constant 0 : index
    %54 = vector.load %arg3[%c6, %c0_43, %c0_44] : memref<9x128x128xbf16, #tpu.memory_space<vmem>>, vector<1x128x128xbf16>
    %55 = vector.shape_cast %54 : vector<1x128x128xbf16> to vector<128x128xbf16>
    %cst_45 = arith.constant dense<0.000000e+00> : vector<64x128xf32>
    %56 = tpu.matmul %53, %55, %cst_45 {dimension_numbers = #tpu.dot_dimension_numbers<[1], [0], [0], [1], [0, 0, 1, 1], [], []>} : vector<64x128xbf16>, vector<128x128xbf16>, vector<64x128xf32> -> vector<64x128xf32>
    %57 = arith.addf %49, %56 : vector<64x128xf32>
    %c2_i32_46 = arith.constant 2 : i32
    %58 = arith.addi %0, %c2_i32_46 : i32
    %c0_47 = arith.constant 0 : index
    %59 = arith.index_cast %58 : i32 to index
    %c1_48 = arith.constant 1 : index
    %c0_49 = arith.constant 0 : index
    %60 = vector.load %arg2[%c0_47, %59, %c1_48, %c0_49] : memref<1x10x10x128xbf16, #tpu.memory_space<vmem>>, vector<1x8x8x128xbf16>
    %61 = vector.shape_cast %60 : vector<1x8x8x128xbf16> to vector<64x128xbf16>
    %c7 = arith.constant 7 : index
    %c0_50 = arith.constant 0 : index
    %c0_51 = arith.constant 0 : index
    %62 = vector.load %arg3[%c7, %c0_50, %c0_51] : memref<9x128x128xbf16, #tpu.memory_space<vmem>>, vector<1x128x128xbf16>
    %63 = vector.shape_cast %62 : vector<1x128x128xbf16> to vector<128x128xbf16>
    %cst_52 = arith.constant dense<0.000000e+00> : vector<64x128xf32>
    %64 = tpu.matmul %61, %63, %cst_52 {dimension_numbers = #tpu.dot_dimension_numbers<[1], [0], [0], [1], [0, 0, 1, 1], [], []>} : vector<64x128xbf16>, vector<128x128xbf16>, vector<64x128xf32> -> vector<64x128xf32>
    %65 = arith.addf %57, %64 : vector<64x128xf32>
    %c2_i32_53 = arith.constant 2 : i32
    %66 = arith.addi %0, %c2_i32_53 : i32
    %c0_54 = arith.constant 0 : index
    %67 = arith.index_cast %66 : i32 to index
    %c2_55 = arith.constant 2 : index
    %c0_56 = arith.constant 0 : index
    %68 = vector.load %arg2[%c0_54, %67, %c2_55, %c0_56] : memref<1x10x10x128xbf16, #tpu.memory_space<vmem>>, vector<1x8x8x128xbf16>
    %69 = vector.shape_cast %68 : vector<1x8x8x128xbf16> to vector<64x128xbf16>
    %c8 = arith.constant 8 : index
    %c0_57 = arith.constant 0 : index
    %c0_58 = arith.constant 0 : index
    %70 = vector.load %arg3[%c8, %c0_57, %c0_58] : memref<9x128x128xbf16, #tpu.memory_space<vmem>>, vector<1x128x128xbf16>
    %71 = vector.shape_cast %70 : vector<1x128x128xbf16> to vector<128x128xbf16>
    %cst_59 = arith.constant dense<0.000000e+00> : vector<64x128xf32>
    %72 = tpu.matmul %69, %71, %cst_59 {dimension_numbers = #tpu.dot_dimension_numbers<[1], [0], [0], [1], [0, 0, 1, 1], [], []>} : vector<64x128xbf16>, vector<128x128xbf16>, vector<64x128xf32> -> vector<64x128xf32>
    %73 = arith.addf %65, %72 : vector<64x128xf32>
    %74 = vector.shape_cast %73 : vector<64x128xf32> to vector<1x8x8x128xf32>
    %75 = arith.truncf %74 : vector<1x8x8x128xf32> to vector<1x8x8x128xbf16>
    %c0_60 = arith.constant 0 : index
    %c0_61 = arith.constant 0 : index
    %c0_62 = arith.constant 0 : index
    %c0_63 = arith.constant 0 : index
    %76 = vector.load %arg4[%c0_60, %c0_61, %c0_62, %c0_63] : memref<1x8x8x128xbf16, #tpu.memory_space<vmem>>, vector<1x8x8x128xbf16>
    tpu.vector_store %arg4[%c0_60, %c0_61, %c0_62, %c0_63], %75 {strides = array<i32>} : memref<1x8x8x128xbf16, #tpu.memory_space<vmem>>, vector<1x8x8x128xbf16>,
    %cst_64 = arith.constant dense<0.000000e+00> : vector<128xf32>
    %77 = vector.multi_reduction <add>, %73, %cst_64 [0] : vector<64x128xf32> to vector<128xf32>
    %78 = vector.shape_cast %77 : vector<128xf32> to vector<1x1x1x128xf32>
    %c0_65 = arith.constant 0 : index
    %c0_66 = arith.constant 0 : index
    %c0_67 = arith.constant 0 : index
    %c0_68 = arith.constant 0 : index
    %79 = vector.load %arg5[%c0_65, %c0_66, %c0_67, %c0_68] : memref<1x1x1x128xf32, #tpu.memory_space<vmem>>, vector<1x1x1x128xf32>
    tpu.vector_store %arg5[%c0_65, %c0_66, %c0_67, %c0_68], %78 {strides = array<i32>} : memref<1x1x1x128xf32, #tpu.memory_space<vmem>>, vector<1x1x1x128xf32>,
    %80 = arith.mulf %73, %73 : vector<64x128xf32>
    %cst_69 = arith.constant dense<0.000000e+00> : vector<128xf32>
    %81 = vector.multi_reduction <add>, %80, %cst_69 [0] : vector<64x128xf32> to vector<128xf32>
    %82 = vector.shape_cast %81 : vector<128xf32> to vector<1x1x1x128xf32>
    %c0_70 = arith.constant 0 : index
    %c0_71 = arith.constant 0 : index
    %c0_72 = arith.constant 0 : index
    %c0_73 = arith.constant 0 : index
    %83 = vector.load %arg6[%c0_70, %c0_71, %c0_72, %c0_73] : memref<1x1x1x128xf32, #tpu.memory_space<vmem>>, vector<1x1x1x128xf32>
    tpu.vector_store %arg6[%c0_70, %c0_71, %c0_72, %c0_73], %82 {strides = array<i32>} : memref<1x1x1x128xf32, #tpu.memory_space<vmem>>, vector<1x1x1x128xf32>,
    return
  }
  func.func @transform_0(%arg0: i32, %arg1: i32) -> (i32, i32, i32, i32) {
    %c0_i32 = arith.constant 0 : i32
    %c0_i32_0 = arith.constant 0 : i32
    %c0_i32_1 = arith.constant 0 : i32
    %c0_i32_2 = arith.constant 0 : i32
    return %arg0, %c0_i32, %c0_i32_0, %c0_i32_1 : i32, i32, i32, i32
  }
  func.func @transform_1(%arg0: i32, %arg1: i32) -> (i32, i32, i32) {
    %c0_i32 = arith.constant 0 : i32
    %c0_i32_0 = arith.constant 0 : i32
    %c0_i32_1 = arith.constant 0 : i32
    %c0_i32_2 = arith.constant 0 : i32
    return %c0_i32, %c0_i32_0, %c0_i32_1 : i32, i32, i32
  }
  func.func @transform_2(%arg0: i32, %arg1: i32) -> (i32, i32, i32, i32) {
    %c0_i32 = arith.constant 0 : i32
    %c0_i32_0 = arith.constant 0 : i32
    %c0_i32_1 = arith.constant 0 : i32
    return %arg0, %arg1, %c0_i32, %c0_i32_0 : i32, i32, i32, i32
  }
  func.func @transform_3(%arg0: i32, %arg1: i32) -> (i32, i32, i32, i32) {
    %c0_i32 = arith.constant 0 : i32
    %c0_i32_0 = arith.constant 0 : i32
    %c0_i32_1 = arith.constant 0 : i32
    return %arg0, %arg1, %c0_i32, %c0_i32_0 : i32, i32, i32, i32
  }
  func.func @transform_4(%arg0: i32, %arg1: i32) -> (i32, i32, i32, i32) {
    %c0_i32 = arith.constant 0 : i32
    %c0_i32_0 = arith.constant 0 : i32
    %c0_i32_1 = arith.constant 0 : i32
    return %arg0, %arg1, %c0_i32, %c0_i32_0 : i32, i32, i32, i32
  }
}

module attributes {stable_mosaic.version = 11 : i64} {
  func.func @_bn_relu_apply_kernel(%arg0: i32, %arg1: memref<128x128xbf16, #tpu.memory_space<vmem>>, %arg2: memref<1x128xf32, #tpu.memory_space<vmem>>, %arg3: memref<1x128xf32, #tpu.memory_space<vmem>>, %arg4: memref<128x128xf32, #tpu.memory_space<vmem>>) attributes {dimension_semantics = [#tpu.dimension_semantics<parallel>], iteration_bounds = array<i64: 1>, scalar_prefetch = 0 : i64, scratch_operands = 0 : i64, tpu.core_type = #tpu.core_type<tc>, window_params = [{transform_indices = @transform_0, window_bounds = array<i64: 128, 128>}, {pipeline_mode = #tpu.pipeline_mode<synchronous>, transform_indices = @transform_1, window_bounds = array<i64: 1, 128>}, {pipeline_mode = #tpu.pipeline_mode<synchronous>, transform_indices = @transform_2, window_bounds = array<i64: 1, 128>}, {transform_indices = @transform_3, window_bounds = array<i64: 128, 128>}]} {
    %c0 = arith.constant 0 : index
    %c0_0 = arith.constant 0 : index
    %0 = vector.load %arg1[%c0, %c0_0] : memref<128x128xbf16, #tpu.memory_space<vmem>>, vector<128x128xbf16>
    %1 = arith.extf %0 : vector<128x128xbf16> to vector<128x128xf32>
    %c0_1 = arith.constant 0 : index
    %c0_2 = arith.constant 0 : index
    %2 = vector.load %arg2[%c0_1, %c0_2] : memref<1x128xf32, #tpu.memory_space<vmem>>, vector<1x128xf32>
    %3 = vector.broadcast %2 : vector<1x128xf32> to vector<128x128xf32>
    %4 = arith.mulf %1, %3 : vector<128x128xf32>
    %c0_3 = arith.constant 0 : index
    %c0_4 = arith.constant 0 : index
    %5 = vector.load %arg3[%c0_3, %c0_4] : memref<1x128xf32, #tpu.memory_space<vmem>>, vector<1x128xf32>
    %6 = vector.broadcast %5 : vector<1x128xf32> to vector<128x128xf32>
    %7 = arith.addf %4, %6 : vector<128x128xf32>
    %cst = arith.constant 0.000000e+00 : f32
    %8 = vector.broadcast %cst : f32 to vector<128x128xf32>
    %9 = arith.maximumf %7, %8 : vector<128x128xf32>
    %c0_5 = arith.constant 0 : index
    %c0_6 = arith.constant 0 : index
    %10 = vector.load %arg4[%c0_5, %c0_6] : memref<128x128xf32, #tpu.memory_space<vmem>>, vector<128x128xf32>
    tpu.vector_store %arg4[%c0_5, %c0_6], %9 {strides = array<i32>} : memref<128x128xf32, #tpu.memory_space<vmem>>, vector<128x128xf32>,
    return
  }
  func.func @transform_0(%arg0: i32) -> (i32, i32) {
    %c0_i32 = arith.constant 0 : i32
    %c0_i32_0 = arith.constant 0 : i32
    return %arg0, %c0_i32 : i32, i32
  }
  func.func @transform_1(%arg0: i32) -> (i32, i32) {
    %c0_i32 = arith.constant 0 : i32
    %c0_i32_0 = arith.constant 0 : i32
    %c0_i32_1 = arith.constant 0 : i32
    return %c0_i32, %c0_i32_0 : i32, i32
  }
  func.func @transform_2(%arg0: i32) -> (i32, i32) {
    %c0_i32 = arith.constant 0 : i32
    %c0_i32_0 = arith.constant 0 : i32
    %c0_i32_1 = arith.constant 0 : i32
    return %c0_i32, %c0_i32_0 : i32, i32
  }
  func.func @transform_3(%arg0: i32) -> (i32, i32) {
    %c0_i32 = arith.constant 0 : i32
    %c0_i32_0 = arith.constant 0 : i32
    return %arg0, %c0_i32 : i32, i32
  }
}

</mosaic_0001>

<bundles_post_ra>
// kernel: down_block.5
= control target key start
LH: loop header
LB: loop body
LE: loop exit
PB: predicated region body
PF: predicated region fallthrough
CT: control target
= control target key end

     0   :  { %s587_s12 = smov 0   ;;  %s714_s0 = inlined_call_operand.vmem [shape: bf16[2,8,8,128], index: 0, kind: input, shape index: {}]   ;;  %s715_s1 = inlined_call_operand.vmem [shape: f32[1,128], index: 1, kind: input, shape index: {}]   ;;  %s716_s2 = inlined_call_operand.vmem [shape: f32[1,128], index: 2, kind: input, shape index: {}]   ;;  %s717_s3 = inlined_call_operand.vmem [shape: bf16[2,10,10,128], index: 3, kind: output, shape index: {}]  }
   0x1 LB: > { %s468_s13 = sadd.s32 4294967295, %s564_s12   ;;  %p472_p0 = scmp.ge.s32.totalorder %s564_s12, 1  ;;  %s564_s12 = sphi %s587_s12, %s13_s12  }
   0x2   : > { %p137_p1 = scmp.lt.s32.totalorder %s564_s12, 3 }
   0x4   : > { %p138_p2 = pnand %p472_p0, %p137_p1 }
   0x5   : > { %p161_p3 = scmp.lt.s32.totalorder (!%p138_p2), %s468_s13, 1 }
   0x6   : > { %141 = sbr.rel (%p138_p2) target bundleno = 45 (0x2d), region = 32 }
   0xb   : > { %s723_s13 = smov (!%p161_p3, %s468_s13), 1  ;;  %v476_v0 = vld [vmem:[%s715_s1] ss:$0 sm:$0xff]  ;;  %v566_v4 = vmov 0   ;;  %vm359_vm0 = vcmask 1043456   ;;  %vm365_vm2 = vcmask 1040384  }
   0xc   : > { %s548_s14 = smul.u32 80, %s723_s13  ;;  %s520_s15 = sshll.u32 %s723_s13, 5  ;;  %v477_v10 = vld [vmem:[%s716_s2] ss:$0 sm:$0xff]  ;;  %vm360_vm1 = vsmask.f32 7938 }
   0xd   : > { %s598_s18 = scalar_lea.vmem %s714_s0, %s520_s15  ;;  %vm366_vm3 = vsmask.f32 256  ;;  %vm640_vm4 = vmand %vm359_vm0, %vm360_vm1 }
   0xe   : > { %s606_s23 = scalar_lea.vmem %s717_s3, %s548_s14  ;;  %v530_v1 = vld [vmem:[%s598_s18] sm:$0xff]   ;;  %v545_v2 = vld [vmem:[%s598_s18 + $0x8] sm:$0xff]   ;;  %v546_v3 = vld [vmem:[%s598_s18 + $0x10] sm:$0xff]  }
   0xf   : > { %174 = vst [vmem:[%s606_s23 + $0x8] sm:$0xf] %v566_v4  ;;  %172 = vst [vmem:[%s606_s23] sm:$0xf] %v566_v4  ;;  %v531_v5 = vunpack.c.l.bf16 %v530_v1  ;;  %v532_v6 = vunpack.c.h.bf16 %v530_v1  ;;  %v535_v7 = vunpack.c.l.bf16 %v545_v2  ;;  %v536_v8 = vunpack.c.h.bf16 %v545_v2  ;;  %v547_v9 = vld [vmem:[%s598_s18 + $0x18] sm:$0xff]  }
  0x10   : > { %173 = vst [vmem:[%s606_s23 + $0x4] sm:$0x1] %v566_v4  ;;  %175 = vst [vmem:[%s606_s23 + $0xc] sm:$0x1] %v566_v4  ;;  %v539_v11 = vunpack.c.l.bf16 %v546_v3  ;;  %v540_v12 = vunpack.c.h.bf16 %v546_v3  ;;  %v543_v13 = vunpack.c.l.bf16 %v547_v9  ;;  %v544_v14 = vunpack.c.h.bf16 %v547_v9 }
  0x11   : > { %176 = vst [vmem:[%s606_s23 + $0x10] sm:$0xf] %v566_v4  ;;  %177 = vst [vmem:[%s606_s23 + $0x14] sm:$0x1] %v566_v4  ;;  %v215_v15 = vmul.f32 %v531_v5, %v476_v0  ;;  %v216_v16 = vmul.f32 %v532_v6, %v476_v0  ;;  %v217_v17 = vmul.f32 %v535_v7, %v476_v0 }
  0x12   : > { %178 = vst [vmem:[%s606_s23 + $0x18] sm:$0xf] %v566_v4  ;;  %179 = vst [vmem:[%s606_s23 + $0x1c] sm:$0x1] %v566_v4  ;;  %v218_v18 = vmul.f32 %v536_v8, %v476_v0  ;;  %v219_v19 = vmul.f32 %v539_v11, %v476_v0  ;;  %v220_v20 = vmul.f32 %v540_v12, %v476_v0 }
  0x13   : > { %180 = vst [vmem:[%s606_s23 + $0x20] sm:$0xf] %v566_v4  ;;  %181 = vst [vmem:[%s606_s23 + $0x24] sm:$0x1] %v566_v4  ;;  %v230_v21 = vadd.f32 %v477_v10, %v215_v15  ;;  %v231_v22 = vadd.f32 %v477_v10, %v216_v16  ;;  %v232_v23 = vadd.f32 %v477_v10, %v217_v17 }
  0x14   : > { %182 = vst [vmem:[%s606_s23 + $0x28] sm:$0xf] %v566_v4  ;;  %183 = vst [vmem:[%s606_s23 + $0x2c] sm:$0x1] %v566_v4  ;;  %v233_v24 = vadd.f32 %v477_v10, %v218_v18  ;;  %v234_v25 = vadd.f32 %v477_v10, %v219_v19  ;;  %v235_v26 = vadd.f32 %v477_v10, %v220_v20 }
  0x15   : > { %184 = vst [vmem:[%s606_s23 + $0x30] sm:$0xf] %v566_v4  ;;  %185 = vst [vmem:[%s606_s23 + $0x34] sm:$0x1] %v566_v4  ;;  %v221_v27 = vmul.f32 %v543_v13, %v476_v0  ;;  %v222_v28 = vmul.f32 %v544_v14, %v476_v0  ;;  %v238_v29 = vmax.f32 %v230_v21, 0.0  ;;  %v239_v30 = vmax.f32 %v231_v22, 0.0 }
  0x16   : > { %186 = vst [vmem:[%s606_s23 + $0x38] sm:$0xf] %v566_v4  ;;  %187 = vst [vmem:[%s606_s23 + $0x3c] sm:$0x1] %v566_v4  ;;  %v240_v31 = vmax.f32 %v232_v23, 0.0  ;;  %v241_v32 = vmax.f32 %v233_v24, 0.0 }
  0x17   : > { %188 = vst [vmem:[%s606_s23 + $0x40] sm:$0xf] %v566_v4  ;;  %189 = vst [vmem:[%s606_s23 + $0x44] sm:$0x1] %v566_v4  ;;  %v521_v33 = vpack.c.bf16 %v238_v29, %v238_v29  ;;  %v522_v34 = vpack.c.bf16 %v239_v30, %v239_v30  ;;  %v242_v37 = vmax.f32 %v234_v25, 0.0  ;;  %v243_v38 = vmax.f32 %v235_v26, 0.0 }
  0x18   : > { %190 = vst [vmem:[%s606_s23 + $0x48] sm:$0xf] %v566_v4  ;;  %191 = vst [vmem:[%s606_s23 + $0x4c] sm:$0x1] %v566_v4  ;;  %v523_v35 = vpack.c.bf16 %v240_v31, %v240_v31  ;;  %v524_v36 = vpack.c.bf16 %v241_v32, %v241_v32  ;;  %v236_v39 = vadd.f32 %v477_v10, %v221_v27  ;;  %v486_v45 = vld [vmem:[%s606_s23 + $0x8] sm:$0xf] }
  0x19   : > { %v237_v40 = vadd.f32 %v477_v10, %v222_v28  ;;  %v279_v41 = vshrl.u32 %v521_v33, 16  ;;  %v282_v42 = vshll.u32 %v521_v33, 16  ;;  %v287_v43 = vshrl.u32 %v522_v34, 16  ;;  %v488_v46 = vld [vmem:[%s606_s23 + $0xc] sm:$0x1]  ;;  %vm648_vm5 = vmand %vm365_vm2, %vm366_vm3 }
  0x1a   : > { %v290_v44 = vshll.u32 %v522_v34, 16  ;;  %v490_v47 = vld [vmem:[%s606_s23 + $0x10] sm:$0xf]  ;;  %v295_v48 = vshrl.u32 %v523_v35, 16  ;;  %v298_v49 = vshll.u32 %v523_v35, 16  ;;  %v303_v50 = vshrl.u32 %v524_v36, 16 }
  0x1b   : > { %v306_v51 = vshll.u32 %v524_v36, 16  ;;  %v281_v52 = vrot.slane %v279_v41, 7  ;;  %v289_v54 = vrot.slane %v287_v43, 7  ;;  %v492_v55 = vld [vmem:[%s606_s23 + $0x14] sm:$0x1]  ;;  %v525_v57 = vpack.c.bf16 %v242_v37, %v242_v37 }
  0x1c   : > { %v494_v56 = vld [vmem:[%s606_s23 + $0x18] sm:$0xf]  ;;  %v526_v58 = vpack.c.bf16 %v243_v38, %v243_v38  ;;  %v297_v60 = vrot.slane %v295_v48, 7  ;;  %v496_v61 = vld [vmem:[%s606_s23 + $0x1c] sm:$0x1]  ;;  %v305_v62 = vrot.slane %v303_v50, 7 }
  0x1d   : > { %v244_v63 = vmax.f32 %v236_v39, 0.0  ;;  %v245_v0 = vmax.f32 %v237_v40, 0.0  ;;  %v284_v1 = vor.u32 %v282_v42, %v281_v52  ;;  %v285_v2 = vrot.slane %v281_v52, 4  ;;  %v498_v5 = vld [vmem:[%s606_s23 + $0x20] sm:$0xf] }
  0x1e   : > { %v292_v3 = vor.u32 %v290_v44, %v289_v54  ;;  %v293_v4 = vrot.slane %v289_v54, 4  ;;  %v500_v6 = vld [vmem:[%s606_s23 + $0x24] sm:$0x1]  ;;  %v300_v7 = vor.u32 %v298_v49, %v297_v60  ;;  %v301_v8 = vrot.slane %v297_v60, 4  ;;  %v502_v23 = vld [vmem:[%s606_s23 + $0x28] sm:$0xf] }
  0x1f   : > { %v308_v9 = vor.u32 %v306_v51, %v305_v62  ;;  %v309_v10 = vrot.slane %v305_v62, 4  ;;  %v363_v11 = vsel %vm640_vm4, %v284_v1, %v486_v45  ;;  %v369_v12 = vsel %vm648_vm5, %v285_v2, %v488_v46  ;;  %v504_v27 = vld [vmem:[%s606_s23 + $0x2c] sm:$0x1]  ;;  %v506_v29 = vld [vmem:[%s606_s23 + $0x30] sm:$0xf] }
  0x20   : > { %v372_v13 = vsel %vm640_vm4, %v292_v3, %v490_v47  ;;  %v375_v14 = vsel %vm648_vm5, %v293_v4, %v492_v55  ;;  %487 = vst [vmem:[%s606_s23 + $0x8] sm:$0xf] %v363_v11  ;;  %489 = vst [vmem:[%s606_s23 + $0xc] sm:$0x1] %v369_v12  ;;  %v378_v15 = vsel %vm640_vm4, %v300_v7, %v494_v56  ;;  %v311_v19 = vshrl.u32 %v525_v57, 16 }
  0x21   : > { %491 = vst [vmem:[%s606_s23 + $0x10] sm:$0xf] %v372_v13  ;;  %493 = vst [vmem:[%s606_s23 + $0x14] sm:$0x1] %v375_v14  ;;  %v381_v16 = vsel %vm648_vm5, %v301_v8, %v496_v61  ;;  %v384_v17 = vsel %vm640_vm4, %v308_v9, %v498_v5  ;;  %v387_v18 = vsel %vm648_vm5, %v309_v10, %v500_v6  ;;  %v314_v20 = vshll.u32 %v525_v57, 16 }
  0x22   : > { %495 = vst [vmem:[%s606_s23 + $0x18] sm:$0xf] %v378_v15  ;;  %497 = vst [vmem:[%s606_s23 + $0x1c] sm:$0x1] %v381_v16  ;;  %v319_v21 = vshrl.u32 %v526_v58, 16  ;;  %v322_v22 = vshll.u32 %v526_v58, 16  ;;  %v527_v24 = vpack.c.bf16 %v244_v63, %v244_v63  ;;  %v528_v25 = vpack.c.bf16 %v245_v0, %v245_v0 }
  0x23   : > { %499 = vst [vmem:[%s606_s23 + $0x20] sm:$0xf] %v384_v17  ;;  %501 = vst [vmem:[%s606_s23 + $0x24] sm:$0x1] %v387_v18  ;;  %v313_v26 = vrot.slane %v311_v19, 7 }
  0x24   : > { %v321_v28 = vrot.slane %v319_v21, 7  ;;  %v508_v30 = vld [vmem:[%s606_s23 + $0x34] sm:$0x1]  ;;  %v327_v31 = vshrl.u32 %v527_v24, 16  ;;  %v330_v32 = vshll.u32 %v527_v24, 16  ;;  %v335_v33 = vshrl.u32 %v528_v25, 16 }
  0x25   : > { %v338_v34 = vshll.u32 %v528_v25, 16  ;;  %v316_v35 = vor.u32 %v314_v20, %v313_v26  ;;  %v317_v36 = vrot.slane %v313_v26, 4  ;;  %v510_v40 = vld [vmem:[%s606_s23 + $0x38] sm:$0xf]  ;;  %v512_v46 = vld [vmem:[%s606_s23 + $0x3c] sm:$0x1] }
  0x26   : > { %v324_v37 = vor.u32 %v322_v22, %v321_v28  ;;  %v325_v38 = vrot.slane %v321_v28, 4  ;;  %v329_v39 = vrot.slane %v327_v31, 7  ;;  %v337_v41 = vrot.slane %v335_v33, 7  ;;  %v514_v47 = vld [vmem:[%s606_s23 + $0x40] sm:$0xf] }
  0x27   : > { %v390_v42 = vsel %vm640_vm4, %v316_v35, %v502_v23  ;;  %v393_v43 = vsel %vm648_vm5, %v317_v36, %v504_v27  ;;  %v516_v48 = vld [vmem:[%s606_s23 + $0x44] sm:$0x1] }
  0x28   : > { %v396_v44 = vsel %vm640_vm4, %v324_v37, %v506_v29  ;;  %v399_v45 = vsel %vm648_vm5, %v325_v38, %v508_v30  ;;  %503 = vst [vmem:[%s606_s23 + $0x28] sm:$0xf] %v390_v42  ;;  %505 = vst [vmem:[%s606_s23 + $0x2c] sm:$0x1] %v393_v43  ;;  %v332_v49 = vor.u32 %v330_v32, %v329_v39  ;;  %v333_v50 = vrot.slane %v329_v39, 4 }
  0x29   : > { %507 = vst [vmem:[%s606_s23 + $0x30] sm:$0xf] %v396_v44  ;;  %509 = vst [vmem:[%s606_s23 + $0x34] sm:$0x1] %v399_v45  ;;  %v340_v51 = vor.u32 %v338_v34, %v337_v41  ;;  %v341_v52 = vrot.slane %v337_v41, 4 }
  0x2a   : > { %v402_v54 = vsel %vm640_vm4, %v332_v49, %v510_v40  ;;  %v405_v55 = vsel %vm648_vm5, %v333_v50, %v512_v46 }
  0x2b   : > { %v408_v56 = vsel %vm640_vm4, %v340_v51, %v514_v47  ;;  %v411_v57 = vsel %vm648_vm5, %v341_v52, %v516_v48  ;;  %511 = vst [vmem:[%s606_s23 + $0x38] sm:$0xf] %v402_v54  ;;  %513 = vst [vmem:[%s606_s23 + $0x3c] sm:$0x1] %v405_v55 }
  0x2c   : > { %515 = vst [vmem:[%s606_s23 + $0x40] sm:$0xf] %v408_v56  ;;  %517 = vst [vmem:[%s606_s23 + $0x44] sm:$0x1] %v411_v57 }
  0x2d PF: > { %s13_s12 = sadd.s32 1, %s564_s12  }
  0x2e   : > { %p10_p4 = scmp.ge.s32.totalorder %s13_s12, 4  }
  0x30   :  { %12 = sbr.rel (!%p10_p4) target bundleno = 1 (0x1), region = 63 }

// kernel: down_block.7
= control target key start
LH: loop header
LB: loop body
LE: loop exit
PB: predicated region body
PF: predicated region fallthrough
CT: control target
= control target key end

     0   :  { %s303_s0 = inlined_call_operand.vmem [shape: bf16[128,128], index: 0, kind: input, shape index: {}]   ;;  %s304_s1 = inlined_call_operand.vmem [shape: f32[1,128], index: 1, kind: input, shape index: {}]   ;;  %s305_s2 = inlined_call_operand.vmem [shape: f32[1,128], index: 2, kind: input, shape index: {}]   ;;  %s306_s3 = inlined_call_operand.vmem [shape: f32[128,128], index: 3, kind: output, shape index: {}]  }
   0x1   :  { %v131_v0 = vld [vmem:[%s303_s0] sm:$0xff]   ;;  %v162_v4 = vld [vmem:[%s303_s0 + $0x8] sm:$0xff]   ;;  %v163_v5 = vld [vmem:[%s303_s0 + $0x10] sm:$0xff]  }
   0x2   :  { %v195_v1 = vld [vmem:[%s304_s1] ss:$0 sm:$0xff]  ;;  %v132_v2 = vunpack.c.l.bf16 %v131_v0  ;;  %v133_v3 = vunpack.c.h.bf16 %v131_v0  ;;  %v164_v6 = vld [vmem:[%s303_s0 + $0x18] sm:$0xff]   ;;  %v136_v8 = vunpack.c.l.bf16 %v162_v4  ;;  %v137_v9 = vunpack.c.h.bf16 %v162_v4  ;;  %v166_v33 = vld [vmem:[%s303_s0 + $0x28] sm:$0xff]  }
   0x3   :  { %v209_v7 = vld [vmem:[%s305_s2] ss:$0 sm:$0xff]  ;;  %v140_v10 = vunpack.c.l.bf16 %v163_v5  ;;  %v141_v11 = vunpack.c.h.bf16 %v163_v5  ;;  %v144_v14 = vunpack.c.l.bf16 %v164_v6  ;;  %v145_v15 = vunpack.c.h.bf16 %v164_v6  ;;  %v167_v34 = vld [vmem:[%s303_s0 + $0x30] sm:$0xff]   ;;  %v168_v39 = vld [vmem:[%s303_s0 + $0x38] sm:$0xff]  }
   0x4   :  { %v53_v12 = vmul.f32 %v132_v2, %v195_v1  ;;  %v54_v13 = vmul.f32 %v133_v3, %v195_v1  ;;  %v55_v16 = vmul.f32 %v136_v8, %v195_v1  ;;  %v56_v17 = vmul.f32 %v137_v9, %v195_v1  ;;  %v165_v28 = vld [vmem:[%s303_s0 + $0x20] sm:$0xff]  }
   0x5   :  { %v57_v18 = vmul.f32 %v140_v10, %v195_v1  ;;  %v58_v19 = vmul.f32 %v141_v11, %v195_v1  ;;  %v59_v22 = vmul.f32 %v144_v14, %v195_v1  ;;  %v60_v23 = vmul.f32 %v145_v15, %v195_v1 }
   0x6   :  { %v76_v20 = vadd.f32 %v209_v7, %v53_v12  ;;  %v77_v21 = vadd.f32 %v209_v7, %v54_v13  ;;  %v78_v24 = vadd.f32 %v209_v7, %v55_v16  ;;  %v79_v25 = vadd.f32 %v209_v7, %v56_v17 }
   0x7   :  { %v80_v26 = vadd.f32 %v209_v7, %v57_v18  ;;  %v81_v27 = vadd.f32 %v209_v7, %v58_v19  ;;  %v82_v31 = vadd.f32 %v209_v7, %v59_v22  ;;  %v83_v32 = vadd.f32 %v209_v7, %v60_v23 }
   0x8   :  { %v92_v29 = vmax.f32 %v76_v20, 0.0  ;;  %v93_v30 = vmax.f32 %v77_v21, 0.0  ;;  %v94_v35 = vmax.f32 %v78_v24, 0.0  ;;  %v95_v36 = vmax.f32 %v79_v25, 0.0 }
   0x9   :  { %v96_v37 = vmax.f32 %v80_v26, 0.0  ;;  %v97_v38 = vmax.f32 %v81_v27, 0.0  ;;  %v98_v40 = vmax.f32 %v82_v31, 0.0  ;;  %v99_v41 = vmax.f32 %v83_v32, 0.0 }
   0xa   :  { %108 = vst [vmem:[%s306_s3] sm:$0xff] %v92_v29  ;;  %109 = vst [vmem:[%s306_s3 + $0x8] sm:$0xff] %v93_v30  ;;  %v148_v42 = vunpack.c.l.bf16 %v165_v28  ;;  %v149_v43 = vunpack.c.h.bf16 %v165_v28  ;;  %v152_v44 = vunpack.c.l.bf16 %v166_v33  ;;  %v153_v45 = vunpack.c.h.bf16 %v166_v33 }
   0xb   :  { %110 = vst [vmem:[%s306_s3 + $0x10] sm:$0xff] %v94_v35  ;;  %111 = vst [vmem:[%s306_s3 + $0x18] sm:$0xff] %v95_v36  ;;  %v156_v46 = vunpack.c.l.bf16 %v167_v34  ;;  %v157_v47 = vunpack.c.h.bf16 %v167_v34  ;;  %v160_v50 = vunpack.c.l.bf16 %v168_v39  ;;  %v161_v51 = vunpack.c.h.bf16 %v168_v39 }
   0xc   :  { %112 = vst [vmem:[%s306_s3 + $0x20] sm:$0xff] %v96_v37  ;;  %113 = vst [vmem:[%s306_s3 + $0x28] sm:$0xff] %v97_v38  ;;  %v61_v48 = vmul.f32 %v148_v42, %v195_v1  ;;  %v62_v49 = vmul.f32 %v149_v43, %v195_v1  ;;  %v63_v52 = vmul.f32 %v152_v44, %v195_v1 }
   0xd   :  { %114 = vst [vmem:[%s306_s3 + $0x30] sm:$0xff] %v98_v40  ;;  %115 = vst [vmem:[%s306_s3 + $0x38] sm:$0xff] %v99_v41  ;;  %v64_v53 = vmul.f32 %v153_v45, %v195_v1  ;;  %v65_v54 = vmul.f32 %v156_v46, %v195_v1  ;;  %v66_v55 = vmul.f32 %v157_v47, %v195_v1 }
   0xe   :  { %v84_v56 = vadd.f32 %v209_v7, %v61_v48  ;;  %v85_v57 = vadd.f32 %v209_v7, %v62_v49  ;;  %v67_v58 = vmul.f32 %v160_v50, %v195_v1  ;;  %v68_v59 = vmul.f32 %v161_v51, %v195_v1 }
   0xf   :  { %v86_v60 = vadd.f32 %v209_v7, %v63_v52  ;;  %v87_v61 = vadd.f32 %v209_v7, %v64_v53  ;;  %v88_v62 = vadd.f32 %v209_v7, %v65_v54  ;;  %v89_v63 = vadd.f32 %v209_v7, %v66_v55 }
  0x10   :  { %v100_v0 = vmax.f32 %v84_v56, 0.0  ;;  %v101_v2 = vmax.f32 %v85_v57, 0.0  ;;  %v90_v3 = vadd.f32 %v209_v7, %v67_v58  ;;  %v91_v4 = vadd.f32 %v209_v7, %v68_v59 }
  0x11   :  { %v102_v5 = vmax.f32 %v86_v60, 0.0  ;;  %v103_v6 = vmax.f32 %v87_v61, 0.0  ;;  %v104_v8 = vmax.f32 %v88_v62, 0.0  ;;  %v105_v9 = vmax.f32 %v89_v63, 0.0 }
  0x12   :  { %116 = vst [vmem:[%s306_s3 + $0x40] sm:$0xff] %v100_v0  ;;  %117 = vst [vmem:[%s306_s3 + $0x48] sm:$0xff] %v101_v2  ;;  %v106_v1 = vmax.f32 %v90_v3, 0.0  ;;  %v107_v10 = vmax.f32 %v91_v4, 0.0 }
  0x13   :  { %118 = vst [vmem:[%s306_s3 + $0x50] sm:$0xff] %v102_v5  ;;  %119 = vst [vmem:[%s306_s3 + $0x58] sm:$0xff] %v103_v6 }
  0x14   :  { %120 = vst [vmem:[%s306_s3 + $0x60] sm:$0xff] %v104_v8  ;;  %121 = vst [vmem:[%s306_s3 + $0x68] sm:$0xff] %v105_v9 }
  0x15   :  { %122 = vst [vmem:[%s306_s3 + $0x70] sm:$0xff] %v106_v1  ;;  %123 = vst [vmem:[%s306_s3 + $0x78] sm:$0xff] %v107_v10 }

// kernel: down_block.4
= control target key start
LH: loop header
LB: loop body
LE: loop exit
PB: predicated region body
PF: predicated region fallthrough
CT: control target
= control target key end

     0   :  { %s3151_s15 = smov 0   ;;  %s3153_s16 = smov 0   ;;  %s3588_s0 = inlined_call_operand.vmem [shape: bf16[2,9,2,9,256], index: 0, kind: input, shape index: {}]   ;;  %s3589_s1 = inlined_call_operand.vmem [shape: bf16[9,128,128], index: 1, kind: input, shape index: {}]   ;;  %s3590_s2 = inlined_call_operand.vmem [shape: bf16[2,8,8,128], index: 2, kind: output, shape index: {0}]   ;;  %s3591_s3 = inlined_call_operand.vmem [shape: f32[2,1,1,128], index: 3, kind: output, shape index: {1}]   ;;  %s3592_s4 = inlined_call_operand.vmem [shape: f32[2,1,1,128], index: 4, kind: output, shape index: {2}]  }
   0x1   :  { %s3155_s17 = smov 0  }
   0x2 LB: > { %s27_s18 = sadd.s32 1, %s3120_s16  ;;  %p2335_p0 = scmp.ge.s32.totalorder %s3124_s17, 1  ;;  %s3124_s17 = sphi %s3155_s17, %s15_s17   ;;  %s3120_s16 = sphi %s3153_s16, %s3604_s16   ;;  %s3116_s15 = sphi %s3151_s15, %s3603_s15  }
   0x3   : > { %p29_p1 = scmp.ge.s32.totalorder %s27_s18, 2  ;;  %p185_p2 = scmp.lt.s32.totalorder %s3124_s17, 3 }
   0x5   : > { %s3606_s18 = smov (%p29_p1, %s27_s18), 0  ;;  %p186_p3 = pnand %p2335_p0, %p185_p2 }
   0x7   : > { %189 = sbr.rel (%p186_p3) target bundleno = 403 (0x193), region = 28 }
   0xc   : > { %v3030_v0 = vld [vmem:[%s3589_s1 + $0x78] sm:$0xff]   ;;  %p227_p4 = scmp.lt.s32.totalorder %s3116_s15, 1  ;;  %v3032_v2 = vld [vmem:[%s3589_s1 + $0x70] sm:$0xff]   ;;  %v3034_v4 = vld [vmem:[%s3589_s1 + $0x68] sm:$0xff]   ;;  %vm598_vm0 = vsmask.f32 3328 }
   0xd   : > { %v3031_v1 = vld [vmem:[%s3589_s1 + $0x38] sm:$0xff]   ;;  %2773 = vmatprep.subr.bf16.mxu0 %v3030_v0  ;;  %v3033_v3 = vld [vmem:[%s3589_s1 + $0x30] sm:$0xff]   ;;  %v3035_v5 = vld [vmem:[%s3589_s1 + $0x28] sm:$0xff]   ;;  %vm599_vm1 = vsmask.f32 7440 }
   0xe   : > { %2797 = vmatprep.subr.bf16.mxu1 %v3031_v1  ;;  %2774 = vmatpush3.bf16.msra.mxu0 %v3030_v0  ;;  %s3608_s15 = smov (!%p227_p4, %s3116_s15), 1  ;;  %v3036_v6 = vld [vmem:[%s3589_s1 + $0x60] sm:$0xff]   ;;  %v3038_v8 = vld [vmem:[%s3589_s1 + $0x58] sm:$0xff]   ;;  %v3040_v10 = vld [vmem:[%s3589_s1 + $0x50] sm:$0xff]  }
   0xf   : > { %2798 = vmatpush3.bf16.msra.mxu1 %v3031_v1  ;;  %2775 = vmatprep.subr.bf16.mxu0 %v3032_v2  ;;  %v3037_v7 = vld [vmem:[%s3589_s1 + $0x20] sm:$0xff]   ;;  %s3005_s9 = smul.u32 288, %s3608_s15  ;;  %v3039_v9 = vld [vmem:[%s3589_s1 + $0x18] sm:$0xff]   ;;  %v3041_v14 = vld [vmem:[%s3589_s1 + $0x10] sm:$0xff]   ;;  %s2641_s13 = sshll.u32 %s3608_s15, 5 }
  0x10   : > { %2799 = vmatprep.subr.bf16.mxu1 %v3033_v3  ;;  %v3042_v18 = vld [vmem:[%s3589_s1 + $0x48] sm:$0xff]   ;;  %v3044_v20 = vld [vmem:[%s3589_s1 + $0x40] sm:$0xff]   ;;  %v3046_v26 = vld [vmem:[%s3589_s1 + $0xb8] sm:$0xff]   ;;  %s240_s21 = scalar_lea.vmem %s3590_s2, %s2641_s13  ;;  %s247_s24 = scalar_lea.vmem %s3591_s3, %s3608_s15 }
  0x11   : > { %s3205_s20 = scalar_lea.vmem %s3588_s0, %s3005_s9  ;;  %v3043_v19 = vld [vmem:[%s3589_s1 + $0x8] sm:$0xff]   ;;  %v3045_v21 = vld [vmem:[%s3589_s1] sm:$0xff]   ;;  %v3047_v27 = vld [vmem:[%s3589_s1 + $0xf8] sm:$0xff]   ;;  %s253_s27 = scalar_lea.vmem %s3592_s4, %s3608_s15 }
  0x12   : > { %2776 = vmatpush3.bf16.msra.mxu0 %v3032_v2  ;;  %v283_v11 = vld [vmem:[%s3205_s20 + $0x4] sm:$0xf]  ;;  %v259_v13 = vld [vmem:[%s3205_s20] sm:$0xf]  ;;  %v3048_v29 = vld [vmem:[%s3589_s1 + $0xb0] sm:$0xff]  }
  0x13   : > { %2800 = vmatpush3.bf16.msra.mxu1 %v3033_v3  ;;  %2777 = vmatprep.subr.bf16.mxu0 %v3034_v4  ;;  %v284_v12 = vld [vmem:[%s3205_s20 + $0x24] sm:$0xf]  ;;  %v260_v16 = vld [vmem:[%s3205_s20 + $0x20] sm:$0xf]  ;;  %v3049_v35 = vld [vmem:[%s3589_s1 + $0xf0] sm:$0xff]  }
  0x14   : > { %2801 = vmatprep.subr.bf16.mxu1 %v3035_v5  ;;  %v2355_v15 = vcombine.low %v283_v11, %v284_v12  ;;  %v2367_v17 = vcombine.low %v259_v13, %v260_v16  ;;  %v285_v22 = vld [vmem:[%s3205_s20 + $0x44] sm:$0xf]  ;;  %v261_v24 = vld [vmem:[%s3205_s20 + $0x40] sm:$0xf]  ;;  %v3050_v42 = vld [vmem:[%s3589_s1 + $0xa8] sm:$0xff]  }
  0x15   : > { %v286_v23 = vld [vmem:[%s3205_s20 + $0x64] sm:$0xf]  ;;  %v262_v25 = vld [vmem:[%s3205_s20 + $0x60] sm:$0xf]  ;;  %v3051_v43 = vld [vmem:[%s3589_s1 + $0xe8] sm:$0xff]  }
  0x16   : > { %2778 = vmatpush3.bf16.msra.mxu0 %v3034_v4  ;;  %2789 = vmatprep.mubr.bf16.mxu0 %v2355_v15  ;;  %v2356_v28 = vcombine.low %v285_v22, %v286_v23  ;;  %v287_v30 = vld [vmem:[%s3205_s20 + $0x84] sm:$0xf]  ;;  %v263_v32 = vld [vmem:[%s3205_s20 + $0x80] sm:$0xf]  ;;  %v2368_v33 = vcombine.low %v261_v24, %v262_v25  ;;  %v583_v45 = vld [vmem:[%s3205_s20 + $0x8] sm:$0x1] }
  0x17   : > { %2802 = vmatpush3.bf16.msra.mxu1 %v3035_v5  ;;  %2779 = vmatprep.subr.bf16.mxu0 %v3036_v6  ;;  %v288_v31 = vld [vmem:[%s3205_s20 + $0xa4] sm:$0xf]  ;;  %v264_v34 = vld [vmem:[%s3205_s20 + $0xa0] sm:$0xf]  ;;  %v585_v49 = vld [vmem:[%s3205_s20 + $0x28] sm:$0x1] }
  0x18   : > { %2803 = vmatprep.subr.bf16.mxu1 %v3037_v7  ;;  %2813 = vmatprep.mubr.bf16.mxu1 %v2367_v17  ;;  %v2357_v36 = vcombine.low %v287_v30, %v288_v31  ;;  %v289_v37 = vld [vmem:[%s3205_s20 + $0xc4] sm:$0xf]  ;;  %v2369_v39 = vcombine.low %v263_v32, %v264_v34  ;;  %v265_v40 = vld [vmem:[%s3205_s20 + $0xc0] sm:$0xf]  ;;  %v611_v52 = vshll.u32 %v583_v45, 16  ;;  %v625_v56 = vshll.u32 %v585_v49, 16  ;;  %vm3277_vm2 = vmor %vm598_vm0, %vm599_vm1 }
  0x19   : > { %v290_v38 = vld [vmem:[%s3205_s20 + $0xe4] sm:$0xf]  ;;  %v266_v41 = vld [vmem:[%s3205_s20 + $0xe0] sm:$0xf]  ;;  %v587_v61 = vld [vmem:[%s3205_s20 + $0x48] sm:$0x1] }
  0x1a   : > { %2780 = vmatpush3.bf16.msra.mxu0 %v3036_v6  ;;  %v582_v44 = vld [vmem:[%s3205_s20] sm:$0xf]  ;;  %v2358_v46 = vcombine.low %v289_v37, %v290_v38  ;;  %v2370_v47 = vcombine.low %v265_v40, %v266_v41  ;;  %v613_v63 = vrot.slane %v611_v52, 5  ;;  %v627_v5 = vrot.slane %v625_v56, 5  ;;  %v3055_v15 = vld [vmem:[%s3589_s1 + $0xd8] sm:$0xff]   ;;  %v3056_v25 = vld [vmem:[%s3589_s1 + $0x90] sm:$0xff]  }
  0x1b   : > { %2804 = vmatpush3.bf16.msra.mxu1 %v3037_v7  ;;  %2781 = vmatprep.subr.bf16.mxu0 %v3038_v8  ;;  %v584_v48 = vld [vmem:[%s3205_s20 + $0x20] sm:$0xf]  ;;  %v602_v50 = vshrl.u32 %v582_v44, 16  ;;  %v605_v51 = vshll.u32 %v582_v44, 16  ;;  %v639_v12 = vshll.u32 %v587_v61, 16  ;;  %v3058_v37 = vld [vmem:[%s3589_s1 + $0x88] sm:$0xff]  }
  0x1c   : > { %2805 = vmatprep.subr.bf16.mxu1 %v3039_v9  ;;  %v3052_v53 = vld [vmem:[%s3589_s1 + $0xa0] sm:$0xff]   ;;  %v616_v54 = vshrl.u32 %v584_v48, 16  ;;  %v619_v55 = vshll.u32 %v584_v48, 16  ;;  %v589_v17 = vld [vmem:[%s3205_s20 + $0x68] sm:$0x1] }
  0x1d   : > { %v586_v57 = vld [vmem:[%s3205_s20 + $0x40] sm:$0xf]  ;;  %v604_v59 = vrot.slane %v602_v50, 4  ;;  %v607_v60 = vrot.slane %v605_v51, 5  ;;  %v653_v30 = vshll.u32 %v589_v17, 16 }
  0x1e   : > { %2782 = vmatpush3.bf16.msra.mxu0 %v3038_v8  ;;  %v3053_v58 = vld [vmem:[%s3589_s1 + $0xe0] sm:$0xff]   ;;  %v630_v62 = vshrl.u32 %v586_v57, 16  ;;  %v618_v0 = vrot.slane %v616_v54, 4  ;;  %v621_v1 = vrot.slane %v619_v55, 5  ;;  %v633_v3 = vshll.u32 %v586_v57, 16  ;;  %v3054_v8 = vld [vmem:[%s3589_s1 + $0x98] sm:$0xff]  }
  0x1f   : > { %2806 = vmatpush3.bf16.msra.mxu1 %v3039_v9  ;;  %2783 = vmatprep.subr.bf16.mxu0 %v3040_v10  ;;  %v588_v2 = vld [vmem:[%s3205_s20 + $0x60] sm:$0xf]  ;;  %v608_v4 = vor.u32 %v607_v60, %v604_v59  ;;  %v591_v34 = vld [vmem:[%s3205_s20 + $0x88] sm:$0x1]  ;;  %v655_v38 = vrot.slane %v653_v30, 5 }
  0x20   : > { %2807 = vmatprep.subr.bf16.mxu1 %v3041_v14  ;;  %v632_v6 = vrot.slane %v630_v62, 4  ;;  %v644_v7 = vshrl.u32 %v588_v2, 16  ;;  %v635_v11 = vrot.slane %v633_v3, 5  ;;  %v647_v13 = vshll.u32 %v588_v2, 16  ;;  %v590_v32 = vld [vmem:[%s3205_s20 + $0x80] sm:$0xf] }
  0x21   : > { %v609_v16 = vrot.slane %v608_v4, 4  ;;  %v661_v40 = vshll.u32 %v590_v32, 16  ;;  %v594_v41 = vld [vmem:[%s3205_s20 + $0xc0] sm:$0xf]  ;;  %v667_v44 = vshll.u32 %v591_v34, 16 }
  0x22   : > { %2784 = vmatpush3.bf16.msra.mxu0 %v3040_v10  ;;  %v622_v10 = vor.u32 %v621_v1, %v618_v0  ;;  %v649_v22 = vrot.slane %v647_v13, 5  ;;  %v596_v51 = vld [vmem:[%s3205_s20 + $0xe0] sm:$0xf]  ;;  %v686_v52 = vshrl.u32 %v594_v41, 16  ;;  %v597_v56 = vld [vmem:[%s3205_s20 + $0xe8] sm:$0x1] }
  0x23   : > { %2808 = vmatpush3.bf16.msra.mxu1 %v3041_v14  ;;  %2785 = vmatprep.subr.bf16.mxu0 %v3042_v18  ;;  %v2407_v14 = vld [vmem:[%s3205_s20 + $0x10] sm:$0xf]  ;;  %v614_v23 = vsel %vm3277_vm2, %v609_v16, %v613_v63  ;;  %v663_v49 = vrot.slane %v661_v40, 5  ;;  %v689_v57 = vshll.u32 %v594_v41, 16  ;;  %v700_v62 = vshrl.u32 %v596_v51, 16  ;;  %v3061_v63 = vld [vmem:[%s3589_s1 + $0xc0] sm:$0xff]  }
  0x24   : > { %2809 = vmatprep.subr.bf16.mxu1 %v3043_v19  ;;  %v688_v60 = vrot.slane %v686_v52, 4  ;;  %v703_v2 = vshll.u32 %v596_v51, 16  ;;  %v709_v3 = vshll.u32 %v597_v56, 16  ;;  %v2410_v16 = vld [vmem:[%s3205_s20 + $0x70] sm:$0xf] }
  0x25   : > { %v691_v1 = vrot.slane %v689_v57, 5 }
  0x26   : > { %2786 = vmatpush3.bf16.msra.mxu0 %v3042_v18  ;;  %v2408_v18 = vld [vmem:[%s3205_s20 + $0x30] sm:$0xf] }
  0x27   : > { %2810 = vmatpush3.bf16.msra.mxu1 %v3043_v19  ;;  %2787 = vmatprep.subr.bf16.mxu0 %v3044_v20  ;;  %v623_v19 = vrot.slane %v622_v10, 4  ;;  %v2431_v24 = vcombine.low %v2407_v14, %v2408_v18  ;;  %v3062_v10 = vld [vmem:[%s3589_s1 + $0x138] sm:$0xff]   ;;  %v692_v13 = vor.u32 %v691_v1, %v688_v60  ;;  %v705_v14 = vrot.slane %v703_v2, 5 }
  0x28   : > { %2811 = vmatprep.subr.bf16.mxu1 %v3045_v21  ;;  %v711_v18 = vrot.slane %v709_v3, 5  ;;  %v2484_v2 = vld [vmem:[%s3205_s20 + $0x58] sm:$0x1] }
  0x29   : > { %v2486_v3 = vld [vmem:[%s3205_s20 + $0x78] sm:$0x1] }
  0x2a   : > { %2788 = vmatpush3.bf16.msra.mxu0 %v3044_v20  ;;  %v636_v20 = vor.u32 %v635_v11, %v632_v6  ;;  %v3063_v11 = vld [vmem:[%s3589_s1 + $0x178] sm:$0xff]  }
  0x2b   : > { %2812 = vmatpush3.bf16.msra.mxu1 %v3045_v21  ;;  %2821 = vmatprep.subr.bf16.mxu0 %v3046_v26  ;;  %v646_v21 = vrot.slane %v644_v7, 4  ;;  %v702_v7 = vrot.slane %v700_v62, 4 }
  0x2c   : > { %2845 = vmatprep.subr.bf16.mxu1 %v3047_v27 }
  0x2d   : > { %2790 = vmatmul.mubr.bf16.vlgmr.msra.gmra.mxu0 %v2356_v28  ;;  %v3297_v28 = vrot.slane %v636_v20, 4  ;;  %v2411_v20 = vld [vmem:[%s3205_s20 + $0x90] sm:$0xf] }
  0x2e   : > { %2814 = vmatmul.mubr.bf16.vlgmr.msra.gmra.mxu1 %v2368_v33  ;;  %2822 = vmatpush3.bf16.msra.mxu0 %v3046_v26  ;;  %v3057_v26 = vld [vmem:[%s3589_s1 + $0xd0] sm:$0xff]   ;;  %v650_v33 = vor.u32 %v649_v22, %v646_v21 }
  0x2f   : > { %2846 = vmatpush3.bf16.msra.mxu1 %v3047_v27  ;;  %2823 = vmatprep.subr.bf16.mxu0 %v3048_v29  ;;  %v628_v27 = vsel %vm3277_vm2, %v623_v19, %v627_v5  ;;  %v669_v5 = vrot.slane %v667_v44, 5  ;;  %v706_v19 = vor.u32 %v705_v14, %v702_v7  ;;  %v2412_v21 = vld [vmem:[%s3205_s20 + $0xb0] sm:$0xf]  ;;  %v2480_v44 = vld [vmem:[%s3205_s20 + $0x18] sm:$0x1] }
  0x30   : > { %2847 = vmatprep.subr.bf16.mxu1 %v3049_v35  ;;  %2793 = vmatprep.mubr.bf16.mxu0 %v2357_v36  ;;  %v2395_v31 = vcombine.low %v614_v23, %v628_v27  ;;  %v593_v36 = vld [vmem:[%s3205_s20 + $0xa8] sm:$0x1]  ;;  %v3064_v23 = vld [vmem:[%s3589_s1 + $0x130] sm:$0xff]  }
  0x31   : > { %2817 = vmatprep.mubr.bf16.mxu1 %v2369_v39  ;;  %v658_v39 = vshrl.u32 %v590_v32, 16  ;;  %v681_v50 = vshll.u32 %v593_v36, 16  ;;  %v3065_v27 = vld [vmem:[%s3589_s1 + $0x170] sm:$0xff]   ;;  %v3066_v36 = vld [vmem:[%s3589_s1 + $0x128] sm:$0xff]  }
  0x32   : > { %2824 = vmatpush3.bf16.msra.mxu0 %v3048_v29  ;;  %v3299_v29 = vrot.slane %v639_v12, 5  ;;  %v2414_v32 = vld [vmem:[%s3205_s20 + $0xf0] sm:$0xf] }
  0x33   : > { %2848 = vmatpush3.bf16.msra.mxu1 %v3049_v35  ;;  %2825 = vmatprep.subr.bf16.mxu0 %v3050_v42  ;;  %v592_v35 = vld [vmem:[%s3205_s20 + $0xa0] sm:$0xf]  ;;  %v660_v48 = vrot.slane %v658_v39, 4  ;;  %v683_v6 = vrot.slane %v681_v50, 5  ;;  %v2444_v39 = vld [vmem:[%s3205_s20 + $0x34] sm:$0xf] }
  0x34   : > { %2849 = vmatprep.subr.bf16.mxu1 %v3051_v43  ;;  %v672_v45 = vshrl.u32 %v592_v35, 16 }
  0x35   : > { %2794 = vmatmul.mubr.bf16.gmra.mxu0 %v2358_v46  ;;  %v675_v46 = vshll.u32 %v592_v35, 16  ;;  %v664_v59 = vor.u32 %v663_v49, %v660_v48  ;;  %v1236_v49 = vshll.u32 %v2480_v44, 16 }
  0x36   : > { %2826 = vmatpush3.bf16.msra.mxu0 %v3050_v42  ;;  %2818 = vmatmul.mubr.bf16.gmra.mxu1 %v2370_v47  ;;  %v3059_v42 = vld [vmem:[%s3589_s1 + $0xc8] sm:$0xff]   ;;  %v674_v54 = vrot.slane %v672_v45, 4  ;;  %v2481_v45 = vld [vmem:[%s3205_s20 + $0x30] sm:$0xf] }
  0x37   : > { %2850 = vmatpush3.bf16.msra.mxu1 %v3051_v43  ;;  %2827 = vmatprep.subr.bf16.mxu0 %v3052_v53  ;;  %v642_v43 = vsel %vm3277_vm2, %v3297_v28, %v3299_v29  ;;  %v595_v47 = vld [vmem:[%s3205_s20 + $0xc8] sm:$0x1]  ;;  %v677_v55 = vrot.slane %v675_v46, 5  ;;  %v665_v4 = vrot.slane %v664_v59, 4  ;;  %v693_v28 = vrot.slane %v692_v13, 4 }
  0x38   : > { %2851 = vmatprep.subr.bf16.mxu1 %v3053_v58  ;;  %2861 = vmatprep.mubr.bf16.mxu1 %v2431_v24  ;;  %v695_v61 = vshll.u32 %v595_v47, 16  ;;  %v707_v29 = vrot.slane %v706_v19, 4  ;;  %v2482_v46 = vld [vmem:[%s3205_s20 + $0x38] sm:$0x1]  ;;  %v1241_v50 = vshrl.u32 %v2481_v45, 16  ;;  %v1244_v51 = vshll.u32 %v2481_v45, 16 }
  0x39   : > { %2837 = vmatprep.mubr.bf16.mxu0 %v2395_v31  ;;  %v678_v0 = vor.u32 %v677_v55, %v674_v54  ;;  %v670_v24 = vsel %vm3277_vm2, %v665_v4, %v669_v5  ;;  %v2413_v31 = vld [vmem:[%s3205_s20 + $0xd0] sm:$0xf]  ;;  %v1250_v52 = vshll.u32 %v2482_v46, 16 }
  0x3a   : > { %2828 = vmatpush3.bf16.msra.mxu0 %v3052_v53  ;;  %v651_v53 = vrot.slane %v650_v33, 4  ;;  %v697_v17 = vrot.slane %v695_v61, 5  ;;  %v2433_v33 = vcombine.low %v2411_v20, %v2412_v21  ;;  %v712_v35 = vsel %vm3277_vm2, %v707_v29, %v711_v18  ;;  %v3072_v18 = vld [vmem:[%s3589_s1 + $0x110] sm:$0xff]   ;;  %v2488_v29 = vld [vmem:[%s3205_s20 + $0x98] sm:$0x1] }
  0x3b   : > { %2852 = vmatpush3.bf16.msra.mxu1 %v3053_v58  ;;  %2829 = vmatprep.subr.bf16.mxu0 %v3054_v8  ;;  %v3060_v58 = vld [vmem:[%s3589_s1 + $0x80] sm:$0xff]   ;;  %v679_v12 = vrot.slane %v678_v0, 4  ;;  %v2434_v41 = vcombine.low %v2413_v31, %v2414_v32  ;;  %v1243_v57 = vrot.slane %v1241_v50, 4  ;;  %v1246_v59 = vrot.slane %v1244_v51, 5  ;;  %v2485_v0 = vld [vmem:[%s3205_s20 + $0x70] sm:$0xf] }
  0x3c   : > { %2853 = vmatprep.subr.bf16.mxu1 %v3055_v15  ;;  %v698_v34 = vsel %vm3277_vm2, %v693_v28, %v697_v17  ;;  %v1238_v61 = vrot.slane %v1236_v49, 5  ;;  %v1252_v62 = vrot.slane %v1250_v52, 5  ;;  %v3073_v21 = vld [vmem:[%s3589_s1 + $0x150] sm:$0xff]   ;;  %v2490_v31 = vld [vmem:[%s3205_s20 + $0xb8] sm:$0x1]  ;;  %v3075_v32 = vld [vmem:[%s3589_s1 + $0x148] sm:$0xff]  }
  0x3d   : > { %v2398_v40 = vcombine.low %v698_v34, %v712_v35  ;;  %v1247_v1 = vor.u32 %v1246_v59, %v1243_v57  ;;  %v2487_v28 = vld [vmem:[%s3205_s20 + $0x90] sm:$0xf]  ;;  %v1306_v44 = vshll.u32 %v2490_v31, 16  ;;  %v2494_v51 = vld [vmem:[%s3205_s20 + $0xf8] sm:$0x1]  ;;  %v3083_v31 = vld [vmem:[%s3589_s1 + $0x1e8] sm:$0xff]  }
  0x3e   : > { %2830 = vmatpush3.bf16.msra.mxu0 %v3054_v8  ;;  %v656_v8 = vsel %vm3277_vm2, %v651_v53, %v655_v38  ;;  %v2443_v38 = vld [vmem:[%s3205_s20 + $0x14] sm:$0xf]  ;;  %v3069_v53 = vld [vmem:[%s3589_s1 + $0x160] sm:$0xff]   ;;  %v1283_v34 = vshrl.u32 %v2487_v28, 16  ;;  %v1286_v35 = vshll.u32 %v2487_v28, 16  ;;  %v3082_v28 = vld [vmem:[%s3589_s1 + $0x1a8] sm:$0xff]  }
  0x3f   : > { %2854 = vmatpush3.bf16.msra.mxu1 %v3055_v15  ;;  %2831 = vmatprep.subr.bf16.mxu0 %v3056_v25  ;;  %v2409_v15 = vld [vmem:[%s3205_s20 + $0x50] sm:$0xf]  ;;  %v2396_v22 = vcombine.low %v642_v43, %v656_v8  ;;  %v2467_v54 = vcombine.low %v2443_v38, %v2444_v39  ;;  %v1269_v8 = vshrl.u32 %v2485_v0, 16  ;;  %v1292_v38 = vshll.u32 %v2488_v29, 16 }
  0x40   : > { %2855 = vmatprep.subr.bf16.mxu1 %v3057_v26  ;;  %v2479_v43 = vld [vmem:[%s3205_s20 + $0x10] sm:$0xf] }
  0x41   : > { %v1227_v47 = vshrl.u32 %v2479_v43, 16  ;;  %v1230_v48 = vshll.u32 %v2479_v43, 16  ;;  %v1288_v43 = vrot.slane %v1286_v35, 5  ;;  %v2493_v45 = vld [vmem:[%s3205_s20 + $0xf0] sm:$0xf] }
  0x42   : > { %2832 = vmatpush3.bf16.msra.mxu0 %v3056_v25  ;;  %v684_v25 = vsel %vm3277_vm2, %v679_v12, %v683_v6  ;;  %v3071_v6 = vld [vmem:[%s3589_s1 + $0x158] sm:$0xff]   ;;  %v1325_v59 = vshrl.u32 %v2493_v45, 16  ;;  %v2559_v35 = vld [vmem:[%s3205_s20 + $0x24] sm:$0xf] }
  0x43   : > { %2856 = vmatpush3.bf16.msra.mxu1 %v3057_v26  ;;  %2833 = vmatprep.subr.bf16.mxu0 %v3058_v37  ;;  %v2432_v26 = vcombine.low %v2409_v15, %v2410_v16  ;;  %v2397_v30 = vcombine.low %v670_v24, %v684_v25  ;;  %v1229_v55 = vrot.slane %v1227_v47, 4  ;;  %v1232_v56 = vrot.slane %v1230_v48, 5  ;;  %v3074_v24 = vld [vmem:[%s3589_s1 + $0x108] sm:$0xff]   ;;  %v3076_v47 = vld [vmem:[%s3589_s1 + $0x100] sm:$0xff]  }
  0x44   : > { %2857 = vmatprep.subr.bf16.mxu1 %v3059_v42  ;;  %v1264_v15 = vshll.u32 %v2484_v2, 16  ;;  %v1271_v16 = vrot.slane %v1269_v8, 4  ;;  %v2448_v8 = vld [vmem:[%s3205_s20 + $0xb4] sm:$0xf] }
  0x45   : > { %v1233_v60 = vor.u32 %v1232_v56, %v1229_v55  ;;  %v2446_v55 = vld [vmem:[%s3205_s20 + $0x74] sm:$0xf] }
  0x46   : > { %2834 = vmatpush3.bf16.msra.mxu0 %v3058_v37  ;;  %v3067_v37 = vld [vmem:[%s3589_s1 + $0x168] sm:$0xff]  }
  0x47   : > { %2858 = vmatpush3.bf16.msra.mxu1 %v3059_v42  ;;  %2835 = vmatprep.subr.bf16.mxu0 %v3060_v58  ;;  %v3068_v42 = vld [vmem:[%s3589_s1 + $0x120] sm:$0xff]   ;;  %v1234_v7 = vrot.slane %v1233_v60, 4  ;;  %v3078_v60 = vld [vmem:[%s3589_s1 + $0x1b8] sm:$0xff]  }
  0x48   : > { %2859 = vmatprep.subr.bf16.mxu1 %v3061_v63 }
  0x49   : > { %v1239_v14 = vsel %vm3277_vm2, %v1234_v7, %v1238_v61  ;;  %v2447_v7 = vld [vmem:[%s3205_s20 + $0x94] sm:$0xf] }
  0x4a   : > { %2836 = vmatpush3.bf16.msra.mxu0 %v3060_v58  ;;  %v3070_v58 = vld [vmem:[%s3589_s1 + $0x118] sm:$0xff]  }
  0x4b   : > { %2860 = vmatpush3.bf16.msra.mxu1 %v3061_v63  ;;  %2869 = vmatprep.subr.bf16.mxu0 %v3062_v10  ;;  %v2483_v63 = vld [vmem:[%s3205_s20 + $0x50] sm:$0xf] }
  0x4c   : > { %2893 = vmatprep.subr.bf16.mxu1 %v3063_v11  ;;  %v1255_v4 = vshrl.u32 %v2483_v63, 16  ;;  %v1258_v5 = vshll.u32 %v2483_v63, 16  ;;  %v1328_v63 = vshll.u32 %v2493_v45, 16  ;;  %v3089_v45 = vld [vmem:[%s3589_s1 + $0x1d0] sm:$0xff]  }
  0x4d   : > { %2838 = vmatmul.mubr.bf16.vlgmr.msra.gmra.mxu0 %v2396_v22 }
  0x4e   : > { %2862 = vmatmul.mubr.bf16.vlgmr.msra.gmra.mxu1 %v2432_v26  ;;  %2870 = vmatpush3.bf16.msra.mxu0 %v3062_v10  ;;  %v1272_v10 = vshll.u32 %v2485_v0, 16  ;;  %v1257_v12 = vrot.slane %v1255_v4, 4  ;;  %v1260_v13 = vrot.slane %v1258_v5, 5  ;;  %v1334_v0 = vshll.u32 %v2494_v51, 16  ;;  %v3091_v51 = vld [vmem:[%s3589_s1 + $0x1c8] sm:$0xff]  }
  0x4f   : > { %2894 = vmatpush3.bf16.msra.mxu1 %v3063_v11  ;;  %2871 = vmatprep.subr.bf16.mxu0 %v3064_v23  ;;  %v1248_v11 = vrot.slane %v1247_v1, 4  ;;  %v3079_v1 = vld [vmem:[%s3589_s1 + $0x1f8] sm:$0xff]   ;;  %v1308_v4 = vrot.slane %v1306_v44, 5  ;;  %v1327_v5 = vrot.slane %v1325_v59, 4  ;;  %v3088_v44 = vld [vmem:[%s3589_s1 + $0x190] sm:$0xff]  }
  0x50   : > { %2895 = vmatprep.subr.bf16.mxu1 %v3065_v27  ;;  %2841 = vmatprep.mubr.bf16.mxu0 %v2397_v30  ;;  %v1274_v17 = vrot.slane %v1272_v10, 5  ;;  %v1261_v20 = vor.u32 %v1260_v13, %v1257_v12  ;;  %v2489_v30 = vld [vmem:[%s3205_s20 + $0xb0] sm:$0xf]  ;;  %v1330_v12 = vrot.slane %v1328_v63, 5  ;;  %v2526_v63 = vld [vmem:[%s3205_s20 + $0x80] sm:$0xf] }
  0x51   : > { %2865 = vmatprep.mubr.bf16.mxu1 %v2433_v33  ;;  %v1253_v19 = vsel %vm3277_vm2, %v1248_v11, %v1252_v62  ;;  %v1297_v39 = vshrl.u32 %v2489_v30, 16 }
  0x52   : > { %2872 = vmatpush3.bf16.msra.mxu0 %v3064_v23  ;;  %v2511_v22 = vcombine.low %v1239_v14, %v1253_v19  ;;  %v1278_v23 = vshll.u32 %v2486_v3, 16  ;;  %v1275_v25 = vor.u32 %v1274_v17, %v1271_v16  ;;  %v3394_v26 = vrot.slane %v1261_v20, 4  ;;  %v3080_v14 = vld [vmem:[%s3589_s1 + $0x1b0] sm:$0xff]  }
  0x53   : > { %2896 = vmatpush3.bf16.msra.mxu1 %v3065_v27  ;;  %2873 = vmatprep.subr.bf16.mxu0 %v3066_v36  ;;  %v3396_v27 = vrot.slane %v1264_v15, 5  ;;  %v1299_v49 = vrot.slane %v1297_v39, 4  ;;  %v1294_v3 = vrot.slane %v1292_v38, 5  ;;  %v1331_v16 = vor.u32 %v1330_v12, %v1327_v5  ;;  %v3081_v19 = vld [vmem:[%s3589_s1 + $0x1f0] sm:$0xff]   ;;  %v3084_v38 = vld [vmem:[%s3589_s1 + $0x1a0] sm:$0xff]  }
  0x54   : > { %2897 = vmatprep.subr.bf16.mxu1 %v3067_v37  ;;  %v1280_v33 = vrot.slane %v1278_v23, 5  ;;  %v1336_v17 = vrot.slane %v1334_v0, 5  ;;  %v3085_v39 = vld [vmem:[%s3589_s1 + $0x1e0] sm:$0xff]  }
  0x55   : > { %2842 = vmatmul.mubr.bf16.gmra.mxu0 %v2398_v40  ;;  %v1300_v40 = vshll.u32 %v2489_v30, 16  ;;  %v1267_v48 = vsel %vm3277_vm2, %v3394_v26, %v3396_v27  ;;  %v1332_v23 = vrot.slane %v1331_v16, 4  ;;  %v2449_v26 = vld [vmem:[%s3205_s20 + $0xd4] sm:$0xf]  ;;  %v2561_v0 = vld [vmem:[%s3205_s20 + $0x64] sm:$0xf] }
  0x56   : > { %2874 = vmatpush3.bf16.msra.mxu0 %v3066_v36  ;;  %2866 = vmatmul.mubr.bf16.gmra.mxu1 %v2434_v41  ;;  %v2491_v36 = vld [vmem:[%s3205_s20 + $0xd0] sm:$0xf]  ;;  %v2492_v41 = vld [vmem:[%s3205_s20 + $0xd8] sm:$0x1]  ;;  %v2450_v27 = vld [vmem:[%s3205_s20 + $0xf4] sm:$0xf] }
  0x57   : > { %2898 = vmatpush3.bf16.msra.mxu1 %v3067_v37  ;;  %2875 = vmatprep.subr.bf16.mxu0 %v3068_v42  ;;  %v1276_v37 = vrot.slane %v1275_v25, 4  ;;  %v1311_v46 = vshrl.u32 %v2491_v36, 16  ;;  %v1302_v50 = vrot.slane %v1300_v40, 5  ;;  %v1314_v52 = vshll.u32 %v2491_v36, 16 }
  0x58   : > { %2899 = vmatprep.subr.bf16.mxu1 %v3069_v53  ;;  %2885 = vmatprep.mubr.bf16.mxu0 %v2467_v54  ;;  %v2445_v54 = vld [vmem:[%s3205_s20 + $0x54] sm:$0xf]  ;;  %v1337_v30 = vsel %vm3277_vm2, %v1332_v23, %v1336_v17 }
  0x59   : > { %2909 = vmatprep.mubr.bf16.mxu1 %v2511_v22  ;;  %v1313_v57 = vrot.slane %v1311_v46, 4  ;;  %v1303_v61 = vor.u32 %v1302_v50, %v1299_v49  ;;  %v1316_v62 = vrot.slane %v1314_v52, 5  ;;  %v2468_v13 = vcombine.low %v2445_v54, %v2446_v55  ;;  %v2595_v46 = vld [vmem:[%s3205_s20 + $0x20] sm:$0xf] }
  0x5a   : > { %2876 = vmatpush3.bf16.msra.mxu0 %v3068_v42  ;;  %v1285_v42 = vrot.slane %v1283_v34, 4  ;;  %v2524_v34 = vld [vmem:[%s3205_s20 + $0x40] sm:$0xf]  ;;  %v1853_v52 = vshrl.u32 %v2595_v46, 16 }
  0x5b   : > { %2900 = vmatpush3.bf16.msra.mxu1 %v3069_v53  ;;  %2877 = vmatprep.subr.bf16.mxu0 %v3070_v58  ;;  %v3077_v53 = vld [vmem:[%s3589_s1 + $0x140] sm:$0xff]   ;;  %v1304_v10 = vrot.slane %v1303_v61, 4  ;;  %v1317_v11 = vor.u32 %v1316_v62, %v1313_v57 }
  0x5c   : > { %2901 = vmatprep.subr.bf16.mxu1 %v3071_v6  ;;  %v1289_v56 = vor.u32 %v1288_v43, %v1285_v42  ;;  %v3086_v42 = vld [vmem:[%s3589_s1 + $0x198] sm:$0xff]   ;;  %v2603_v49 = vld [vmem:[%s3205_s20 + $0xa0] sm:$0xf] }
  0x5d   : > { %v1318_v22 = vrot.slane %v1317_v11, 4  ;;  %v3087_v43 = vld [vmem:[%s3589_s1 + $0x1d8] sm:$0xff]   ;;  %v2605_v50 = vld [vmem:[%s3205_s20 + $0xc0] sm:$0xf]  ;;  %v1912_v57 = vshll.u32 %v2603_v49, 16 }
  0x5e   : > { %2878 = vmatpush3.bf16.msra.mxu0 %v3070_v58  ;;  %v1320_v58 = vshll.u32 %v2492_v41, 16  ;;  %v1290_v2 = vrot.slane %v1289_v56, 4  ;;  %v1909_v56 = vshrl.u32 %v2603_v49, 16  ;;  %v1926_v59 = vshll.u32 %v2605_v50, 16  ;;  %v3093_v61 = vld [vmem:[%s3589_s1 + $0x1c0] sm:$0xff]  }
  0x5f   : > { %2902 = vmatpush3.bf16.msra.mxu1 %v3071_v6  ;;  %2879 = vmatprep.subr.bf16.mxu0 %v3072_v18  ;;  %v1281_v6 = vsel %vm3277_vm2, %v1276_v37, %v1280_v33  ;;  %v2470_v33 = vcombine.low %v2449_v26, %v2450_v27  ;;  %v2560_v37 = vld [vmem:[%s3205_s20 + $0x44] sm:$0xf]  ;;  %v2525_v62 = vld [vmem:[%s3205_s20 + $0x60] sm:$0xf] }
  0x60   : > { %2903 = vmatprep.subr.bf16.mxu1 %v3073_v21  ;;  %v1322_v15 = vrot.slane %v1320_v58, 5  ;;  %v1295_v20 = vsel %vm3277_vm2, %v1290_v2, %v1294_v3  ;;  %v2583_v41 = vcombine.low %v2559_v35, %v2560_v37  ;;  %v1923_v58 = vshrl.u32 %v2605_v50, 16  ;;  %v2596_v2 = vld [vmem:[%s3205_s20 + $0x28] sm:$0x1] }
  0x61   : > { %v1855_v3 = vrot.slane %v1853_v52, 4  ;;  %v1928_v12 = vrot.slane %v1926_v59, 5  ;;  %v2548_v16 = vcombine.low %v2525_v62, %v2526_v63  ;;  %v1862_v23 = vshll.u32 %v2596_v2, 16  ;;  %v3097_v52 = vld [vmem:[%s3589_s1 + $0x220] sm:$0xff]   ;;  %v3098_v63 = vld [vmem:[%s3589_s1 + $0x218] sm:$0xff]  }
  0x62   : > { %2880 = vmatpush3.bf16.msra.mxu0 %v3072_v18  ;;  %v2512_v18 = vcombine.low %v1267_v48, %v1281_v6  ;;  %v1323_v29 = vsel %vm3277_vm2, %v1318_v22, %v1322_v15  ;;  %v3090_v48 = vld [vmem:[%s3589_s1 + $0x188] sm:$0xff]   ;;  %v1925_v11 = vrot.slane %v1923_v58, 4 }
  0x63   : > { %2904 = vmatpush3.bf16.msra.mxu1 %v3073_v21  ;;  %2881 = vmatprep.subr.bf16.mxu0 %v3074_v24  ;;  %v1309_v21 = vsel %vm3277_vm2, %v1304_v10, %v1308_v4  ;;  %v2514_v36 = vcombine.low %v1323_v29, %v1337_v30  ;;  %v1914_v10 = vrot.slane %v1912_v57, 5  ;;  %v2606_v15 = vld [vmem:[%s3205_s20 + $0xc8] sm:$0x1]  ;;  %v3095_v30 = vld [vmem:[%s3589_s1 + $0x230] sm:$0xff]   ;;  %v1864_v35 = vrot.slane %v1862_v23, 5 }
  0x64   : > { %2905 = vmatprep.subr.bf16.mxu1 %v3075_v32  ;;  %v2513_v25 = vcombine.low %v1295_v20, %v1309_v21  ;;  %v2563_v20 = vld [vmem:[%s3205_s20 + $0xa4] sm:$0xf]  ;;  %v1932_v29 = vshll.u32 %v2606_v15, 16  ;;  %v2609_v57 = vld [vmem:[%s3205_s20 + $0x100] sm:$0xf] }
  0x65   : > { %v2564_v21 = vld [vmem:[%s3205_s20 + $0xc4] sm:$0xf]  ;;  %v1951_v2 = vshrl.u32 %v2609_v57, 16 }
  0x66   : > { %2882 = vmatpush3.bf16.msra.mxu0 %v3074_v24  ;;  %v2469_v24 = vcombine.low %v2447_v7, %v2448_v8  ;;  %v2598_v7 = vld [vmem:[%s3205_s20 + $0x48] sm:$0x1]  ;;  %v1911_v8 = vrot.slane %v1909_v56, 4  ;;  %v2607_v56 = vld [vmem:[%s3205_s20 + $0xe0] sm:$0xf] }
  0x67   : > { %2906 = vmatpush3.bf16.msra.mxu1 %v3075_v32  ;;  %2883 = vmatprep.subr.bf16.mxu0 %v3076_v47  ;;  %v2523_v32 = vld [vmem:[%s3205_s20 + $0x20] sm:$0xf] }
  0x68   : > { %2907 = vmatprep.subr.bf16.mxu1 %v3077_v53  ;;  %v2547_v40 = vcombine.low %v2523_v32, %v2524_v34  ;;  %v1915_v26 = vor.u32 %v1914_v10, %v1911_v8  ;;  %v2585_v32 = vcombine.low %v2563_v20, %v2564_v21 }
  0x6a   : > { %2884 = vmatpush3.bf16.msra.mxu0 %v3076_v47  ;;  %v2597_v47 = vld [vmem:[%s3205_s20 + $0x40] sm:$0xf] }
  0x6b   : > { %2908 = vmatpush3.bf16.msra.mxu1 %v3077_v53  ;;  %2917 = vmatprep.subr.bf16.mxu0 %v3078_v60  ;;  %v1856_v53 = vshll.u32 %v2595_v46, 16  ;;  %v1867_v54 = vshrl.u32 %v2597_v47, 16  ;;  %v1870_v55 = vshll.u32 %v2597_v47, 16 }
  0x6c   : > { %2941 = vmatprep.subr.bf16.mxu1 %v3079_v1 }
  0x6d   : > { %2886 = vmatmul.mubr.bf16.vlgmr.msra.gmra.mxu0 %v2468_v13  ;;  %v1858_v4 = vrot.slane %v1856_v53, 5  ;;  %v1869_v5 = vrot.slane %v1867_v54, 4  ;;  %v1872_v6 = vrot.slane %v1870_v55, 5  ;;  %v3094_v13 = vld [vmem:[%s3589_s1 + $0x238] sm:$0xff]   ;;  %v2599_v53 = vld [vmem:[%s3205_s20 + $0x60] sm:$0xf] }
  0x6e   : > { %2910 = vmatmul.mubr.bf16.vlgmr.msra.gmra.mxu1 %v2512_v18  ;;  %2918 = vmatpush3.bf16.msra.mxu0 %v3078_v60  ;;  %v3092_v60 = vld [vmem:[%s3589_s1 + $0x180] sm:$0xff]   ;;  %v1881_v59 = vshrl.u32 %v2599_v53, 16 }
  0x6f   : > { %2942 = vmatpush3.bf16.msra.mxu1 %v3079_v1  ;;  %2919 = vmatprep.subr.bf16.mxu0 %v3080_v14  ;;  %v2562_v1 = vld [vmem:[%s3205_s20 + $0x84] sm:$0xf]  ;;  %v2527_v18 = vld [vmem:[%s3205_s20 + $0xa0] sm:$0xf]  ;;  %v1859_v22 = vor.u32 %v1858_v4, %v1855_v3  ;;  %v1954_v3 = vshll.u32 %v2609_v57, 16  ;;  %v3099_v4 = vld [vmem:[%s3589_s1 + $0x210] sm:$0xff]  }
  0x70   : > { %2943 = vmatprep.subr.bf16.mxu1 %v3081_v19  ;;  %2889 = vmatprep.mubr.bf16.mxu0 %v2469_v24  ;;  %v2584_v17 = vcombine.low %v2561_v0, %v2562_v1  ;;  %v1873_v24 = vor.u32 %v1872_v6, %v1869_v5  ;;  %v2601_v54 = vld [vmem:[%s3205_s20 + $0x80] sm:$0xf]  ;;  %v1937_v0 = vshrl.u32 %v2607_v56, 16  ;;  %v1940_v1 = vshll.u32 %v2607_v56, 16  ;;  %v2600_v5 = vld [vmem:[%s3205_s20 + $0x68] sm:$0x1] }
  0x71   : > { %2913 = vmatprep.mubr.bf16.mxu1 %v2513_v25  ;;  %v1876_v25 = vshll.u32 %v2598_v7, 16  ;;  %v1860_v34 = vrot.slane %v1859_v22, 4  ;;  %v1898_v62 = vshll.u32 %v2601_v54, 16  ;;  %v1883_v6 = vrot.slane %v1881_v59, 4  ;;  %v3100_v22 = vld [vmem:[%s3589_s1 + $0x208] sm:$0xff]  }
  0x72   : > { %2920 = vmatpush3.bf16.msra.mxu0 %v3080_v14  ;;  %v2604_v14 = vld [vmem:[%s3205_s20 + $0xa8] sm:$0x1]  ;;  %v1956_v15 = vrot.slane %v1954_v3, 5 }
  0x73   : > { %2944 = vmatpush3.bf16.msra.mxu1 %v3081_v19  ;;  %2921 = vmatprep.subr.bf16.mxu0 %v3082_v28  ;;  %v2528_v19 = vld [vmem:[%s3205_s20 + $0xc0] sm:$0xf]  ;;  %v1918_v27 = vshll.u32 %v2604_v14, 16  ;;  %v1878_v37 = vrot.slane %v1876_v25, 5  ;;  %v1865_v47 = vsel %vm3277_vm2, %v1860_v34, %v1864_v35  ;;  %v1900_v10 = vrot.slane %v1898_v62, 5 }
  0x74   : > { %2945 = vmatprep.subr.bf16.mxu1 %v3083_v31  ;;  %v1953_v14 = vrot.slane %v1951_v2, 4 }
  0x75   : > { %2890 = vmatmul.mubr.bf16.gmra.mxu0 %v2470_v33  ;;  %v2529_v33 = vld [vmem:[%s3205_s20 + $0xe0] sm:$0xf] }
  0x76   : > { %2922 = vmatpush3.bf16.msra.mxu0 %v3082_v28  ;;  %2914 = vmatmul.mubr.bf16.gmra.mxu1 %v2514_v36  ;;  %v1929_v28 = vor.u32 %v1928_v12, %v1925_v11  ;;  %v1874_v36 = vrot.slane %v1873_v24, 4  ;;  %v2602_v11 = vld [vmem:[%s3205_s20 + $0x88] sm:$0x1]  ;;  %v1939_v12 = vrot.slane %v1937_v0, 4  ;;  %v1957_v25 = vor.u32 %v1956_v15, %v1953_v14 }
  0x77   : > { %2946 = vmatpush3.bf16.msra.mxu1 %v3083_v31  ;;  %2923 = vmatprep.subr.bf16.mxu0 %v3084_v38  ;;  %v2549_v31 = vcombine.low %v2527_v18, %v2528_v19  ;;  %v1890_v19 = vshll.u32 %v2600_v5, 16  ;;  %v1904_v21 = vshll.u32 %v2602_v11, 16 }
  0x78   : > { %2947 = vmatprep.subr.bf16.mxu1 %v3085_v39  ;;  %2933 = vmatprep.mubr.bf16.mxu0 %v2547_v40  ;;  %v1920_v40 = vrot.slane %v1918_v27, 5  ;;  %v1958_v34 = vrot.slane %v1957_v25, 4 }
  0x79   : > { %2957 = vmatprep.mubr.bf16.mxu1 %v2583_v41  ;;  %v1930_v41 = vrot.slane %v1929_v28, 4  ;;  %v1892_v28 = vrot.slane %v1890_v19, 5 }
  0x7a   : > { %2924 = vmatpush3.bf16.msra.mxu0 %v3084_v38  ;;  %v2530_v38 = vld [vmem:[%s3205_s20 + $0x100] sm:$0xf] }
  0x7b   : > { %2948 = vmatpush3.bf16.msra.mxu1 %v3085_v39  ;;  %2925 = vmatprep.subr.bf16.mxu0 %v3086_v42  ;;  %v1916_v39 = vrot.slane %v1915_v26, 4  ;;  %v2550_v46 = vcombine.low %v2529_v33, %v2530_v38 }
  0x7c   : > { %2949 = vmatprep.subr.bf16.mxu1 %v3087_v43 }
  0x7d   : > { %v1921_v50 = vsel %vm3277_vm2, %v1916_v39, %v1920_v40 }
  0x7e   : > { %2926 = vmatpush3.bf16.msra.mxu0 %v3086_v42  ;;  %v1934_v42 = vrot.slane %v1932_v29, 5 }
  0x7f   : > { %2950 = vmatpush3.bf16.msra.mxu1 %v3087_v43  ;;  %2927 = vmatprep.subr.bf16.mxu0 %v3088_v44  ;;  %v3096_v43 = vld [vmem:[%s3589_s1 + $0x228] sm:$0xff]  }
  0x80   : > { %2951 = vmatprep.subr.bf16.mxu1 %v3089_v45 }
  0x82   : > { %2928 = vmatpush3.bf16.msra.mxu0 %v3088_v44  ;;  %v2565_v44 = vld [vmem:[%s3205_s20 + $0xe4] sm:$0xf] }
  0x83   : > { %2952 = vmatpush3.bf16.msra.mxu1 %v3089_v45  ;;  %2929 = vmatprep.subr.bf16.mxu0 %v3090_v48  ;;  %v2566_v45 = vld [vmem:[%s3205_s20 + $0x104] sm:$0xf] }
  0x84   : > { %2953 = vmatprep.subr.bf16.mxu1 %v3091_v51  ;;  %v2586_v49 = vcombine.low %v2565_v44, %v2566_v45 }
  0x86   : > { %2930 = vmatpush3.bf16.msra.mxu0 %v3090_v48  ;;  %v1879_v48 = vsel %vm3277_vm2, %v1874_v36, %v1878_v37 }
  0x87   : > { %2954 = vmatpush3.bf16.msra.mxu1 %v3091_v51  ;;  %2931 = vmatprep.subr.bf16.mxu0 %v3092_v60  ;;  %v1935_v51 = vsel %vm3277_vm2, %v1930_v41, %v1934_v42  ;;  %v2627_v55 = vcombine.low %v1865_v47, %v1879_v48 }
  0x88   : > { %2955 = vmatprep.subr.bf16.mxu1 %v3093_v61  ;;  %v2629_v58 = vcombine.low %v1921_v50, %v1935_v51 }
  0x8a   : > { %2932 = vmatpush3.bf16.msra.mxu0 %v3092_v60  ;;  %v1884_v60 = vshll.u32 %v2599_v53, 16 }
  0x8b   : > { %2956 = vmatpush3.bf16.msra.mxu1 %v3093_v61  ;;  %2965 = vmatprep.subr.bf16.mxu0 %v3094_v13  ;;  %v1895_v61 = vshrl.u32 %v2601_v54, 16 }
  0x8c   : > { %2989 = vmatprep.subr.bf16.mxu1 %v3094_v13  ;;  %v1886_v7 = vrot.slane %v1884_v60, 5 }
  0x8d   : > { %2934 = vmatmul.mubr.bf16.vlgmr.msra.gmra.mxu0 %v2548_v16  ;;  %v1897_v8 = vrot.slane %v1895_v61, 4  ;;  %v2608_v16 = vld [vmem:[%s3205_s20 + $0xe8] sm:$0x1] }
  0x8e   : > { %2958 = vmatmul.mubr.bf16.vlgmr.msra.gmra.mxu1 %v2584_v17  ;;  %2966 = vmatpush3.bf16.msra.mxu0 %v3094_v13  ;;  %v2610_v17 = vld [vmem:[%s3205_s20 + $0x108] sm:$0x1]  ;;  %v1887_v18 = vor.u32 %v1886_v7, %v1883_v6  ;;  %v1946_v24 = vshll.u32 %v2608_v16, 16 }
  0x8f   : > { %2997 = vmatpush3.bf16.msra.mxu1 %v3094_v13  ;;  %2967 = vmatprep.subr.bf16.mxu0 %v3095_v30  ;;  %v1942_v13 = vrot.slane %v1940_v1, 5  ;;  %v1901_v20 = vor.u32 %v1900_v10, %v1897_v8  ;;  %v1960_v26 = vshll.u32 %v2610_v17, 16 }
  0x90   : > { %2990 = vmatprep.subr.bf16.mxu1 %v3095_v30  ;;  %2937 = vmatprep.mubr.bf16.mxu0 %v2549_v31  ;;  %v1888_v27 = vrot.slane %v1887_v18, 4  ;;  %v3101_v31 = vld [vmem:[%s3589_s1 + $0x200] sm:$0xff]   ;;  %v1948_v33 = vrot.slane %v1946_v24, 5 }
  0x91   : > { %2961 = vmatprep.mubr.bf16.mxu1 %v2585_v32  ;;  %v1943_v23 = vor.u32 %v1942_v13, %v1939_v12  ;;  %v1902_v29 = vrot.slane %v1901_v20, 4  ;;  %v1962_v35 = vrot.slane %v1960_v26, 5 }
  0x92   : > { %2968 = vmatpush3.bf16.msra.mxu0 %v3095_v30  ;;  %v1893_v36 = vsel %vm3277_vm2, %v1888_v27, %v1892_v28 }
  0x93   : > { %2998 = vmatpush3.bf16.msra.mxu1 %v3095_v30  ;;  %2969 = vmatprep.subr.bf16.mxu0 %v3096_v43  ;;  %v1906_v30 = vrot.slane %v1904_v21, 5  ;;  %v1944_v32 = vrot.slane %v1943_v23, 4  ;;  %v1963_v39 = vsel %vm3277_vm2, %v1958_v34, %v1962_v35 }
  0x94   : > { %2991 = vmatprep.subr.bf16.mxu1 %v3096_v43 }
  0x95   : > { %2938 = vmatmul.mubr.bf16.gmra.mxu0 %v2550_v46  ;;  %v1907_v37 = vsel %vm3277_vm2, %v1902_v29, %v1906_v30  ;;  %v1949_v38 = vsel %vm3277_vm2, %v1944_v32, %v1948_v33 }
  0x96   : > { %2970 = vmatpush3.bf16.msra.mxu0 %v3096_v43  ;;  %2962 = vmatmul.mubr.bf16.gmra.mxu1 %v2586_v49  ;;  %v2628_v40 = vcombine.low %v1893_v36, %v1907_v37  ;;  %v2630_v41 = vcombine.low %v1949_v38, %v1963_v39 }
  0x97   : > { %2999 = vmatpush3.bf16.msra.mxu1 %v3096_v43  ;;  %2971 = vmatprep.subr.bf16.mxu0 %v3097_v52 }
  0x98   : > { %2992 = vmatprep.subr.bf16.mxu1 %v3097_v52  ;;  %2981 = vmatprep.mubr.bf16.mxu0 %v2627_v55 }
  0x99   : > { %2985 = vmatprep.mubr.bf16.mxu1 %v2629_v58 }
  0x9a   : > { %2972 = vmatpush3.bf16.msra.mxu0 %v3097_v52 }
  0x9b   : > { %3000 = vmatpush3.bf16.msra.mxu1 %v3097_v52  ;;  %2973 = vmatprep.subr.bf16.mxu0 %v3098_v63 }
  0x9c   : > { %2993 = vmatprep.subr.bf16.mxu1 %v3098_v63 }
  0x9e   : > { %2974 = vmatpush3.bf16.msra.mxu0 %v3098_v63 }
  0x9f   : > { %3001 = vmatpush3.bf16.msra.mxu1 %v3098_v63  ;;  %2975 = vmatprep.subr.bf16.mxu0 %v3099_v4 }
  0xa0   : > { %2994 = vmatprep.subr.bf16.mxu1 %v3099_v4 }
  0xa2   : > { %2976 = vmatpush3.bf16.msra.mxu0 %v3099_v4 }
  0xa3   : > { %3002 = vmatpush3.bf16.msra.mxu1 %v3099_v4  ;;  %2977 = vmatprep.subr.bf16.mxu0 %v3100_v22 }
  0xa4   : > { %2995 = vmatprep.subr.bf16.mxu1 %v3100_v22 }
  0xa6   : > { %2978 = vmatpush3.bf16.msra.mxu0 %v3100_v22 }
  0xa7   : > { %3003 = vmatpush3.bf16.msra.mxu1 %v3100_v22  ;;  %2979 = vmatprep.subr.bf16.mxu0 %v3101_v31 }
  0xa8   : > { %2996 = vmatprep.subr.bf16.mxu1 %v3101_v31 }
  0xaa   : > { %2980 = vmatpush3.bf16.msra.mxu0 %v3101_v31 }
  0xab   : > { %3004 = vmatpush3.bf16.msra.mxu1 %v3101_v31 }
  0xad   : > { %2982 = vmatmul.mubr.bf16.vlgmr.msra.gmra.mxu0 %v2628_v40 }
  0xae   : > { %2986 = vmatmul.mubr.bf16.vlgmr.msra.gmra.mxu1 %v2630_v41 }
  0xed   : > { %v2791_v42 = vpop.f32.mrf.mxu0 }
  0xee   : > { %v2815_v43 = vpop.f32.mrf.mxu1 }
  0xef   : > { %v414_v44 = vpop.f32.mrf.mxu0  ;;  %v560_v34 = vadd.f32 %v2815_v43, %v2791_v42 }
  0xf0   : > { %v551_v45 = vpop.f32.mrf.mxu1 }
  0xf1   : > { %v2792_v46 = vpop.f32.mrf.mxu0  ;;  %v552_v35 = vadd.f32 %v551_v45, %v414_v44 }
  0xf2   : > { %v2816_v47 = vpop.f32.mrf.mxu1 }
  0xf3   : > { %v417_v48 = vpop.f32.mrf.mxu0  ;;  %v563_v36 = vadd.f32 %v2816_v47, %v2792_v46 }
  0xf4   : > { %v554_v49 = vpop.f32.mrf.mxu1 }
  0xf5   : > { %v2795_v50 = vpop.f32.mrf.mxu0  ;;  %v555_v40 = vadd.f32 %v554_v49, %v417_v48 }
  0xf6   : > { %v2819_v51 = vpop.f32.mrf.mxu1 }
  0xf7   : > { %v430_v52 = vpop.f32.mrf.mxu0  ;;  %v576_v37 = vadd.f32 %v2819_v51, %v2795_v50 }
  0xf8   : > { %v567_v9 = vpop.f32.mrf.mxu1 }
  0xf9   : > { %v2796_v53 = vpop.f32.mrf.mxu0 }
  0xfa   : > { %v2820_v54 = vpop.f32.mrf.mxu1 }
  0xfb   : > { %v433_v55 = vpop.f32.mrf.mxu0  ;;  %v579_v38 = vadd.f32 %v2820_v54, %v2796_v53 }
  0xfc   : > { %v570_v56 = vpop.f32.mrf.mxu1 }
  0xfd   : > { %v571_v42 = vadd.f32 %v570_v56, %v433_v55 }
 0x10d   : > { %v2839_v57 = vpop.f32.mrf.mxu0 }
 0x10e   : > { %v2863_v58 = vpop.f32.mrf.mxu1  ;;  %v861_v41 = vadd.f32 %v2839_v57, %v560_v34 }
 0x10f   : > { %v828_v59 = vpop.f32.mrf.mxu0 }
 0x110   : > { %v1001_v60 = vpop.f32.mrf.mxu1  ;;  %v1034_v51 = vadd.f32 %v2863_v58, %v861_v41 }
 0x111   : > { %v2840_v61 = vpop.f32.mrf.mxu0 }
 0x112   : > { %v2864_v62 = vpop.f32.mrf.mxu1 }
 0x113   : > { %v831_v63 = vpop.f32.mrf.mxu0 }
 0x114   : > { %v1004_v0 = vpop.f32.mrf.mxu1  ;;  %v860_v45 = vadd.f32 %v831_v63, %v555_v40 }
 0x115   : > { %v2843_v1 = vpop.f32.mrf.mxu0 }
 0x116   : > { %v2867_v2 = vpop.f32.mrf.mxu1  ;;  %v865_v43 = vadd.f32 %v2843_v1, %v576_v37  ;;  %v1033_v57 = vadd.f32 %v1004_v0, %v860_v45 }
 0x117   : > { %v844_v3 = vpop.f32.mrf.mxu0 }
 0x118   : > { %v1017_v4 = vpop.f32.mrf.mxu1  ;;  %v1038_v49 = vadd.f32 %v2867_v2, %v865_v43 }
 0x119   : > { %v2844_v5 = vpop.f32.mrf.mxu0 }
 0x11a   : > { %v2868_v6 = vpop.f32.mrf.mxu1  ;;  %v866_v44 = vadd.f32 %v2844_v5, %v579_v38 }
 0x11b   : > { %v847_v7 = vpop.f32.mrf.mxu0 }
 0x11c   : > { %v1020_v8 = vpop.f32.mrf.mxu1  ;;  %v864_v47 = vadd.f32 %v847_v7, %v571_v42  ;;  %v1039_v34 = vadd.f32 %v2868_v6, %v866_v44 }
 0x12d   : > { %v2887_v10 = vpop.f32.mrf.mxu0 }
 0x12e   : > { %v2911_v11 = vpop.f32.mrf.mxu1 }
 0x12f   : > { %v1171_v12 = vpop.f32.mrf.mxu0 }
 0x130   : > { %v1453_v13 = vpop.f32.mrf.mxu1 }
 0x131   : > { %v2888_v14 = vpop.f32.mrf.mxu0 }
 0x132   : > { %v2912_v15 = vpop.f32.mrf.mxu1 }
 0x133   : > { %v1174_v16 = vpop.f32.mrf.mxu0 }
 0x134   : > { %v1456_v17 = vpop.f32.mrf.mxu1  ;;  %v1203_v1 = vadd.f32 %v1174_v16, %v1033_v57 }
 0x135   : > { %v2891_v18 = vpop.f32.mrf.mxu0 }
 0x136   : > { %v2915_v19 = vpop.f32.mrf.mxu1  ;;  %v1485_v6 = vadd.f32 %v1456_v17, %v1203_v1 }
 0x137   : > { %v1187_v20 = vpop.f32.mrf.mxu0 }
 0x138   : > { %v1469_v21 = vpop.f32.mrf.mxu1 }
 0x139   : > { %v2892_v22 = vpop.f32.mrf.mxu0 }
 0x13a   : > { %v2916_v23 = vpop.f32.mrf.mxu1  ;;  %v1209_v55 = vadd.f32 %v2892_v22, %v1039_v34 }
 0x13b   : > { %v1190_v24 = vpop.f32.mrf.mxu0 }
 0x13c   : > { %v1472_v25 = vpop.f32.mrf.mxu1 }
 0x14d   : > { %v2935_v26 = vpop.f32.mrf.mxu0 }
 0x14e   : > { %v3555_v27 = vpop.f32.mrf.mxu1 }
 0x14f   : > { %3595 = vst [vmem:[#allocation2_spill] sm:$0xff] %v3555_v27  ;;  %v1627_v28 = vpop.f32.mrf.mxu0  ;;  %v859_v27 = vadd.f32 %v828_v59, %v552_v35  ;;  %v1204_v35 = vadd.f32 %v2887_v10, %v1034_v51 }
 0x150   : > { %v3557_v29 = vpop.f32.mrf.mxu1 }
 0x151   : > { %3596 = vst [vmem:[#allocation3_spill] sm:$0xff] %v3557_v29  ;;  %v2936_v30 = vpop.f32.mrf.mxu0  ;;  %v862_v29 = vadd.f32 %v2840_v61, %v563_v36  ;;  %v1032_v53 = vadd.f32 %v1001_v60, %v859_v27  ;;  %v1486_v7 = vadd.f32 %v2911_v11, %v1204_v35  ;;  %v1491_v27 = vadd.f32 %v2916_v23, %v1209_v55 }
 0x152   : > { %v3559_v31 = vpop.f32.mrf.mxu1 }
 0x153   : > { %3597 = vst [vmem:[#allocation4_spill] sm:$0xff] %v3559_v31  ;;  %v1630_v32 = vpop.f32.mrf.mxu0  ;;  %v1035_v54 = vadd.f32 %v2864_v62, %v862_v29  ;;  %v1202_v59 = vadd.f32 %v1171_v12, %v1032_v53  ;;  %v1660_v0 = vadd.f32 %v2935_v26, %v1486_v7 }
 0x154   : > { %v3561_v33 = vpop.f32.mrf.mxu1  ;;  %v1659_v29 = vadd.f32 %v1630_v32, %v1485_v6 }
 0x155   : > { %3598 = vst [vmem:[#allocation5_spill] sm:$0xff] %v3561_v33  ;;  %v2939_v39 = vpop.f32.mrf.mxu0  ;;  %v568_v33 = vadd.f32 %v567_v9, %v430_v52  ;;  %v1205_v36 = vadd.f32 %v2888_v14, %v1035_v54  ;;  %v1037_v9 = vadd.f32 %v1020_v8, %v864_v47  ;;  %v1208_v52 = vadd.f32 %v2891_v18, %v1038_v49 }
 0x156   : > { %v2963_v31 = vpop.f32.mrf.mxu1  ;;  %v1484_v58 = vadd.f32 %v1453_v13, %v1202_v59 }
 0x157   : > { %v863_v46 = vadd.f32 %v844_v3, %v568_v33  ;;  %v1643_v50 = vpop.f32.mrf.mxu0  ;;  %v1207_v5 = vadd.f32 %v1190_v24, %v1037_v9  ;;  %v1487_v60 = vadd.f32 %v2912_v15, %v1205_v36  ;;  %v1490_v62 = vadd.f32 %v2915_v19, %v1208_v52  ;;  %v3599_v15 = vld [vmem:[#allocation2_spill] sm:$0xff] }
 0x158   : > { %v1813_v48 = vpop.f32.mrf.mxu1  ;;  %v1658_v10 = vadd.f32 %v1627_v28, %v1484_v58  ;;  %v1830_v19 = vadd.f32 %v3599_v15, %v1660_v0  ;;  %v3600_v23 = vld [vmem:[#allocation3_spill] sm:$0xff] }
 0x159   : > { %v1036_v61 = vadd.f32 %v1017_v4, %v863_v46  ;;  %v2940_v56 = vpop.f32.mrf.mxu0  ;;  %v1661_v12 = vadd.f32 %v2936_v30, %v1487_v60  ;;  %v1489_v14 = vadd.f32 %v1472_v25, %v1207_v5  ;;  %v1664_v18 = vadd.f32 %v2939_v39, %v1490_v62 }
 0x15a   : > { %v2964_v63 = vpop.f32.mrf.mxu1  ;;  %v1665_v22 = vadd.f32 %v2940_v56, %v1491_v27  ;;  %v1828_v33 = vadd.f32 %v3600_v23, %v1658_v10  ;;  %v3601_v17 = vld [vmem:[#allocation4_spill] sm:$0xff] }
 0x15b   : > { %v1206_v3 = vadd.f32 %v1187_v20, %v1036_v61  ;;  %v1646_v2 = vpop.f32.mrf.mxu0  ;;  %v1831_v26 = vadd.f32 %v3601_v17, %v1661_v12  ;;  %v1834_v30 = vadd.f32 %v2963_v31, %v1664_v18 }
 0x15c   : > { %v1816_v4 = vpop.f32.mrf.mxu1  ;;  %v1663_v11 = vadd.f32 %v1646_v2, %v1489_v14  ;;  %v1835_v37 = vadd.f32 %v2964_v63, %v1665_v22  ;;  %v3602_v25 = vld [vmem:[#allocation5_spill] sm:$0xff] }
 0x15d   : > { %v1488_v8 = vadd.f32 %v1469_v21, %v1206_v3  ;;  %v1829_v38 = vadd.f32 %v3602_v25, %v1659_v29 }
 0x15e   : > { %v1833_v43 = vadd.f32 %v1816_v4, %v1663_v11 }
 0x15f   : > { %v1662_v24 = vadd.f32 %v1643_v50, %v1488_v8 }
 0x161   : > { %v1832_v42 = vadd.f32 %v1813_v48, %v1662_v24 }
 0x16d   : > { %v2983_v16 = vpop.f32.mrf.mxu0 }
 0x16e   : > { %v2987_v20 = vpop.f32.mrf.mxu1  ;;  %v2112_v39 = vadd.f32 %v2983_v16, %v1830_v19 }
 0x16f   : > { %v2079_v13 = vpop.f32.mrf.mxu0  ;;  %v2116_v44 = vadd.f32 %v2987_v20, %v1834_v30 }
 0x170   : > { %v2095_v28 = vpop.f32.mrf.mxu1  ;;  %v2110_v40 = vadd.f32 %v2079_v13, %v1828_v33  ;;  %v2150_v59 = vmul.f32 %v2112_v39, %v2112_v39 }
 0x171   : > { %v2984_v21 = vpop.f32.mrf.mxu0  ;;  %v2114_v51 = vadd.f32 %v2095_v28, %v1832_v42  ;;  %v2154_v58 = vmul.f32 %v2116_v44, %v2116_v44 }
 0x172   : > { %v2113_v32 = vadd.f32 %v2984_v21, %v1831_v26  ;;  %v2988_v41 = vpop.f32.mrf.mxu1  ;;  %v2148_v49 = vmul.f32 %v2110_v40, %v2110_v40 }
 0x173   : > { %v2117_v45 = vadd.f32 %v2988_v41, %v1835_v37  ;;  %v2082_v46 = vpop.f32.mrf.mxu0  ;;  %v2152_v56 = vmul.f32 %v2114_v51, %v2114_v51 }
 0x174   : > { %v2650_v47 = vpack.c.bf16 %v2113_v32, %v2112_v39  ;;  %v2111_v50 = vadd.f32 %v2082_v46, %v1829_v38  ;;  %v2098_v31 = vpop.f32.mrf.mxu1  ;;  %v2151_v9 = vmul.f32 %v2113_v32, %v2113_v32 }
 0x175   : > { %v2660_v53 = vpack.c.bf16 %v2117_v45, %v2116_v44  ;;  %v2115_v54 = vadd.f32 %v2098_v31, %v1833_v43  ;;  %v2155_v27 = vmul.f32 %v2117_v45, %v2117_v45 }
 0x176   : > { %2662 = vst [vmem:[%s240_s21 + $0x8] sm:$0xff] %v2650_v47   ;;  %v2645_v34 = vpack.c.bf16 %v2111_v50, %v2110_v40  ;;  %v2134_v57 = vadd.f32 %v2111_v50, %v2110_v40  ;;  %v2149_v35 = vmul.f32 %v2111_v50, %v2111_v50 }
 0x177   : > { %2664 = vst [vmem:[%s240_s21 + $0x18] sm:$0xff] %v2660_v53   ;;  %v2655_v48 = vpack.c.bf16 %v2115_v54, %v2114_v51  ;;  %v2153_v5 = vmul.f32 %v2115_v54, %v2115_v54 }
 0x178   : > { %2646 = vst [vmem:[%s240_s21] sm:$0xff] %v2645_v34   ;;  %v2135_v36 = vadd.f32 %v2134_v57, %v2112_v39  ;;  %v2156_v61 = vadd.f32 %v2149_v35, %v2148_v49 }
 0x179   : > { %2663 = vst [vmem:[%s240_s21 + $0x10] sm:$0xff] %v2655_v48  }
 0x17a   : > { %v2157_v52 = vadd.f32 %v2156_v61, %v2150_v59  ;;  %v2136_v55 = vadd.f32 %v2135_v36, %v2113_v32 }
 0x17c   : > { %v2137_v1 = vadd.f32 %v2136_v55, %v2114_v51  ;;  %v2158_v63 = vadd.f32 %v2157_v52, %v2151_v9 }
 0x17e   : > { %v2138_v3 = vadd.f32 %v2137_v1, %v2115_v54  ;;  %v2159_v7 = vadd.f32 %v2158_v63, %v2152_v56 }
 0x180   : > { %v2139_v60 = vadd.f32 %v2138_v3, %v2116_v44  ;;  %v2160_v62 = vadd.f32 %v2159_v7, %v2153_v5 }
 0x182   : > { %v2140_v2 = vadd.f32 %v2139_v60, %v2117_v45  ;;  %v2161_v6 = vadd.f32 %v2160_v62, %v2154_v58 }
 0x184   : > { %v2141_v0 = vrot.slane %v2140_v2, 4  ;;  %v2162_v10 = vadd.f32 %v2161_v6, %v2155_v27 }
 0x186   : > { %v2142_v12 = vadd.f32 %v2141_v0, %v2140_v2  ;;  %v2163_v4 = vrot.slane %v2162_v10, 4 }
 0x188   : > { %v2143_v8 = vrot.slane %v2142_v12, 2  ;;  %v2164_v14 = vadd.f32 %v2163_v4, %v2162_v10 }
 0x18a   : > { %v2144_v18 = vadd.f32 %v2143_v8, %v2142_v12  ;;  %v2165_v22 = vrot.slane %v2164_v14, 2 }
 0x18c   : > { %v2145_v16 = vrot.slane %v2144_v18, 1  ;;  %v2166_v29 = vadd.f32 %v2165_v22, %v2164_v14 }
 0x18e   : > { %v2146_v20 = vadd.f32 %v2145_v16, %v2144_v18  ;;  %v2167_v24 = vrot.slane %v2166_v29, 1 }
 0x190   : > { %2147 = vst [vmem:[%s247_s24] sm:$0x1] %v2146_v20  ;;  %v2168_v11 = vadd.f32 %v2167_v24, %v2166_v29 }
 0x192   : > { %2169 = vst [vmem:[%s253_s27] sm:$0x1] %v2168_v11 }
 0x193 PF: > { %s15_s17 = sadd.s32 1, %s3124_s17   ;;  %s3603_s15 = smov %s3120_s16 }
 0x194   : > { %p12_p5 = scmp.ge.s32.totalorder %s15_s17, 4   ;;  %s3604_s16 = smov %s3606_s18 }
 0x196   :  { %14 = sbr.rel (!%p12_p5) target bundleno = 2 (0x2), region = 93 }

// kernel: down_block.6
= control target key start
LH: loop header
LB: loop body
LE: loop exit
PB: predicated region body
PF: predicated region fallthrough
CT: control target
= control target key end

     0   :  { %s3303_s15 = smov 0   ;;  %s3305_s16 = smov 0   ;;  %s3883_s0 = inlined_call_operand.vmem [shape: bf16[2,10,10,128], index: 0, kind: input, shape index: {}]   ;;  %s3884_s1 = inlined_call_operand.vmem [shape: bf16[9,128,128], index: 1, kind: input, shape index: {}]   ;;  %s3885_s2 = inlined_call_operand.vmem [shape: bf16[2,8,8,128], index: 2, kind: output, shape index: {0}]   ;;  %s3886_s3 = inlined_call_operand.vmem [shape: f32[2,1,1,128], index: 3, kind: output, shape index: {1}]   ;;  %s3887_s4 = inlined_call_operand.vmem [shape: f32[2,1,1,128], index: 4, kind: output, shape index: {2}]  }
   0x1   :  { %s3307_s17 = smov 0  }
   0x2 LB: > { %s27_s18 = sadd.s32 1, %s3272_s16  ;;  %p2451_p0 = scmp.ge.s32.totalorder %s3276_s17, 1  ;;  %s3276_s17 = sphi %s3307_s17, %s15_s17   ;;  %s3272_s16 = sphi %s3305_s16, %s3901_s16   ;;  %s3268_s15 = sphi %s3303_s15, %s3900_s15  }
   0x3   : > { %p29_p1 = scmp.ge.s32.totalorder %s27_s18, 2  ;;  %p185_p2 = scmp.lt.s32.totalorder %s3276_s17, 3 }
   0x5   : > { %s3903_s18 = smov (%p29_p1, %s27_s18), 0  ;;  %p186_p3 = pnand %p2451_p0, %p185_p2 }
   0x7   : > { %189 = sbr.rel (%p186_p3) target bundleno = 403 (0x193), region = 28 }
   0xc   : > { %v3170_v0 = vld [vmem:[%s3884_s1 + $0x78] sm:$0xff]   ;;  %p227_p4 = scmp.lt.s32.totalorder %s3268_s15, 1  ;;  %v3172_v2 = vld [vmem:[%s3884_s1 + $0x70] sm:$0xff]   ;;  %v3174_v4 = vld [vmem:[%s3884_s1 + $0x68] sm:$0xff]   ;;  %vm291_vm0 = vsmask.f32 3328 }
   0xd   : > { %v3171_v1 = vld [vmem:[%s3884_s1 + $0x38] sm:$0xff]   ;;  %2913 = vmatprep.subr.bf16.mxu0 %v3170_v0  ;;  %v3173_v3 = vld [vmem:[%s3884_s1 + $0x30] sm:$0xff]   ;;  %v3175_v5 = vld [vmem:[%s3884_s1 + $0x28] sm:$0xff]   ;;  %vm292_vm1 = vsmask.f32 7440  ;;  %vm713_vm3 = vcmask 1042432  }
   0xe   : > { %2937 = vmatprep.subr.bf16.mxu1 %v3171_v1  ;;  %2914 = vmatpush3.bf16.msra.mxu0 %v3170_v0  ;;  %s3905_s15 = smov (!%p227_p4, %s3268_s15), 1  ;;  %v3176_v6 = vld [vmem:[%s3884_s1 + $0x60] sm:$0xff]   ;;  %v3178_v8 = vld [vmem:[%s3884_s1 + $0x58] sm:$0xff]   ;;  %v3180_v10 = vld [vmem:[%s3884_s1 + $0x50] sm:$0xff]   ;;  %vm714_vm4 = vcmask 1046532  }
   0xf   : > { %2938 = vmatpush3.bf16.msra.mxu1 %v3171_v1  ;;  %2915 = vmatprep.subr.bf16.mxu0 %v3172_v2  ;;  %v3177_v7 = vld [vmem:[%s3884_s1 + $0x20] sm:$0xff]   ;;  %s3145_s9 = smul.u32 80, %s3905_s15  ;;  %v3179_v9 = vld [vmem:[%s3884_s1 + $0x18] sm:$0xff]   ;;  %v3181_v14 = vld [vmem:[%s3884_s1 + $0x10] sm:$0xff]   ;;  %s247_s24 = scalar_lea.vmem %s3886_s3, %s3905_s15 }
  0x10   : > { %2939 = vmatprep.subr.bf16.mxu1 %v3173_v3  ;;  %v3182_v17 = vld [vmem:[%s3884_s1 + $0x48] sm:$0xff]   ;;  %vm3400_vm2 = vmor %vm291_vm0, %vm292_vm1  ;;  %v3184_v46 = vld [vmem:[%s3884_s1 + $0x40] sm:$0xff]   ;;  %s253_s27 = scalar_lea.vmem %s3887_s4, %s3905_s15 }
  0x11   : > { %s3357_s20 = scalar_lea.vmem %s3883_s0, %s3145_s9  ;;  %v3183_v23 = vld [vmem:[%s3884_s1 + $0x8] sm:$0xff]   ;;  %v3185_v50 = vld [vmem:[%s3884_s1] sm:$0xff]   ;;  %v3188_v59 = vld [vmem:[%s3884_s1 + $0xb8] sm:$0xff]  }
  0x12   : > { %2916 = vmatpush3.bf16.msra.mxu0 %v3172_v2  ;;  %v259_v11 = vld [vmem:[%s3357_s20] sm:$0xf]  ;;  %v260_v12 = vld [vmem:[%s3357_s20 + $0x8] sm:$0xf]  ;;  %v3365_v13 = vld [vmem:[%s3357_s20 + $0x4] sm:$0x1] }
  0x13   : > { %2940 = vmatpush3.bf16.msra.mxu1 %v3173_v3  ;;  %2917 = vmatprep.subr.bf16.mxu0 %v3174_v4  ;;  %v3371_v15 = vld [vmem:[%s3357_s20 + $0xc] sm:$0x1]  ;;  %v2483_v16 = vcombine.low %v259_v11, %v260_v12  ;;  %v295_v18 = vshrl.u32 %v259_v11, 16  ;;  %v298_v19 = vshll.u32 %v259_v11, 16  ;;  %v304_v20 = vshll.u32 %v3365_v13, 16  ;;  %v3189_v62 = vld [vmem:[%s3884_s1 + $0xf8] sm:$0xff]   ;;  %vm3483_vm5 = vmor %vm713_vm3, %vm714_vm4 }
  0x14   : > { %2941 = vmatprep.subr.bf16.mxu1 %v3175_v5  ;;  %v309_v21 = vshrl.u32 %v260_v12, 16  ;;  %v3378_v22 = vld [vmem:[%s3357_s20 + $0x10] sm:$0xf]  ;;  %v312_v24 = vshll.u32 %v260_v12, 16  ;;  %v318_v25 = vshll.u32 %v3371_v15, 16  ;;  %v3193_v11 = vld [vmem:[%s3884_s1 + $0xe8] sm:$0xff]  }
  0x15   : > { %2953 = vmatprep.mubr.bf16.mxu1 %v2483_v16  ;;  %v3385_v26 = vld [vmem:[%s3357_s20 + $0x18] sm:$0xf]  ;;  %v297_v27 = vrot.slane %v295_v18, 4  ;;  %v300_v28 = vrot.slane %v298_v19, 5  ;;  %v306_v29 = vrot.slane %v304_v20, 5  ;;  %v323_v35 = vshrl.u32 %v3378_v22, 16 }
  0x16   : > { %2918 = vmatpush3.bf16.msra.mxu0 %v3174_v4  ;;  %v311_v30 = vrot.slane %v309_v21, 4  ;;  %v3388_v31 = vld [vmem:[%s3357_s20 + $0x14] sm:$0x1]  ;;  %v314_v32 = vrot.slane %v312_v24, 5  ;;  %v320_v33 = vrot.slane %v318_v25, 5  ;;  %v326_v36 = vshll.u32 %v3378_v22, 16 }
  0x17   : > { %2942 = vmatpush3.bf16.msra.mxu1 %v3175_v5  ;;  %2919 = vmatprep.subr.bf16.mxu0 %v3176_v6  ;;  %v3391_v34 = vld [vmem:[%s3357_s20 + $0x1c] sm:$0x1]  ;;  %v301_v37 = vor.u32 %v300_v28, %v297_v27  ;;  %v332_v38 = vshll.u32 %v3388_v31, 16  ;;  %v337_v39 = vshrl.u32 %v3385_v26, 16  ;;  %v340_v40 = vshll.u32 %v3385_v26, 16  ;;  %v3190_v3 = vld [vmem:[%s3884_s1 + $0xb0] sm:$0xff]  }
  0x18   : > { %2943 = vmatprep.subr.bf16.mxu1 %v3177_v7  ;;  %v315_v42 = vor.u32 %v314_v32, %v311_v30  ;;  %v325_v43 = vrot.slane %v323_v35, 4  ;;  %v328_v44 = vrot.slane %v326_v36, 5  ;;  %v346_v45 = vshll.u32 %v3391_v34, 16  ;;  %v3191_v5 = vld [vmem:[%s3884_s1 + $0xf0] sm:$0xff]   ;;  %v3456_v28 = vld [vmem:[%s3357_s20 + $0x3c] sm:$0x1] }
  0x19   : > { %v302_v47 = vrot.slane %v301_v37, 4  ;;  %v339_v48 = vrot.slane %v337_v39, 4  ;;  %v342_v49 = vrot.slane %v340_v40, 5  ;;  %v334_v53 = vrot.slane %v332_v38, 5  ;;  %v265_v18 = vld [vmem:[%s3357_s20 + $0x30] sm:$0xf] }
  0x1a   : > { %2920 = vmatpush3.bf16.msra.mxu0 %v3176_v6  ;;  %v316_v51 = vrot.slane %v315_v42, 4  ;;  %v329_v52 = vor.u32 %v328_v44, %v325_v43  ;;  %v348_v56 = vrot.slane %v346_v45, 5  ;;  %v2484_v2 = vcombine.low %v3378_v22, %v3385_v26  ;;  %v263_v6 = vld [vmem:[%s3357_s20 + $0x20] sm:$0xf]  ;;  %v266_v22 = vld [vmem:[%s3357_s20 + $0x38] sm:$0xf] }
  0x1b   : > { %2944 = vmatpush3.bf16.msra.mxu1 %v3177_v7  ;;  %2921 = vmatprep.subr.bf16.mxu0 %v3178_v8  ;;  %v307_v54 = vsel %vm3400_vm2, %v302_v47, %v306_v29  ;;  %v343_v55 = vor.u32 %v342_v49, %v339_v48  ;;  %v718_v4 = vrot.slane %v3365_v13, 5  ;;  %v3192_v7 = vld [vmem:[%s3884_s1 + $0xa8] sm:$0xff]   ;;  %v351_v12 = vshrl.u32 %v263_v6, 16  ;;  %v3194_v39 = vld [vmem:[%s3884_s1 + $0xa0] sm:$0xff]   ;;  %v692_v13 = vld [vmem:[%s3357_s20 + $0x18] sm:$0xe] }
  0x1c   : > { %2945 = vmatprep.subr.bf16.mxu1 %v3179_v9  ;;  %v321_v57 = vsel %vm3400_vm2, %v316_v51, %v320_v33  ;;  %v330_v58 = vrot.slane %v329_v52, 4  ;;  %v379_v32 = vshrl.u32 %v265_v18, 16  ;;  %v382_v33 = vshll.u32 %v265_v18, 16  ;;  %v3195_v45 = vld [vmem:[%s3884_s1 + $0xe0] sm:$0xff]  }
  0x1d   : > { %v2471_v60 = vcombine.low %v307_v54, %v321_v57  ;;  %v344_v61 = vrot.slane %v343_v55, 4  ;;  %v353_v24 = vrot.slane %v351_v12, 4  ;;  %v393_v37 = vshrl.u32 %v266_v22, 16  ;;  %v3196_v57 = vld [vmem:[%s3884_s1 + $0x98] sm:$0xff]   ;;  %v3249_v41 = vld [vmem:[%s3884_s1 + $0x220] sm:$0xff]  }
  0x1e   : > { %2922 = vmatpush3.bf16.msra.mxu0 %v3178_v8  ;;  %v335_v63 = vsel %vm3400_vm2, %v330_v58, %v334_v53  ;;  %v264_v8 = vld [vmem:[%s3357_s20 + $0x28] sm:$0xf]  ;;  %v396_v38 = vshll.u32 %v266_v22, 16  ;;  %v381_v42 = vrot.slane %v379_v32, 4  ;;  %v384_v43 = vrot.slane %v382_v33, 5 }
  0x1f   : > { %2946 = vmatpush3.bf16.msra.mxu1 %v3179_v9  ;;  %2923 = vmatprep.subr.bf16.mxu0 %v3180_v10  ;;  %v349_v0 = vsel %vm3400_vm2, %v344_v61, %v348_v56  ;;  %v3440_v9 = vld [vmem:[%s3357_s20 + $0x24] sm:$0x1]  ;;  %v368_v19 = vshll.u32 %v264_v8, 16  ;;  %v2485_v21 = vcombine.low %v263_v6, %v264_v8  ;;  %v402_v44 = vshll.u32 %v3456_v28, 16 }
  0x20   : > { %2947 = vmatprep.subr.bf16.mxu1 %v3181_v14  ;;  %2929 = vmatprep.mubr.bf16.mxu0 %v2471_v60  ;;  %v2472_v1 = vcombine.low %v335_v63, %v349_v0  ;;  %v360_v16 = vshll.u32 %v3440_v9, 16  ;;  %v395_v47 = vrot.slane %v393_v37, 4  ;;  %v398_v48 = vrot.slane %v396_v38, 5  ;;  %v689_v63 = vld [vmem:[%s3357_s20] sm:$0xe] }
  0x21   : > { %v370_v29 = vrot.slane %v368_v19, 5  ;;  %v2486_v52 = vcombine.low %v265_v18, %v266_v22  ;;  %v722_v53 = vrot.slane %v3371_v15, 5  ;;  %v404_v56 = vrot.slane %v402_v44, 5  ;;  %v3197_v15 = vld [vmem:[%s3884_s1 + $0xd8] sm:$0xff]   ;;  %v690_v0 = vld [vmem:[%s3357_s20 + $0x8] sm:$0xe] }
  0x22   : > { %2924 = vmatpush3.bf16.msra.mxu0 %v3180_v10  ;;  %v3443_v10 = vld [vmem:[%s3357_s20 + $0x2c] sm:$0x1]  ;;  %v362_v26 = vrot.slane %v360_v16, 5  ;;  %v399_v55 = vor.u32 %v398_v48, %v395_v47  ;;  %v691_v18 = vld [vmem:[%s3357_s20 + $0x10] sm:$0xe]  ;;  %v726_v19 = vrot.slane %v3388_v31, 5 }
  0x23   : > { %2948 = vmatpush3.bf16.msra.mxu1 %v3181_v14  ;;  %2925 = vmatprep.subr.bf16.mxu0 %v3182_v17  ;;  %v354_v14 = vshll.u32 %v263_v6, 16  ;;  %v374_v20 = vshll.u32 %v3443_v10, 16  ;;  %v2496_v6 = vrot.slane %v690_v0, 9  ;;  %v3202_v16 = vld [vmem:[%s3884_s1 + $0x88] sm:$0xff]   ;;  %v2497_v22 = vrot.slane %v691_v18, 9 }
  0x24   : > { %2949 = vmatprep.subr.bf16.mxu1 %v3183_v23  ;;  %v400_v61 = vrot.slane %v399_v55, 4  ;;  %v734_v31 = vrot.slane %v3440_v9, 5  ;;  %v695_v9 = vld [vmem:[%s3357_s20 + $0x30] sm:$0xe]  ;;  %v746_v37 = vrot.slane %v3456_v28, 5 }
  0x25   : > { %v356_v25 = vrot.slane %v354_v14, 5  ;;  %v376_v30 = vrot.slane %v374_v20, 5  ;;  %v723_v12 = vsel %vm3483_vm5, %v2496_v6, %v722_v53  ;;  %v3206_v14 = vld [vmem:[%s3357_s20 + $0x8] ss:$8 sps:$4 sm:$0xff]   ;;  %v730_v20 = vrot.slane %v3391_v34, 5 }
  0x26   : > { %2926 = vmatpush3.bf16.msra.mxu0 %v3182_v17  ;;  %v365_v17 = vshrl.u32 %v264_v8, 16  ;;  %v3201_v8 = vld [vmem:[%s3884_s1 + $0xd0] sm:$0xff]   ;;  %v738_v34 = vrot.slane %v3443_v10, 5  ;;  %v696_v10 = vld [vmem:[%s3357_s20 + $0x38] sm:$0xe] }
  0x27   : > { %2950 = vmatpush3.bf16.msra.mxu1 %v3183_v23  ;;  %2927 = vmatprep.subr.bf16.mxu0 %v3184_v46  ;;  %v3453_v23 = vld [vmem:[%s3357_s20 + $0x34] sm:$0x1]  ;;  %v357_v35 = vor.u32 %v356_v25, %v353_v24  ;;  %v2498_v24 = vrot.slane %v692_v13, 9  ;;  %v693_v25 = vld [vmem:[%s3357_s20 + $0x20] sm:$0xe]  ;;  %v2502_v44 = vrot.slane %v696_v10, 9 }
  0x28   : > { %2951 = vmatprep.subr.bf16.mxu1 %v3185_v50  ;;  %v367_v27 = vrot.slane %v365_v17, 4  ;;  %v388_v36 = vshll.u32 %v3453_v23, 16  ;;  %v2499_v32 = vrot.slane %v693_v25, 9  ;;  %v3211_v28 = vld [vmem:[%s3884_s1 + $0x170] sm:$0xff]   ;;  %v2567_v55 = vld [vmem:[%s3357_s20 + $0x8] sm:$0xf] }
  0x29   : > { %v3214_v47 = vld [vmem:[%s3357_s20 + $0x28] ss:$8 sps:$4 sm:$0xff]   ;;  %v3577_v6 = vld [vmem:[%s3357_s20 + $0x1c] sm:$0x1] }
  0x2a   : > { %2928 = vmatpush3.bf16.msra.mxu0 %v3184_v46  ;;  %v371_v40 = vor.u32 %v370_v29, %v367_v27  ;;  %v358_v46 = vrot.slane %v357_v35, 4  ;;  %v390_v51 = vrot.slane %v388_v36, 5  ;;  %v3205_v27 = vld [vmem:[%s3884_s1 + $0xc0] sm:$0xff]   ;;  %v742_v29 = vrot.slane %v3453_v23, 5  ;;  %v3208_v23 = vld [vmem:[%s3884_s1 + $0x178] sm:$0xff]   ;;  %v3221_v10 = vld [vmem:[%s3884_s1 + $0x150] sm:$0xff]  }
  0x2b   : > { %2952 = vmatpush3.bf16.msra.mxu1 %v3185_v50  ;;  %2961 = vmatprep.subr.bf16.mxu0 %v3188_v59  ;;  %v385_v50 = vor.u32 %v384_v43, %v381_v42  ;;  %v727_v35 = vsel %vm3483_vm5, %v2497_v22, %v726_v19  ;;  %v731_v36 = vsel %vm3483_vm5, %v2498_v24, %v730_v20  ;;  %v2501_v43 = vrot.slane %v695_v9, 9  ;;  %v2611_v20 = vld [vmem:[%s3357_s20 + $0x8] sm:$0xe] }
  0x2c   : > { %2985 = vmatprep.subr.bf16.mxu1 %v3189_v62  ;;  %v372_v49 = vrot.slane %v371_v40, 4  ;;  %v363_v54 = vsel %vm3400_vm2, %v358_v46, %v362_v26  ;;  %v694_v26 = vld [vmem:[%s3357_s20 + $0x28] sm:$0xe]  ;;  %v2520_v38 = vcombine.low %v727_v35, %v731_v36  ;;  %v735_v40 = vsel %vm3483_vm5, %v2499_v32, %v734_v31  ;;  %v3220_v32 = vld [vmem:[%s3884_s1 + $0x110] sm:$0xff]  }
  0x2d   : > { %2930 = vmatmul.mubr.bf16.vlgmr.msra.gmra.mxu0 %v2472_v1  ;;  %v2500_v33 = vrot.slane %v694_v26, 9  ;;  %v743_v48 = vsel %vm3483_vm5, %v2501_v43, %v742_v29  ;;  %v1130_v19 = vshll.u32 %v3577_v6, 16 }
  0x2e   : > { %2954 = vmatmul.mubr.bf16.vlgmr.msra.gmra.mxu1 %v2484_v2  ;;  %2962 = vmatpush3.bf16.msra.mxu0 %v3188_v59  ;;  %v377_v58 = vsel %vm3400_vm2, %v372_v49, %v376_v30  ;;  %v386_v59 = vrot.slane %v385_v50, 4  ;;  %v405_v2 = vsel %vm3400_vm2, %v400_v61, %v404_v56  ;;  %v3207_v30 = vld [vmem:[%s3884_s1 + $0x138] sm:$0xff]   ;;  %v747_v49 = vsel %vm3483_vm5, %v2502_v44, %v746_v37  ;;  %v3212_v50 = vld [vmem:[%s3884_s1 + $0x128] sm:$0xff]  }
  0x2f   : > { %2986 = vmatpush3.bf16.msra.mxu1 %v3189_v62  ;;  %2963 = vmatprep.subr.bf16.mxu0 %v3190_v3  ;;  %v2473_v60 = vcombine.low %v363_v54, %v377_v58  ;;  %v739_v42 = vsel %vm3483_vm5, %v2500_v33, %v738_v34  ;;  %v2522_v53 = vcombine.low %v743_v48, %v747_v49  ;;  %v3216_v54 = vld [vmem:[%s3884_s1 + $0x120] sm:$0xff]   ;;  %v3564_v56 = vld [vmem:[%s3357_s20 + $0xc] sm:$0x1]  ;;  %v2569_v58 = vld [vmem:[%s3357_s20 + $0x10] sm:$0xf] }
  0x30   : > { %2987 = vmatprep.subr.bf16.mxu1 %v3191_v5  ;;  %2957 = vmatprep.mubr.bf16.mxu1 %v2485_v21  ;;  %v391_v62 = vsel %vm3400_vm2, %v386_v59, %v390_v51  ;;  %v3204_v21 = vld [vmem:[%s3884_s1 + $0x80] sm:$0xff]   ;;  %v2521_v46 = vcombine.low %v735_v40, %v739_v42  ;;  %v3213_v51 = vld [vmem:[%s3884_s1 + $0x168] sm:$0xff]   ;;  %v3571_v59 = vld [vmem:[%s3357_s20 + $0x14] sm:$0x1]  ;;  %v1102_v61 = vshll.u32 %v3564_v56, 16 }
  0x31   : > { %2933 = vmatprep.mubr.bf16.mxu0 %v2473_v60  ;;  %v1096_v60 = vshll.u32 %v2567_v55, 16  ;;  %v1116_v0 = vshll.u32 %v3571_v59, 16  ;;  %v1388_v44 = vrot.slane %v3571_v59, 5  ;;  %v2575_v59 = vld [vmem:[%s3357_s20 + $0x28] sm:$0xf] }
  0x32   : > { %2964 = vmatpush3.bf16.msra.mxu0 %v3190_v3  ;;  %v3200_v3 = vld [vmem:[%s3884_s1 + $0x90] sm:$0xff]  }
  0x33   : > { %2988 = vmatpush3.bf16.msra.mxu1 %v3191_v5  ;;  %2965 = vmatprep.subr.bf16.mxu0 %v3192_v7  ;;  %v2495_v5 = vrot.slane %v689_v63, 9  ;;  %v1110_v63 = vshll.u32 %v2569_v58, 16 }
  0x34   : > { %2989 = vmatprep.subr.bf16.mxu1 %v3193_v11 }
  0x36   : > { %2966 = vmatpush3.bf16.msra.mxu0 %v3192_v7  ;;  %2958 = vmatmul.mubr.bf16.gmra.mxu1 %v2486_v52  ;;  %v2474_v7 = vcombine.low %v391_v62, %v405_v2  ;;  %v3215_v52 = vld [vmem:[%s3357_s20 + $0x38] ss:$8 sps:$4 sm:$0xff]   ;;  %v1107_v62 = vshrl.u32 %v2569_v58, 16 }
  0x37   : > { %2990 = vmatpush3.bf16.msra.mxu1 %v3193_v11  ;;  %2967 = vmatprep.subr.bf16.mxu0 %v3194_v39  ;;  %v719_v11 = vsel %vm3483_vm5, %v2495_v5, %v718_v4  ;;  %v3203_v4 = vld [vmem:[%s3884_s1 + $0xc8] sm:$0xff]   ;;  %v2571_v2 = vld [vmem:[%s3357_s20 + $0x18] sm:$0xf]  ;;  %v1098_v5 = vrot.slane %v1096_v60, 5 }
  0x38   : > { %2991 = vmatprep.subr.bf16.mxu1 %v3195_v45  ;;  %2934 = vmatmul.mubr.bf16.gmra.mxu0 %v2474_v7  ;;  %v2519_v17 = vcombine.low %v719_v11, %v723_v12  ;;  %v2573_v7 = vld [vmem:[%s3357_s20 + $0x20] sm:$0xf]  ;;  %v1109_v11 = vrot.slane %v1107_v62, 4  ;;  %v1112_v12 = vrot.slane %v1110_v63, 5  ;;  %v1121_v13 = vshrl.u32 %v2571_v2, 16 }
  0x39   : > { %3001 = vmatprep.mubr.bf16.mxu1 %v3206_v14  ;;  %v1118_v14 = vrot.slane %v1116_v0, 5  ;;  %v1135_v24 = vshrl.u32 %v2573_v7, 16  ;;  %v1138_v25 = vshll.u32 %v2573_v7, 16  ;;  %v3625_v60 = vld [vmem:[%s3357_s20 + $0x2c] sm:$0x1]  ;;  %v3224_v7 = vld [vmem:[%s3884_s1 + $0x100] sm:$0xff]  }
  0x3a   : > { %2968 = vmatpush3.bf16.msra.mxu0 %v3194_v39  ;;  %2977 = vmatprep.mubr.bf16.mxu0 %v2519_v17  ;;  %v3209_v39 = vld [vmem:[%s3357_s20 + $0x18] ss:$8 sps:$4 sm:$0xff]   ;;  %v1113_v22 = vor.u32 %v1112_v12, %v1109_v11  ;;  %v1123_v34 = vrot.slane %v1121_v13, 4  ;;  %v3629_v62 = vld [vmem:[%s3357_s20 + $0x34] sm:$0x1]  ;;  %v1158_v11 = vshll.u32 %v3625_v60, 16 }
  0x3b   : > { %2992 = vmatpush3.bf16.msra.mxu1 %v3195_v45  ;;  %2969 = vmatprep.subr.bf16.mxu0 %v3196_v57  ;;  %v3210_v45 = vld [vmem:[%s3884_s1 + $0x130] sm:$0xff]   ;;  %v3218_v17 = vld [vmem:[%s3884_s1 + $0x118] sm:$0xff]   ;;  %v1137_v35 = vrot.slane %v1135_v24, 4  ;;  %v1140_v36 = vrot.slane %v1138_v25, 5  ;;  %v1172_v13 = vshll.u32 %v3629_v62, 16  ;;  %v3225_v25 = vld [vmem:[%s3884_s1 + $0x140] sm:$0xff]  }
  0x3c   : > { %2993 = vmatprep.subr.bf16.mxu1 %v3197_v15  ;;  %v1114_v33 = vrot.slane %v1113_v22, 4 }
  0x3d   : > { %v1141_v42 = vor.u32 %v1140_v36, %v1137_v35 }
  0x3e   : > { %2970 = vmatpush3.bf16.msra.mxu0 %v3196_v57  ;;  %v3217_v57 = vld [vmem:[%s3884_s1 + $0x160] sm:$0xff]   ;;  %v1119_v40 = vsel %vm3400_vm2, %v1114_v33, %v1118_v14 }
  0x3f   : > { %2994 = vmatpush3.bf16.msra.mxu1 %v3197_v15  ;;  %2971 = vmatprep.subr.bf16.mxu0 %v3200_v3  ;;  %v1093_v15 = vshrl.u32 %v2567_v55, 16  ;;  %v3223_v55 = vld [vmem:[%s3884_s1 + $0x148] sm:$0xff]  }
  0x40   : > { %2995 = vmatprep.subr.bf16.mxu1 %v3201_v8 }
  0x42   : > { %2972 = vmatpush3.bf16.msra.mxu0 %v3200_v3  ;;  %v1095_v3 = vrot.slane %v1093_v15, 4 }
  0x43   : > { %2996 = vmatpush3.bf16.msra.mxu1 %v3201_v8  ;;  %2973 = vmatprep.subr.bf16.mxu0 %v3202_v16  ;;  %v1104_v8 = vrot.slane %v1102_v61, 5  ;;  %v2577_v61 = vld [vmem:[%s3357_s20 + $0x30] sm:$0xf] }
  0x44   : > { %2997 = vmatprep.subr.bf16.mxu1 %v3203_v4  ;;  %v1099_v18 = vor.u32 %v1098_v5, %v1095_v3  ;;  %v1152_v3 = vshll.u32 %v2575_v59, 16  ;;  %v2579_v5 = vld [vmem:[%s3357_s20 + $0x38] sm:$0xf]  ;;  %v1163_v12 = vshrl.u32 %v2577_v61, 16  ;;  %v1166_v14 = vshll.u32 %v2577_v61, 16  ;;  %v3229_v61 = vld [vmem:[%s3884_s1 + $0x1f0] sm:$0xff]  }
  0x45   : > { %v1180_v24 = vshll.u32 %v2579_v5, 16 }
  0x46   : > { %2974 = vmatpush3.bf16.msra.mxu0 %v3202_v16  ;;  %v3581_v16 = vld [vmem:[%s3357_s20 + $0x24] sm:$0x1]  ;;  %v1100_v31 = vrot.slane %v1099_v18, 4  ;;  %v1154_v18 = vrot.slane %v1152_v3, 5  ;;  %v1168_v22 = vrot.slane %v1166_v14, 5 }
  0x47   : > { %2998 = vmatpush3.bf16.msra.mxu1 %v3203_v4  ;;  %2975 = vmatprep.subr.bf16.mxu0 %v3204_v21  ;;  %v1124_v4 = vshll.u32 %v2571_v2, 16  ;;  %v1144_v26 = vshll.u32 %v3581_v16, 16  ;;  %v1396_v58 = vrot.slane %v3581_v16, 5  ;;  %v1149_v2 = vshrl.u32 %v2575_v59, 16  ;;  %v2581_v16 = vld [vmem:[%s3357_s20 + $0x40] sm:$0xf] }
  0x48   : > { %2999 = vmatprep.subr.bf16.mxu1 %v3205_v27  ;;  %v1194_v33 = vshll.u32 %v2581_v16, 16  ;;  %v3232_v14 = vld [vmem:[%s3884_s1 + $0x1a0] sm:$0xff]  }
  0x49   : > { %v1126_v29 = vrot.slane %v1124_v4, 5  ;;  %v1146_v9 = vrot.slane %v1144_v26, 5  ;;  %v3652_v4 = vld [vmem:[%s3357_s20 + $0x44] sm:$0x1] }
  0x4a   : > { %2976 = vmatpush3.bf16.msra.mxu0 %v3204_v21  ;;  %v3219_v21 = vld [vmem:[%s3884_s1 + $0x158] sm:$0xff]  }
  0x4b   : > { %3000 = vmatpush3.bf16.msra.mxu1 %v3205_v27  ;;  %3009 = vmatprep.subr.bf16.mxu0 %v3207_v30  ;;  %v2612_v27 = vld [vmem:[%s3357_s20 + $0x10] sm:$0xe]  ;;  %v1127_v37 = vor.u32 %v1126_v29, %v1123_v34 }
  0x4c   : > { %3033 = vmatprep.subr.bf16.mxu1 %v3208_v23  ;;  %v2620_v43 = vrot.slane %v2612_v27, 9  ;;  %v1174_v27 = vrot.slane %v1172_v13, 5  ;;  %v2691_v13 = vld [vmem:[%s3357_s20 + $0x10] sm:$0xf] }
  0x4d   : > { %2978 = vmatmul.mubr.bf16.vlgmr.msra.gmra.mxu0 %v2520_v38  ;;  %v2619_v38 = vrot.slane %v2611_v20, 9  ;;  %v1160_v20 = vrot.slane %v1158_v11, 5 }
  0x4e   : > { %3002 = vmatmul.mubr.bf16.vlgmr.msra.gmra.mxu1 %v3209_v39  ;;  %3010 = vmatpush3.bf16.msra.mxu0 %v3207_v30  ;;  %v1132_v30 = vrot.slane %v1130_v19, 5  ;;  %v1384_v39 = vrot.slane %v3564_v56, 5  ;;  %v1177_v19 = vshrl.u32 %v2579_v5, 16 }
  0x4f   : > { %3034 = vmatpush3.bf16.msra.mxu1 %v3208_v23  ;;  %3011 = vmatprep.subr.bf16.mxu0 %v3210_v45  ;;  %v1105_v23 = vsel %vm3400_vm2, %v1100_v31, %v1104_v8 }
  0x50   : > { %3035 = vmatprep.subr.bf16.mxu1 %v3211_v28  ;;  %2981 = vmatprep.mubr.bf16.mxu0 %v2521_v46  ;;  %v2599_v46 = vcombine.low %v1105_v23, %v1119_v40  ;;  %v1385_v48 = vsel %vm3483_vm5, %v2619_v38, %v1384_v39  ;;  %v1179_v31 = vrot.slane %v1177_v19, 4  ;;  %v3226_v23 = vld [vmem:[%s3884_s1 + $0x1b8] sm:$0xff]   ;;  %v1196_v40 = vrot.slane %v1194_v33, 5 }
  0x51   : > { %3005 = vmatprep.mubr.bf16.mxu1 %v3214_v47  ;;  %v1128_v47 = vrot.slane %v1127_v37, 4  ;;  %v2693_v19 = vld [vmem:[%s3357_s20 + $0x18] sm:$0xf] }
  0x52   : > { %3012 = vmatpush3.bf16.msra.mxu0 %v3210_v45  ;;  %v2613_v45 = vld [vmem:[%s3357_s20 + $0x18] sm:$0xe] }
  0x53   : > { %3036 = vmatpush3.bf16.msra.mxu1 %v3211_v28  ;;  %3013 = vmatprep.subr.bf16.mxu0 %v3212_v50  ;;  %v2614_v28 = vld [vmem:[%s3357_s20 + $0x20] sm:$0xe]  ;;  %v2621_v49 = vrot.slane %v2613_v45, 9  ;;  %v1133_v56 = vsel %vm3400_vm2, %v1128_v47, %v1132_v30  ;;  %v1182_v30 = vrot.slane %v1180_v24, 5  ;;  %v1404_v47 = vrot.slane %v3629_v62, 5 }
  0x54   : > { %3037 = vmatprep.subr.bf16.mxu1 %v3213_v51 }
  0x55   : > { %2982 = vmatmul.mubr.bf16.gmra.mxu0 %v2522_v53  ;;  %v1392_v53 = vrot.slane %v3577_v6, 5  ;;  %v3639_v6 = vld [vmem:[%s3357_s20 + $0x3c] sm:$0x1]  ;;  %v1183_v38 = vor.u32 %v1182_v30, %v1179_v31 }
  0x56   : > { %3014 = vmatpush3.bf16.msra.mxu0 %v3212_v50  ;;  %3006 = vmatmul.mubr.bf16.gmra.mxu1 %v3215_v52  ;;  %v3222_v50 = vld [vmem:[%s3884_s1 + $0x108] sm:$0xff]   ;;  %v1389_v52 = vsel %vm3483_vm5, %v2620_v43, %v1388_v44  ;;  %v1186_v34 = vshll.u32 %v3639_v6, 16  ;;  %v3227_v43 = vld [vmem:[%s3884_s1 + $0x1f8] sm:$0xff]  }
  0x57   : > { %3038 = vmatpush3.bf16.msra.mxu1 %v3213_v51  ;;  %3015 = vmatprep.subr.bf16.mxu0 %v3216_v54  ;;  %v1142_v51 = vrot.slane %v1141_v42, 4  ;;  %v3635_v0 = vsel %vm3483_vm5, %v2621_v49, %v1392_v53  ;;  %v2615_v42 = vld [vmem:[%s3357_s20 + $0x28] sm:$0xe]  ;;  %v2617_v53 = vld [vmem:[%s3357_s20 + $0x38] sm:$0xe] }
  0x58   : > { %3039 = vmatprep.subr.bf16.mxu1 %v3217_v57  ;;  %3025 = vmatprep.mubr.bf16.mxu0 %v2599_v46  ;;  %v1188_v36 = vrot.slane %v1186_v34, 5  ;;  %v2623_v46 = vrot.slane %v2615_v42, 9  ;;  %v3237_v42 = vld [vmem:[%s3884_s1 + $0x1d0] sm:$0xff]  }
  0x59   : > { %v1147_v15 = vsel %vm3400_vm2, %v1142_v51, %v1146_v9  ;;  %v1200_v9 = vshll.u32 %v3652_v4, 16 }
  0x5a   : > { %3016 = vmatpush3.bf16.msra.mxu0 %v3216_v54  ;;  %v2622_v54 = vrot.slane %v2614_v28, 9  ;;  %v3631_v63 = vcombine.low %v1133_v56, %v1147_v15  ;;  %v2616_v28 = vld [vmem:[%s3357_s20 + $0x30] sm:$0xe] }
  0x5b   : > { %3040 = vmatpush3.bf16.msra.mxu1 %v3217_v57  ;;  %3017 = vmatprep.subr.bf16.mxu0 %v3218_v17  ;;  %v2643_v57 = vcombine.low %v1385_v48, %v1389_v52  ;;  %v1202_v45 = vrot.slane %v1200_v9, 5  ;;  %v3228_v48 = vld [vmem:[%s3884_s1 + $0x1b0] sm:$0xff]   ;;  %v2624_v52 = vrot.slane %v2616_v28, 9  ;;  %v2697_v9 = vld [vmem:[%s3357_s20 + $0x28] sm:$0xf] }
  0x5c   : > { %3041 = vmatprep.subr.bf16.mxu1 %v3219_v21  ;;  %v3646_v8 = vsel %vm3483_vm5, %v2622_v54, %v1396_v58  ;;  %v2618_v54 = vld [vmem:[%s3357_s20 + $0x40] sm:$0xe]  ;;  %v1408_v58 = vrot.slane %v3639_v6, 5  ;;  %v3230_v6 = vld [vmem:[%s3884_s1 + $0x1a8] sm:$0xff]   ;;  %v1804_v28 = vshll.u32 %v2697_v9, 16 }
  0x5d   : > { %3049 = vmatprep.mubr.bf16.mxu1 %v2643_v57  ;;  %v2625_v57 = vrot.slane %v2617_v53, 9  ;;  %v1405_v15 = vsel %vm3483_vm5, %v2624_v52, %v1404_v47  ;;  %v3238_v53 = vld [vmem:[%s3884_s1 + $0x188] sm:$0xff]  }
  0x5e   : > { %3018 = vmatpush3.bf16.msra.mxu0 %v3218_v17  ;;  %v1151_v17 = vrot.slane %v1149_v2, 4  ;;  %v1806_v52 = vrot.slane %v1804_v28, 5  ;;  %v3246_v28 = vld [vmem:[%s3357_s20 + $0x30] ss:$8 sps:$4 sm:$0xff]  }
  0x5f   : > { %3042 = vmatpush3.bf16.msra.mxu1 %v3219_v21  ;;  %3019 = vmatprep.subr.bf16.mxu0 %v3220_v32  ;;  %v1165_v21 = vrot.slane %v1163_v12, 4 }
  0x60   : > { %3043 = vmatprep.subr.bf16.mxu1 %v3221_v10  ;;  %v1155_v26 = vor.u32 %v1154_v18, %v1151_v17  ;;  %v3242_v17 = vld [vmem:[%s3357_s20 + $0x10] ss:$8 sps:$4 sm:$0xff]  }
  0x61   : > { %v1169_v29 = vor.u32 %v1168_v22, %v1165_v21  ;;  %v3234_v18 = vld [vmem:[%s3884_s1 + $0x198] sm:$0xff]   ;;  %v1759_v21 = vshrl.u32 %v2691_v13, 16  ;;  %v1762_v22 = vshll.u32 %v2691_v13, 16 }
  0x62   : > { %3020 = vmatpush3.bf16.msra.mxu0 %v3220_v32  ;;  %v1191_v32 = vshrl.u32 %v2581_v16, 16  ;;  %v1156_v35 = vrot.slane %v1155_v26, 4  ;;  %v3233_v16 = vld [vmem:[%s3884_s1 + $0x1e0] sm:$0xff]   ;;  %v3235_v26 = vld [vmem:[%s3884_s1 + $0x1d8] sm:$0xff]  }
  0x63   : > { %3044 = vmatpush3.bf16.msra.mxu1 %v3221_v10  ;;  %3021 = vmatprep.subr.bf16.mxu0 %v3222_v50  ;;  %v1400_v10 = vrot.slane %v3625_v60, 5  ;;  %v1170_v37 = vrot.slane %v1169_v29, 4  ;;  %v2626_v60 = vrot.slane %v2618_v54, 9  ;;  %v1761_v34 = vrot.slane %v1759_v21, 4 }
  0x64   : > { %3045 = vmatprep.subr.bf16.mxu1 %v3223_v55  ;;  %v1193_v39 = vrot.slane %v1191_v32, 4  ;;  %v1161_v44 = vsel %vm3400_vm2, %v1156_v35, %v1160_v20  ;;  %v3720_v20 = vld [vmem:[%s3357_s20 + $0x1c] sm:$0x1]  ;;  %v1764_v29 = vrot.slane %v1762_v22, 5  ;;  %v2695_v32 = vld [vmem:[%s3357_s20 + $0x20] sm:$0xf] }
  0x65   : > { %v1175_v49 = vsel %vm3400_vm2, %v1170_v37, %v1174_v27  ;;  %v1401_v56 = vsel %vm3483_vm5, %v2623_v46, %v1400_v10  ;;  %v1776_v27 = vshll.u32 %v2693_v19, 16  ;;  %v1782_v31 = vshll.u32 %v3720_v20, 16  ;;  %v3236_v10 = vld [vmem:[%s3884_s1 + $0x190] sm:$0xff]   ;;  %v3771_v22 = vld [vmem:[%s3357_s20 + $0x44] sm:$0x1] }
  0x66   : > { %3022 = vmatpush3.bf16.msra.mxu0 %v3222_v50  ;;  %v1184_v50 = vrot.slane %v1183_v38, 4  ;;  %v1197_v51 = vor.u32 %v1196_v40, %v1193_v39  ;;  %v2601_v62 = vcombine.low %v1161_v44, %v1175_v49  ;;  %v2645_v2 = vcombine.low %v1401_v56, %v1405_v15  ;;  %v3736_v38 = vld [vmem:[%s3357_s20 + $0x2c] sm:$0x1] }
  0x67   : > { %3046 = vmatpush3.bf16.msra.mxu1 %v3223_v55  ;;  %3023 = vmatprep.subr.bf16.mxu0 %v3224_v7  ;;  %v2644_v55 = vcombine.low %v3635_v0, %v3646_v8  ;;  %v1412_v0 = vrot.slane %v3652_v4, 5  ;;  %v3231_v8 = vld [vmem:[%s3884_s1 + $0x1e8] sm:$0xff]   ;;  %v3716_v4 = vld [vmem:[%s3357_s20 + $0x14] sm:$0x1]  ;;  %v1778_v35 = vrot.slane %v1776_v27, 5  ;;  %v1784_v37 = vrot.slane %v1782_v31, 5 }
  0x68   : > { %3047 = vmatprep.subr.bf16.mxu1 %v3225_v25  ;;  %v1198_v59 = vrot.slane %v1197_v51, 4  ;;  %v1189_v3 = vsel %vm3400_vm2, %v1184_v50, %v1188_v36  ;;  %v1768_v24 = vshll.u32 %v3716_v4, 16  ;;  %v3729_v36 = vld [vmem:[%s3357_s20 + $0x24] sm:$0x1]  ;;  %v1787_v39 = vshrl.u32 %v2695_v32, 16  ;;  %v3239_v56 = vld [vmem:[%s3884_s1 + $0x1c8] sm:$0xff]  }
  0x69   : > { %v1790_v40 = vshll.u32 %v2695_v32, 16  ;;  %v1796_v44 = vshll.u32 %v3729_v36, 16  ;;  %v1810_v49 = vshll.u32 %v3736_v38, 16  ;;  %v2705_v31 = vld [vmem:[%s3357_s20 + $0x48] sm:$0xf] }
  0x6a   : > { %3024 = vmatpush3.bf16.msra.mxu0 %v3224_v7  ;;  %v1203_v5 = vsel %vm3400_vm2, %v1198_v59, %v1202_v45  ;;  %v1409_v7 = vsel %vm3483_vm5, %v2625_v57, %v1408_v58  ;;  %v1770_v33 = vrot.slane %v1768_v24, 5  ;;  %v1801_v45 = vshrl.u32 %v2697_v9, 16 }
  0x6b   : > { %3048 = vmatpush3.bf16.msra.mxu1 %v3225_v25  ;;  %3057 = vmatprep.subr.bf16.mxu0 %v3226_v23  ;;  %v2602_v11 = vcombine.low %v1189_v3, %v1203_v5  ;;  %v1773_v25 = vshrl.u32 %v2693_v19, 16  ;;  %v1789_v47 = vrot.slane %v1787_v39, 4  ;;  %v1798_v58 = vrot.slane %v1796_v44, 5  ;;  %v2701_v3 = vld [vmem:[%s3357_s20 + $0x38] sm:$0xf] }
  0x6c   : > { %3081 = vmatprep.subr.bf16.mxu1 %v3227_v43  ;;  %v1803_v51 = vrot.slane %v1801_v45, 4  ;;  %v1852_v9 = vshll.u32 %v3771_v22, 16  ;;  %v3245_v45 = vld [vmem:[%s3884_s1 + $0x230] sm:$0xff]  }
  0x6d   : > { %3026 = vmatmul.mubr.bf16.vlgmr.msra.gmra.mxu0 %v3631_v63  ;;  %v1413_v63 = vsel %vm3483_vm5, %v2626_v60, %v1412_v0  ;;  %v1775_v30 = vrot.slane %v1773_v25, 4 }
  0x6e   : > { %3050 = vmatmul.mubr.bf16.vlgmr.msra.gmra.mxu1 %v2644_v55  ;;  %3058 = vmatpush3.bf16.msra.mxu0 %v3226_v23  ;;  %v2646_v12 = vcombine.low %v1409_v7, %v1413_v63  ;;  %v1765_v23 = vor.u32 %v1764_v29, %v1761_v34  ;;  %v1807_v59 = vor.u32 %v1806_v52, %v1803_v51  ;;  %v3762_v7 = vld [vmem:[%s3357_s20 + $0x3c] sm:$0x1]  ;;  %v3779_v34 = vld [vmem:[%s3357_s20 + $0x4c] sm:$0x1]  ;;  %v3243_v29 = vld [vmem:[%s3357_s20 + $0x20] ss:$8 sps:$4 sm:$0xff]  }
  0x6f   : > { %3082 = vmatpush3.bf16.msra.mxu1 %v3227_v43  ;;  %3059 = vmatprep.subr.bf16.mxu0 %v3228_v48  ;;  %v1779_v43 = vor.u32 %v1778_v35, %v1775_v30  ;;  %v3244_v30 = vld [vmem:[%s3884_s1 + $0x238] sm:$0xff]   ;;  %v1866_v39 = vshll.u32 %v3779_v34, 16  ;;  %v1854_v51 = vrot.slane %v1852_v9, 5  ;;  %v2078_v9 = vrot.slane %v3779_v34, 5 }
  0x70   : > { %3083 = vmatprep.subr.bf16.mxu1 %v3229_v61  ;;  %3029 = vmatprep.mubr.bf16.mxu0 %v2601_v62  ;;  %v1766_v46 = vrot.slane %v1765_v23, 4  ;;  %v2699_v62 = vld [vmem:[%s3357_s20 + $0x30] sm:$0xf]  ;;  %v1808_v0 = vrot.slane %v1807_v59, 4  ;;  %v1857_v23 = vshrl.u32 %v2705_v31, 16  ;;  %v2050_v59 = vrot.slane %v3716_v4, 5 }
  0x71   : > { %3053 = vmatprep.mubr.bf16.mxu1 %v2645_v2  ;;  %v1780_v50 = vrot.slane %v1779_v43, 4  ;;  %v3755_v2 = vld [vmem:[%s3357_s20 + $0x34] sm:$0x1]  ;;  %v1815_v5 = vshrl.u32 %v2699_v62, 16  ;;  %v1818_v63 = vshll.u32 %v2699_v62, 16  ;;  %v1868_v52 = vrot.slane %v1866_v39, 5 }
  0x72   : > { %3060 = vmatpush3.bf16.msra.mxu0 %v3228_v48  ;;  %v1792_v48 = vrot.slane %v1790_v40, 5  ;;  %v1771_v54 = vsel %vm3400_vm2, %v1766_v46, %v1770_v33  ;;  %v2054_v62 = vrot.slane %v3720_v20, 5  ;;  %v2070_v4 = vrot.slane %v3762_v7, 5  ;;  %v3247_v20 = vld [vmem:[%s3357_s20 + $0x40] ss:$8 sps:$4 sm:$0xff]  }
  0x73   : > { %3084 = vmatpush3.bf16.msra.mxu1 %v3229_v61  ;;  %3061 = vmatprep.subr.bf16.mxu0 %v3230_v6  ;;  %v1785_v57 = vsel %vm3400_vm2, %v1780_v50, %v1784_v37  ;;  %v1812_v61 = vrot.slane %v1810_v49, 5  ;;  %v1820_v13 = vrot.slane %v1818_v63, 5  ;;  %v1860_v37 = vshll.u32 %v2705_v31, 16  ;;  %v2740_v63 = vld [vmem:[%s3357_s20 + $0x38] sm:$0xe] }
  0x74   : > { %3085 = vmatprep.subr.bf16.mxu1 %v3231_v8  ;;  %v1793_v55 = vor.u32 %v1792_v48, %v1789_v47  ;;  %v2723_v15 = vcombine.low %v1771_v54, %v1785_v57  ;;  %v1859_v47 = vrot.slane %v1857_v23, 4  ;;  %v2742_v31 = vld [vmem:[%s3357_s20 + $0x48] sm:$0xe] }
  0x75   : > { %3030 = vmatmul.mubr.bf16.gmra.mxu0 %v2602_v11  ;;  %v1829_v11 = vshrl.u32 %v2701_v3, 16  ;;  %v1813_v25 = vsel %vm3400_vm2, %v1808_v0, %v1812_v61  ;;  %v1862_v48 = vrot.slane %v1860_v37, 5  ;;  %v2066_v0 = vrot.slane %v3755_v2, 5 }
  0x76   : > { %3062 = vmatpush3.bf16.msra.mxu0 %v3230_v6  ;;  %3054 = vmatmul.mubr.bf16.gmra.mxu1 %v2646_v12  ;;  %v1794_v60 = vrot.slane %v1793_v55, 4  ;;  %v3240_v6 = vld [vmem:[%s3884_s1 + $0x180] sm:$0xff]   ;;  %v3248_v55 = vld [vmem:[%s3884_s1 + $0x228] sm:$0xff]   ;;  %v2750_v37 = vrot.slane %v2742_v31, 9 }
  0x77   : > { %3086 = vmatpush3.bf16.msra.mxu1 %v3231_v8  ;;  %3063 = vmatprep.subr.bf16.mxu0 %v3232_v14  ;;  %v1824_v8 = vshll.u32 %v3755_v2, 16  ;;  %v3241_v12 = vld [vmem:[%s3884_s1 + $0x1c0] sm:$0xff]   ;;  %v1831_v21 = vrot.slane %v1829_v11, 4  ;;  %v1863_v54 = vor.u32 %v1862_v48, %v1859_v47 }
  0x78   : > { %3087 = vmatprep.subr.bf16.mxu1 %v3233_v16  ;;  %3073 = vmatprep.mubr.bf16.mxu0 %v3242_v17  ;;  %v1838_v17 = vshll.u32 %v3762_v7, 16  ;;  %v1799_v24 = vsel %vm3400_vm2, %v1794_v60, %v1798_v58  ;;  %v2735_v58 = vld [vmem:[%s3357_s20 + $0x10] sm:$0xe]  ;;  %v2736_v60 = vld [vmem:[%s3357_s20 + $0x18] sm:$0xe]  ;;  %v2079_v34 = vsel %vm3483_vm5, %v2750_v37, %v2078_v9 }
  0x79   : > { %3097 = vmatprep.mubr.bf16.mxu1 %v2723_v15  ;;  %v1826_v19 = vrot.slane %v1824_v8, 5  ;;  %v2724_v44 = vcombine.low %v1799_v24, %v1813_v25  ;;  %v1864_v15 = vrot.slane %v1863_v54, 4  ;;  %v2743_v61 = vrot.slane %v2735_v58, 9  ;;  %v3252_v24 = vld [vmem:[%s3884_s1 + $0x208] sm:$0xff]   ;;  %v2737_v25 = vld [vmem:[%s3357_s20 + $0x20] sm:$0xe] }
  0x7a   : > { %3064 = vmatpush3.bf16.msra.mxu0 %v3232_v14  ;;  %v1817_v14 = vrot.slane %v1815_v5, 4  ;;  %v1840_v27 = vrot.slane %v1838_v17, 5  ;;  %v2744_v5 = vrot.slane %v2736_v60, 9 }
  0x7b   : > { %3088 = vmatpush3.bf16.msra.mxu1 %v3233_v16  ;;  %3065 = vmatprep.subr.bf16.mxu0 %v3234_v18  ;;  %v1832_v16 = vshll.u32 %v2701_v3, 16  ;;  %v1869_v8 = vsel %vm3400_vm2, %v1864_v15, %v1868_v52  ;;  %v2051_v2 = vsel %vm3483_vm5, %v2743_v61, %v2050_v59 }
  0x7c   : > { %3089 = vmatprep.subr.bf16.mxu1 %v3235_v26  ;;  %v1821_v32 = vor.u32 %v1820_v13, %v1817_v14  ;;  %v2055_v14 = vsel %vm3483_vm5, %v2744_v5, %v2054_v62 }
  0x7e   : > { %3066 = vmatpush3.bf16.msra.mxu0 %v3234_v18  ;;  %v2703_v18 = vld [vmem:[%s3357_s20 + $0x40] sm:$0xf]  ;;  %v1822_v40 = vrot.slane %v1821_v32, 4 }
  0x7f   : > { %3090 = vmatpush3.bf16.msra.mxu1 %v3235_v26  ;;  %3067 = vmatprep.subr.bf16.mxu0 %v3236_v10  ;;  %v1834_v26 = vrot.slane %v1832_v16, 5  ;;  %v1843_v33 = vshrl.u32 %v2703_v18, 16  ;;  %v1846_v35 = vshll.u32 %v2703_v18, 16  ;;  %v2767_v18 = vcombine.low %v2051_v2, %v2055_v14 }
  0x80   : > { %3091 = vmatprep.subr.bf16.mxu1 %v3237_v42  ;;  %v1827_v49 = vsel %vm3400_vm2, %v1822_v40, %v1826_v19  ;;  %v3250_v19 = vld [vmem:[%s3884_s1 + $0x218] sm:$0xff]  }
  0x81   : > { %v1848_v43 = vrot.slane %v1846_v35, 5  ;;  %v2074_v35 = vrot.slane %v3771_v22, 5 }
  0x82   : > { %3068 = vmatpush3.bf16.msra.mxu0 %v3236_v10  ;;  %v1835_v10 = vor.u32 %v1834_v26, %v1831_v21  ;;  %v3251_v21 = vld [vmem:[%s3884_s1 + $0x210] sm:$0xff]   ;;  %v2738_v26 = vld [vmem:[%s3357_s20 + $0x28] sm:$0xe] }
  0x83   : > { %3092 = vmatpush3.bf16.msra.mxu1 %v3237_v42  ;;  %3069 = vmatprep.subr.bf16.mxu0 %v3238_v53  ;;  %v1845_v42 = vrot.slane %v1843_v33, 4  ;;  %v2746_v32 = vrot.slane %v2738_v26, 9  ;;  %v2062_v33 = vrot.slane %v3736_v38, 5 }
  0x84   : > { %3093 = vmatprep.subr.bf16.mxu1 %v3239_v56  ;;  %v1836_v46 = vrot.slane %v1835_v10, 4  ;;  %v3253_v10 = vld [vmem:[%s3884_s1 + $0x200] sm:$0xff]  }
  0x85   : > { %v1849_v50 = vor.u32 %v1848_v43, %v1845_v42  ;;  %v2063_v38 = vsel %vm3483_vm5, %v2746_v32, %v2062_v33 }
  0x86   : > { %3070 = vmatpush3.bf16.msra.mxu0 %v3238_v53  ;;  %v1841_v53 = vsel %vm3400_vm2, %v1836_v46, %v1840_v27  ;;  %v2741_v27 = vld [vmem:[%s3357_s20 + $0x40] sm:$0xe] }
  0x87   : > { %3094 = vmatpush3.bf16.msra.mxu1 %v3239_v56  ;;  %3071 = vmatprep.subr.bf16.mxu0 %v3240_v6  ;;  %v2725_v56 = vcombine.low %v1827_v49, %v1841_v53  ;;  %v1850_v57 = vrot.slane %v1849_v50, 4  ;;  %v2749_v23 = vrot.slane %v2741_v27, 9 }
  0x88   : > { %3095 = vmatprep.subr.bf16.mxu1 %v3241_v12 }
  0x89   : > { %v1855_v3 = vsel %vm3400_vm2, %v1850_v57, %v1854_v51  ;;  %v2075_v22 = vsel %vm3483_vm5, %v2749_v23, %v2074_v35 }
  0x8a   : > { %3072 = vmatpush3.bf16.msra.mxu0 %v3240_v6  ;;  %v2739_v6 = vld [vmem:[%s3357_s20 + $0x30] sm:$0xe]  ;;  %v2726_v16 = vcombine.low %v1855_v3, %v1869_v8  ;;  %v2770_v40 = vcombine.low %v2075_v22, %v2079_v34  ;;  %s2781_s20 = sshll.u32 %s3905_s15, 5 }
  0x8b   : > { %3096 = vmatpush3.bf16.msra.mxu1 %v3241_v12  ;;  %3105 = vmatprep.subr.bf16.mxu0 %v3244_v30  ;;  %v2747_v11 = vrot.slane %v2739_v6, 9  ;;  %v2748_v12 = vrot.slane %v2740_v63, 9  ;;  %s240_s21 = scalar_lea.vmem %s3885_s2, %s2781_s20 }
  0x8c   : > { %3129 = vmatprep.subr.bf16.mxu1 %v3244_v30 }
  0x8d   : > { %3074 = vmatmul.mubr.bf16.vlgmr.msra.gmra.mxu0 %v3243_v29  ;;  %v2067_v7 = vsel %vm3483_vm5, %v2747_v11, %v2066_v0  ;;  %v2071_v17 = vsel %vm3483_vm5, %v2748_v12, %v2070_v4  ;;  %v2745_v29 = vrot.slane %v2737_v25, 9 }
  0x8e   : > { %3098 = vmatmul.mubr.bf16.vlgmr.msra.gmra.mxu1 %v2724_v44  ;;  %3106 = vmatpush3.bf16.msra.mxu0 %v3244_v30  ;;  %v2769_v13 = vcombine.low %v2067_v7, %v2071_v17 }
  0x8f   : > { %3137 = vmatpush3.bf16.msra.mxu1 %v3244_v30  ;;  %3107 = vmatprep.subr.bf16.mxu0 %v3245_v45  ;;  %v2058_v30 = vrot.slane %v3729_v36, 5 }
  0x90   : > { %3130 = vmatprep.subr.bf16.mxu1 %v3245_v45  ;;  %3077 = vmatprep.mubr.bf16.mxu0 %v3246_v28 }
  0x91   : > { %3101 = vmatprep.mubr.bf16.mxu1 %v2725_v56  ;;  %v2059_v36 = vsel %vm3483_vm5, %v2745_v29, %v2058_v30 }
  0x92   : > { %3108 = vmatpush3.bf16.msra.mxu0 %v3245_v45  ;;  %v2768_v39 = vcombine.low %v2059_v36, %v2063_v38 }
  0x93   : > { %3138 = vmatpush3.bf16.msra.mxu1 %v3245_v45  ;;  %3109 = vmatprep.subr.bf16.mxu0 %v3248_v55 }
  0x94   : > { %3131 = vmatprep.subr.bf16.mxu1 %v3248_v55 }
  0x95   : > { %3078 = vmatmul.mubr.bf16.gmra.mxu0 %v3247_v20 }
  0x96   : > { %3110 = vmatpush3.bf16.msra.mxu0 %v3248_v55  ;;  %3102 = vmatmul.mubr.bf16.gmra.mxu1 %v2726_v16 }
  0x97   : > { %3139 = vmatpush3.bf16.msra.mxu1 %v3248_v55  ;;  %3111 = vmatprep.subr.bf16.mxu0 %v3249_v41 }
  0x98   : > { %3132 = vmatprep.subr.bf16.mxu1 %v3249_v41  ;;  %3121 = vmatprep.mubr.bf16.mxu0 %v2767_v18 }
  0x99   : > { %3125 = vmatprep.mubr.bf16.mxu1 %v2769_v13 }
  0x9a   : > { %3112 = vmatpush3.bf16.msra.mxu0 %v3249_v41 }
  0x9b   : > { %3140 = vmatpush3.bf16.msra.mxu1 %v3249_v41  ;;  %3113 = vmatprep.subr.bf16.mxu0 %v3250_v19 }
  0x9c   : > { %3133 = vmatprep.subr.bf16.mxu1 %v3250_v19 }
  0x9e   : > { %3114 = vmatpush3.bf16.msra.mxu0 %v3250_v19 }
  0x9f   : > { %3141 = vmatpush3.bf16.msra.mxu1 %v3250_v19  ;;  %3115 = vmatprep.subr.bf16.mxu0 %v3251_v21 }
  0xa0   : > { %3134 = vmatprep.subr.bf16.mxu1 %v3251_v21 }
  0xa2   : > { %3116 = vmatpush3.bf16.msra.mxu0 %v3251_v21 }
  0xa3   : > { %3142 = vmatpush3.bf16.msra.mxu1 %v3251_v21  ;;  %3117 = vmatprep.subr.bf16.mxu0 %v3252_v24 }
  0xa4   : > { %3135 = vmatprep.subr.bf16.mxu1 %v3252_v24 }
  0xa6   : > { %3118 = vmatpush3.bf16.msra.mxu0 %v3252_v24 }
  0xa7   : > { %3143 = vmatpush3.bf16.msra.mxu1 %v3252_v24  ;;  %3119 = vmatprep.subr.bf16.mxu0 %v3253_v10 }
  0xa8   : > { %3136 = vmatprep.subr.bf16.mxu1 %v3253_v10 }
  0xaa   : > { %3120 = vmatpush3.bf16.msra.mxu0 %v3253_v10 }
  0xab   : > { %3144 = vmatpush3.bf16.msra.mxu1 %v3253_v10 }
  0xad   : > { %3122 = vmatmul.mubr.bf16.vlgmr.msra.gmra.mxu0 %v2768_v39 }
  0xae   : > { %3126 = vmatmul.mubr.bf16.vlgmr.msra.gmra.mxu1 %v2770_v40 }
  0xed   : > { %v2931_v42 = vpop.f32.mrf.mxu0 }
  0xee   : > { %v2955_v43 = vpop.f32.mrf.mxu1 }
  0xef   : > { %v521_v44 = vpop.f32.mrf.mxu0  ;;  %v667_v23 = vadd.f32 %v2955_v43, %v2931_v42 }
  0xf0   : > { %v658_v45 = vpop.f32.mrf.mxu1 }
  0xf1   : > { %v2932_v28 = vpop.f32.mrf.mxu0  ;;  %v659_v37 = vadd.f32 %v658_v45, %v521_v44 }
  0xf2   : > { %v2956_v46 = vpop.f32.mrf.mxu1 }
  0xf3   : > { %v524_v47 = vpop.f32.mrf.mxu0  ;;  %v670_v36 = vadd.f32 %v2956_v46, %v2932_v28 }
  0xf4   : > { %v661_v48 = vpop.f32.mrf.mxu1 }
  0xf5   : > { %v662_v39 = vadd.f32 %v661_v48, %v524_v47 }
  0xf6   : > { %v2959_v50 = vpop.f32.mrf.mxu1 }
  0xf8   : > { %v2935_v49 = vpop.f32.mrf.mxu0  ;;  %v674_v1 = vpop.f32.mrf.mxu1 }
  0xf9   : > { %v683_v38 = vadd.f32 %v2959_v50, %v2935_v49 }
  0xfa   : > { %v537_v51 = vpop.f32.mrf.mxu0  ;;  %v2960_v53 = vpop.f32.mrf.mxu1 }
  0xfc   : > { %v2936_v52 = vpop.f32.mrf.mxu0  ;;  %v677_v55 = vpop.f32.mrf.mxu1 }
  0xfd   : > { %v686_v22 = vadd.f32 %v2960_v53, %v2936_v52 }
  0xfe   : > { %v540_v54 = vpop.f32.mrf.mxu0 }
  0xff   : > { %v678_v42 = vadd.f32 %v677_v55, %v540_v54 }
 0x10d   : > { %v2979_v56 = vpop.f32.mrf.mxu0 }
 0x10e   : > { %v3003_v57 = vpop.f32.mrf.mxu1  ;;  %v896_v40 = vadd.f32 %v2979_v56, %v667_v23 }
 0x10f   : > { %v863_v58 = vpop.f32.mrf.mxu0 }
 0x110   : > { %v1037_v59 = vpop.f32.mrf.mxu1  ;;  %v1070_v50 = vadd.f32 %v3003_v57, %v896_v40 }
 0x111   : > { %v2980_v15 = vpop.f32.mrf.mxu0 }
 0x112   : > { %v3004_v60 = vpop.f32.mrf.mxu1 }
 0x113   : > { %v866_v61 = vpop.f32.mrf.mxu0 }
 0x114   : > { %v1040_v62 = vpop.f32.mrf.mxu1  ;;  %v895_v45 = vadd.f32 %v866_v61, %v662_v39 }
 0x115   : > { %v2983_v0 = vpop.f32.mrf.mxu0 }
 0x116   : > { %v3007_v3 = vpop.f32.mrf.mxu1  ;;  %v900_v43 = vadd.f32 %v2983_v0, %v683_v38  ;;  %v1069_v56 = vadd.f32 %v1040_v62, %v895_v45 }
 0x117   : > { %v879_v5 = vpop.f32.mrf.mxu0 }
 0x118   : > { %v1053_v6 = vpop.f32.mrf.mxu1  ;;  %v1074_v48 = vadd.f32 %v3007_v3, %v900_v43 }
 0x119   : > { %v2984_v63 = vpop.f32.mrf.mxu0 }
 0x11a   : > { %v3008_v4 = vpop.f32.mrf.mxu1  ;;  %v901_v44 = vadd.f32 %v2984_v63, %v686_v22 }
 0x11b   : > { %v882_v8 = vpop.f32.mrf.mxu0 }
 0x11c   : > { %v1056_v11 = vpop.f32.mrf.mxu1  ;;  %v899_v46 = vadd.f32 %v882_v8, %v678_v42  ;;  %v1075_v23 = vadd.f32 %v3008_v4, %v901_v44 }
 0x12d   : > { %v3027_v12 = vpop.f32.mrf.mxu0 }
 0x12e   : > { %v3051_v20 = vpop.f32.mrf.mxu1 }
 0x12f   : > { %v1319_v2 = vpop.f32.mrf.mxu0 }
 0x130   : > { %v1529_v14 = vpop.f32.mrf.mxu1 }
 0x131   : > { %v3028_v16 = vpop.f32.mrf.mxu0 }
 0x132   : > { %v3052_v7 = vpop.f32.mrf.mxu1 }
 0x133   : > { %v1322_v17 = vpop.f32.mrf.mxu0 }
 0x134   : > { %v1532_v41 = vpop.f32.mrf.mxu1  ;;  %v1351_v0 = vadd.f32 %v1322_v17, %v1069_v56 }
 0x135   : > { %v3031_v18 = vpop.f32.mrf.mxu0 }
 0x136   : > { %v3055_v13 = vpop.f32.mrf.mxu1  ;;  %v1561_v4 = vadd.f32 %v1532_v41, %v1351_v0 }
 0x137   : > { %v1335_v19 = vpop.f32.mrf.mxu0 }
 0x138   : > { %v1545_v21 = vpop.f32.mrf.mxu1 }
 0x139   : > { %v3032_v24 = vpop.f32.mrf.mxu0 }
 0x13a   : > { %v3056_v25 = vpop.f32.mrf.mxu1  ;;  %v1357_v54 = vadd.f32 %v3032_v24, %v1075_v23 }
 0x13b   : > { %v1338_v26 = vpop.f32.mrf.mxu0 }
 0x13c   : > { %v1548_v27 = vpop.f32.mrf.mxu1 }
 0x14d   : > { %v3075_v31 = vpop.f32.mrf.mxu0 }
 0x14e   : > { %v3850_v29 = vpop.f32.mrf.mxu1 }
 0x14f   : > { %3892 = vst [vmem:[#allocation2_spill] sm:$0xff] %v3850_v29  ;;  %v1703_v30 = vpop.f32.mrf.mxu0  ;;  %v894_v29 = vadd.f32 %v863_v58, %v659_v37  ;;  %v1352_v37 = vadd.f32 %v3027_v12, %v1070_v50 }
 0x150   : > { %v3852_v32 = vpop.f32.mrf.mxu1 }
 0x151   : > { %3893 = vst [vmem:[#allocation3_spill] sm:$0xff] %v3852_v32  ;;  %v3076_v33 = vpop.f32.mrf.mxu0  ;;  %v897_v32 = vadd.f32 %v2980_v15, %v670_v36  ;;  %v1068_v52 = vadd.f32 %v1037_v59, %v894_v29  ;;  %v1562_v8 = vadd.f32 %v3051_v20, %v1352_v37  ;;  %v1567_v29 = vadd.f32 %v3056_v25, %v1357_v54 }
 0x152   : > { %v3854_v35 = vpop.f32.mrf.mxu1 }
 0x153   : > { %3894 = vst [vmem:[#allocation4_spill] sm:$0xff] %v3854_v35  ;;  %v1706_v9 = vpop.f32.mrf.mxu0  ;;  %v1071_v53 = vadd.f32 %v3004_v60, %v897_v32  ;;  %v1350_v58 = vadd.f32 %v1319_v2, %v1068_v52  ;;  %v1736_v62 = vadd.f32 %v3075_v31, %v1562_v8 }
 0x154   : > { %v3856_v10 = vpop.f32.mrf.mxu1  ;;  %v1735_v32 = vadd.f32 %v1706_v9, %v1561_v4 }
 0x155   : > { %3895 = vst [vmem:[#allocation5_spill] sm:$0xff] %v3856_v10  ;;  %v3079_v34 = vpop.f32.mrf.mxu0  ;;  %v675_v10 = vadd.f32 %v674_v1, %v537_v51  ;;  %v1353_v15 = vadd.f32 %v3028_v16, %v1071_v53  ;;  %v1073_v1 = vadd.f32 %v1056_v11, %v899_v46  ;;  %v1356_v51 = vadd.f32 %v3031_v18, %v1074_v48 }
 0x156   : > { %v3103_v35 = vpop.f32.mrf.mxu1  ;;  %v1560_v57 = vadd.f32 %v1529_v14, %v1350_v58 }
 0x157   : > { %v898_v28 = vadd.f32 %v879_v5, %v675_v10  ;;  %v1719_v49 = vpop.f32.mrf.mxu0  ;;  %v1355_v63 = vadd.f32 %v1338_v26, %v1073_v1  ;;  %v1563_v59 = vadd.f32 %v3052_v7, %v1353_v15  ;;  %v1566_v60 = vadd.f32 %v3055_v13, %v1356_v51  ;;  %v3896_v7 = vld [vmem:[#allocation2_spill] sm:$0xff] }
 0x158   : > { %v2001_v47 = vpop.f32.mrf.mxu1  ;;  %v1734_v12 = vadd.f32 %v1703_v30, %v1560_v57  ;;  %v2018_v13 = vadd.f32 %v3896_v7, %v1736_v62  ;;  %v3897_v25 = vld [vmem:[#allocation3_spill] sm:$0xff] }
 0x159   : > { %v1072_v36 = vadd.f32 %v1053_v6, %v898_v28  ;;  %v3080_v55 = vpop.f32.mrf.mxu0  ;;  %v1737_v2 = vadd.f32 %v3076_v33, %v1563_v59  ;;  %v1565_v16 = vadd.f32 %v1548_v27, %v1355_v63  ;;  %v1740_v18 = vadd.f32 %v3079_v34, %v1566_v60 }
 0x15a   : > { %v3104_v61 = vpop.f32.mrf.mxu1  ;;  %v1741_v24 = vadd.f32 %v3080_v55, %v1567_v29  ;;  %v2016_v10 = vadd.f32 %v3897_v25, %v1734_v12  ;;  %v3898_v41 = vld [vmem:[#allocation4_spill] sm:$0xff] }
 0x15b   : > { %v1354_v5 = vadd.f32 %v1335_v19, %v1072_v36  ;;  %v1722_v3 = vpop.f32.mrf.mxu0  ;;  %v2019_v31 = vadd.f32 %v3898_v41, %v1737_v2  ;;  %v2022_v33 = vadd.f32 %v3103_v35, %v1740_v18 }
 0x15c   : > { %v2004_v6 = vpop.f32.mrf.mxu1  ;;  %v1739_v20 = vadd.f32 %v1722_v3, %v1565_v16  ;;  %v2023_v38 = vadd.f32 %v3104_v61, %v1741_v24  ;;  %v3899_v27 = vld [vmem:[#allocation5_spill] sm:$0xff] }
 0x15d   : > { %v1564_v11 = vadd.f32 %v1545_v21, %v1354_v5  ;;  %v2017_v22 = vadd.f32 %v3899_v27, %v1735_v32 }
 0x15e   : > { %v2021_v43 = vadd.f32 %v2004_v6, %v1739_v20 }
 0x15f   : > { %v1738_v26 = vadd.f32 %v1719_v49, %v1564_v11 }
 0x161   : > { %v2020_v42 = vadd.f32 %v2001_v47, %v1738_v26 }
 0x16d   : > { %v3123_v17 = vpop.f32.mrf.mxu0 }
 0x16e   : > { %v3127_v19 = vpop.f32.mrf.mxu1  ;;  %v2228_v34 = vadd.f32 %v3123_v17, %v2018_v13 }
 0x16f   : > { %v2195_v14 = vpop.f32.mrf.mxu0  ;;  %v2232_v44 = vadd.f32 %v3127_v19, %v2022_v33 }
 0x170   : > { %v2211_v30 = vpop.f32.mrf.mxu1  ;;  %v2226_v39 = vadd.f32 %v2195_v14, %v2016_v10  ;;  %v2266_v58 = vmul.f32 %v2228_v34, %v2228_v34 }
 0x171   : > { %v3124_v21 = vpop.f32.mrf.mxu0  ;;  %v2230_v50 = vadd.f32 %v2211_v30, %v2020_v42  ;;  %v2270_v57 = vmul.f32 %v2232_v44, %v2232_v44 }
 0x172   : > { %v2229_v9 = vadd.f32 %v3124_v21, %v2019_v31  ;;  %v3128_v40 = vpop.f32.mrf.mxu1  ;;  %v2264_v48 = vmul.f32 %v2226_v39, %v2226_v39 }
 0x173   : > { %v2233_v45 = vadd.f32 %v3128_v40, %v2023_v38  ;;  %v2198_v28 = vpop.f32.mrf.mxu0  ;;  %v2268_v55 = vmul.f32 %v2230_v50, %v2230_v50 }
 0x174   : > { %v2790_v46 = vpack.c.bf16 %v2229_v9, %v2228_v34  ;;  %v2227_v49 = vadd.f32 %v2198_v28, %v2017_v22  ;;  %v2214_v35 = vpop.f32.mrf.mxu1  ;;  %v2267_v1 = vmul.f32 %v2229_v9, %v2229_v9 }
 0x175   : > { %v2800_v52 = vpack.c.bf16 %v2233_v45, %v2232_v44  ;;  %v2231_v53 = vadd.f32 %v2214_v35, %v2021_v43  ;;  %v2271_v29 = vmul.f32 %v2233_v45, %v2233_v45 }
 0x176   : > { %2802 = vst [vmem:[%s240_s21 + $0x8] sm:$0xff] %v2790_v46   ;;  %v2785_v23 = vpack.c.bf16 %v2227_v49, %v2226_v39  ;;  %v2250_v56 = vadd.f32 %v2227_v49, %v2226_v39  ;;  %v2265_v37 = vmul.f32 %v2227_v49, %v2227_v49 }
 0x177   : > { %2804 = vst [vmem:[%s240_s21 + $0x18] sm:$0xff] %v2800_v52   ;;  %v2795_v47 = vpack.c.bf16 %v2231_v53, %v2230_v50  ;;  %v2269_v63 = vmul.f32 %v2231_v53, %v2231_v53 }
 0x178   : > { %2786 = vst [vmem:[%s240_s21] sm:$0xff] %v2785_v23   ;;  %v2251_v15 = vadd.f32 %v2250_v56, %v2228_v34  ;;  %v2272_v36 = vadd.f32 %v2265_v37, %v2264_v48 }
 0x179   : > { %2803 = vst [vmem:[%s240_s21 + $0x10] sm:$0xff] %v2795_v47  }
 0x17a   : > { %v2273_v51 = vadd.f32 %v2272_v36, %v2266_v58  ;;  %v2252_v54 = vadd.f32 %v2251_v15, %v2229_v9 }
 0x17c   : > { %v2253_v0 = vadd.f32 %v2252_v54, %v2230_v50  ;;  %v2274_v61 = vadd.f32 %v2273_v51, %v2267_v1 }
 0x17e   : > { %v2254_v5 = vadd.f32 %v2253_v0, %v2231_v53  ;;  %v2275_v8 = vadd.f32 %v2274_v61, %v2268_v55 }
 0x180   : > { %v2255_v59 = vadd.f32 %v2254_v5, %v2232_v44  ;;  %v2276_v60 = vadd.f32 %v2275_v8, %v2269_v63 }
 0x182   : > { %v2256_v3 = vadd.f32 %v2255_v59, %v2233_v45  ;;  %v2277_v4 = vadd.f32 %v2276_v60, %v2270_v57 }
 0x184   : > { %v2257_v62 = vrot.slane %v2256_v3, 4  ;;  %v2278_v12 = vadd.f32 %v2277_v4, %v2271_v29 }
 0x186   : > { %v2258_v2 = vadd.f32 %v2257_v62, %v2256_v3  ;;  %v2279_v6 = vrot.slane %v2278_v12, 4 }
 0x188   : > { %v2259_v11 = vrot.slane %v2258_v2, 2  ;;  %v2280_v16 = vadd.f32 %v2279_v6, %v2278_v12 }
 0x18a   : > { %v2260_v18 = vadd.f32 %v2259_v11, %v2258_v2  ;;  %v2281_v24 = vrot.slane %v2280_v16, 2 }
 0x18c   : > { %v2261_v17 = vrot.slane %v2260_v18, 1  ;;  %v2282_v32 = vadd.f32 %v2281_v24, %v2280_v16 }
 0x18e   : > { %v2262_v19 = vadd.f32 %v2261_v17, %v2260_v18  ;;  %v2283_v26 = vrot.slane %v2282_v32, 1 }
 0x190   : > { %2263 = vst [vmem:[%s247_s24] sm:$0x1] %v2262_v19  ;;  %v2284_v20 = vadd.f32 %v2283_v26, %v2282_v32 }
 0x192   : > { %2285 = vst [vmem:[%s253_s27] sm:$0x1] %v2284_v20 }
 0x193 PF: > { %s15_s17 = sadd.s32 1, %s3276_s17   ;;  %s3900_s15 = smov %s3272_s16 }
 0x194   : > { %p12_p5 = scmp.ge.s32.totalorder %s15_s17, 4   ;;  %s3901_s16 = smov %s3903_s18 }
 0x196   :  { %14 = sbr.rel (!%p12_p5) target bundleno = 2 (0x2), region = 93 }

</bundles_post_ra>
